<compile_context>
chip_gen: v7x
topology: tpu7x:2x2x1
jax: 0.10.0
libtpu: 0.0.40
codegen_flags: <defaults>
</compile_context>

<pallas_src>
import numpy as np
import jax
import jax.numpy as jnp
from jax.experimental import pallas as pl
from jax.experimental.pallas import tpu as pltpu


# ----------------------------- kernel ------------------------------------- #

def _softplus100(x):
    # torch.nn.Softplus(beta=100, threshold=20):
    #   y = (1/beta) * log(1 + exp(beta*x))   if beta*x <= threshold
    #   y = x                                  otherwise
    bx = 100.0 * x
    safe = jnp.where(bx > 20.0, 0.0, bx)          # avoid overflow in exp
    sp = jnp.log1p(jnp.exp(safe)) * 0.01          # multiply, not divide
    return jnp.where(bx > 20.0, x, sp)


def mlp_kernel(x_ref,
               w0_ref, b0_ref,
               w1_ref, b1_ref,
               w2_ref, b2_ref,
               w3_ref, b3_ref,
               o_ref):
    # x: (tile_n, d_in) f32.  Layer 0 kept in f32 (K=32 underfills the MXU
    # anyway; skipping the bf16 pack saves VPU work).
    x = x_ref[...]

    h = jnp.dot(x, w0_ref[...], preferred_element_type=jnp.float32) + b0_ref[...]
    h = _softplus100(h)

    # Hidden 128x128 layers: bf16 MXU operands, f32 accumulation.
    h = jnp.dot(h.astype(jnp.bfloat16), w1_ref[...],
                preferred_element_type=jnp.float32) + b1_ref[...]
    h = _softplus100(h)

    h = jnp.dot(h.astype(jnp.bfloat16), w2_ref[...],
                preferred_element_type=jnp.float32) + b2_ref[...]
    h = _softplus100(h)

    # Final 128 -> 1 layer, f32, as a VPU multiply + lane reduce.  Avoids any
    # transpose/relayout of the (tile_n,128) activation and any tiny-N MXU
    # shape; ~0.2% of FLOPs so precision here is free.
    out = jnp.sum(h * w3_ref[...], axis=-1, keepdims=True) + b3_ref[...]
    o_ref[...] = out.astype(o_ref.dtype)


# ----------------------------- wrapper ------------------------------------ #

def _cdiv(a, b):
    return -(-a // b)


def _pick_tile(n_rows, tile_n):
    """Row tile size + tile count.  >=2 grid steps when N allows, even tile
    count preferred (v7x shards the parallel grid across 2 TensorCores)."""
    tile_n = int(max(128, min(int(tile_n), 8192)))
    tile_n -= tile_n % 128
    if n_rows < 2 * tile_n:
        tile_n = max(128, _cdiv(_cdiv(n_rows, 2), 128) * 128)
    num_tiles = _cdiv(n_rows, tile_n)
    if num_tiles > 1 and num_tiles % 2 == 1:
        # Best-effort: shrink the tile so the count becomes even.
        target = num_tiles + 1
        tile_n = max(128, _cdiv(_cdiv(n_rows, target), 128) * 128)
        num_tiles = _cdiv(n_rows, tile_n)
    return tile_n, num_tiles


def network_forward(feats, params, *, tile_n=2048):
    """feats: (N, d_in) float32.  params: list of (W(in,out), b(out,))."""
    N, d_in = feats.shape
    feats = feats.astype(jnp.float32)

    (w0, b0), (w1, b1), (w2, b2), (w3, b3) = params
    d_hid = w0.shape[1]
    assert w3.shape == (d_hid, 1), "final layer must be d_hid -> 1"

    tile_n, num_tiles = _pick_tile(N, tile_n)
    N_pad = num_tiles * tile_n
    if N_pad != N:
        feats = jnp.pad(feats, ((0, N_pad - N), (0, 0)))

    # Layer 0 and final layer in f32; hidden 128x128 layers in bf16.
    w0f = w0.astype(jnp.float32)
    w1b = w1.astype(jnp.bfloat16)
    w2b = w2.astype(jnp.bfloat16)
    w3r = w3.reshape(1, d_hid).astype(jnp.float32)      # (1, d_hid) row

    b0r = b0.reshape(1, -1).astype(jnp.float32)
    b1r = b1.reshape(1, -1).astype(jnp.float32)
    b2r = b2.reshape(1, -1).astype(jnp.float32)
    b3r = b3.reshape(1, 1).astype(jnp.float32)

    in_specs = [
        pl.BlockSpec((tile_n, d_in), lambda i: (i, 0)),
        pl.BlockSpec(w0f.shape, lambda i: (0, 0)),
        pl.BlockSpec(b0r.shape, lambda i: (0, 0)),
        pl.BlockSpec(w1b.shape, lambda i: (0, 0)),
        pl.BlockSpec(b1r.shape, lambda i: (0, 0)),
        pl.BlockSpec(w2b.shape, lambda i: (0, 0)),
        pl.BlockSpec(b2r.shape, lambda i: (0, 0)),
        pl.BlockSpec(w3r.shape, lambda i: (0, 0)),
        pl.BlockSpec(b3r.shape, lambda i: (0, 0)),
    ]
    out_specs = pl.BlockSpec((tile_n, 1), lambda i: (i, 0))

    out = pl.pallas_call(
        mlp_kernel,
        out_shape=jax.ShapeDtypeStruct((N_pad, 1), jnp.float32),
        grid_spec=pltpu.PrefetchScalarGridSpec(
            num_scalar_prefetch=0,
            grid=(num_tiles,),
            in_specs=in_specs,
            out_specs=out_specs,
        ),
        compiler_params=pltpu.CompilerParams(
            dimension_semantics=("parallel",),
            vmem_limit_bytes=32 * 1024 * 1024,
        ),
    )(feats, w0f, b0r, w1b, b1r, w2b, b2r, w3r, b3r)

    return out[:N, :]


# ------------------------- parameter construction ------------------------- #

def init_params(key, d_in=32, d_hid=128, n_layers=3, d_out=1,
                bias=0.5, inside_outside=False):
    """Mimics the torch geo_init + weight_norm reparametrization.

    Returns list of (W, b) with W shaped (in_dim, out_dim)."""
    dims = [d_in] + [d_hid] * n_layers + [d_out]
    num_layers = len(dims)
    params = []
    for l in range(num_layers - 1):
        in_dim, out_dim = dims[l], dims[l + 1]
        key, k_w = jax.random.split(key)
        if l == num_layers - 2:
            mean = np.sqrt(np.pi) / np.sqrt(in_dim)
            if inside_outside:
                mean = -mean
            v = mean + 0.0001 * jax.random.normal(k_w, (out_dim, in_dim), jnp.float32)
            b = jnp.full((out_dim,), (bias if inside_outside else -bias), jnp.float32)
        else:
            std = np.sqrt(2.0) / np.sqrt(out_dim)
            v = std * jax.random.normal(k_w, (out_dim, in_dim), jnp.float32)
            b = jnp.zeros((out_dim,), jnp.float32)
        # weight_norm: W = g * v / ||v||_row with g initialized to ||v||_row,
        # so the effective weight at init equals v (kept explicit for fidelity).
        norm = jnp.sqrt(jnp.sum(v * v, axis=1, keepdims=True))
        g = norm
        w_eff = g * v / norm
        params.append((w_eff.T, b))  # store as (in, out)
    return params


# ------------------------------ references -------------------------------- #

def reference_forward_f32(feats, params):
    """Pure f32 forward, matching the original PyTorch module."""
    x = feats.astype(jnp.float32)
    n = len(params)
    for l, (w, b) in enumerate(params):
        x = x @ w + b
        if l < n - 1:
            x = _softplus100(x)
    return x


def reference_forward_matched(feats, params):
    """Same precision policy as the kernel: layer 0 and final layer f32,
    hidden layers with bf16 operands / f32 accumulation."""
    x = feats.astype(jnp.float32)
    n = len(params)
    for l, (w, b) in enumerate(params):
        if l == 0 or l == n - 1:
            x = jnp.dot(x, w.astype(jnp.float32),
                        preferred_element_type=jnp.float32) + b
        else:
            x = jnp.dot(x.astype(jnp.bfloat16), w.astype(jnp.bfloat16),
                        preferred_element_type=jnp.float32) + b
        if l < n - 1:
            x = _softplus100(x)
    return x


# --------------------------------- main ----------------------------------- #

if __name__ == "__main__":
    key = jax.random.PRNGKey(0)
    k_feat, k_param = jax.random.split(key)

    # Small demo shape; N deliberately not a multiple of the tile so the
    # padding / tail handling is exercised (grid ends up with 2 steps).
    N, D_IN = 384, 32
    feats = jax.random.normal(k_feat, (N, D_IN), jnp.float32)

    params = init_params(k_param, d_in=D_IN, d_hid=128, n_layers=3, d_out=1)

    out = network_forward(feats, params)
    out = jax.block_until_ready(out)
    assert out.shape == (N, 1)

    # Tight check against a reference using the kernel's exact precision policy.
    ref_m = reference_forward_matched(feats, params)
    np.testing.assert_allclose(np.asarray(out), np.asarray(ref_m),
                               rtol=2e-3, atol=2e-3)

    # Looser check against the true f32 model (bf16 hidden-layer matmuls only
    # introduce ~1e-3-level differences).
    ref_f32 = reference_forward_f32(feats, params)
    np.testing.assert_allclose(np.asarray(out), np.asarray(ref_f32),
                               rtol=5e-2, atol=5e-2)

    print("KERNEL_OK")
</pallas_src>

<mosaic_0001>
module attributes {stable_mosaic.version = 11 : i64} {
  func.func @mlp_kernel(%arg0: i32, %arg1: memref<256x32xf32, #tpu.memory_space<vmem>>, %arg2: memref<32x128xf32, #tpu.memory_space<vmem>>, %arg3: memref<1x128xf32, #tpu.memory_space<vmem>>, %arg4: memref<128x128xbf16, #tpu.memory_space<vmem>>, %arg5: memref<1x128xf32, #tpu.memory_space<vmem>>, %arg6: memref<128x128xbf16, #tpu.memory_space<vmem>>, %arg7: memref<1x128xf32, #tpu.memory_space<vmem>>, %arg8: memref<1x128xf32, #tpu.memory_space<vmem>>, %arg9: memref<1x1xf32, #tpu.memory_space<vmem>>, %arg10: memref<256x1xf32, #tpu.memory_space<vmem>>) attributes {dimension_semantics = [#tpu.dimension_semantics<parallel>], iteration_bounds = array<i64: 2>, scalar_prefetch = 0 : i64, scratch_operands = 0 : i64, tpu.core_type = #tpu.core_type<tc>, window_params = [{transform_indices = @transform_0, window_bounds = array<i64: 256, 32>}, {pipeline_mode = #tpu.pipeline_mode<synchronous>, transform_indices = @transform_1, window_bounds = array<i64: 32, 128>}, {pipeline_mode = #tpu.pipeline_mode<synchronous>, transform_indices = @transform_2, window_bounds = array<i64: 1, 128>}, {pipeline_mode = #tpu.pipeline_mode<synchronous>, transform_indices = @transform_3, window_bounds = array<i64: 128, 128>}, {pipeline_mode = #tpu.pipeline_mode<synchronous>, transform_indices = @transform_4, window_bounds = array<i64: 1, 128>}, {pipeline_mode = #tpu.pipeline_mode<synchronous>, transform_indices = @transform_5, window_bounds = array<i64: 128, 128>}, {pipeline_mode = #tpu.pipeline_mode<synchronous>, transform_indices = @transform_6, window_bounds = array<i64: 1, 128>}, {pipeline_mode = #tpu.pipeline_mode<synchronous>, transform_indices = @transform_7, window_bounds = array<i64: 1, 128>}, {pipeline_mode = #tpu.pipeline_mode<synchronous>, transform_indices = @transform_8, window_bounds = array<i64: 1, 1>}, {transform_indices = @transform_9, window_bounds = array<i64: 256, 1>}]} {
    %c0 = arith.constant 0 : index
    %c0_0 = arith.constant 0 : index
    %0 = vector.load %arg1[%c0, %c0_0] : memref<256x32xf32, #tpu.memory_space<vmem>>, vector<256x32xf32>
    %c0_1 = arith.constant 0 : index
    %c0_2 = arith.constant 0 : index
    %1 = vector.load %arg2[%c0_1, %c0_2] : memref<32x128xf32, #tpu.memory_space<vmem>>, vector<32x128xf32>
    %cst = arith.constant dense<0.000000e+00> : vector<256x128xf32>
    %2 = tpu.matmul %0, %1, %cst {dimension_numbers = #tpu.dot_dimension_numbers<[1], [0], [0], [1], [0, 0, 1, 1], [], []>} : vector<256x32xf32>, vector<32x128xf32>, vector<256x128xf32> -> vector<256x128xf32>
    %c0_3 = arith.constant 0 : index
    %c0_4 = arith.constant 0 : index
    %3 = vector.load %arg3[%c0_3, %c0_4] : memref<1x128xf32, #tpu.memory_space<vmem>>, vector<1x128xf32>
    %4 = vector.broadcast %3 : vector<1x128xf32> to vector<256x128xf32>
    %5 = arith.addf %2, %4 : vector<256x128xf32>
    %cst_5 = arith.constant 1.000000e+02 : f32
    %6 = vector.broadcast %cst_5 : f32 to vector<256x128xf32>
    %7 = arith.mulf %6, %5 : vector<256x128xf32>
    %cst_6 = arith.constant 2.000000e+01 : f32
    %8 = vector.broadcast %cst_6 : f32 to vector<256x128xf32>
    %9 = arith.cmpf ogt, %7, %8 : vector<256x128xf32>
    %cst_7 = arith.constant 0.000000e+00 : f32
    %10 = vector.broadcast %cst_7 : f32 to vector<256x128xf32>
    %11 = arith.select %9, %10, %7 : vector<256x128xi1>, vector<256x128xf32>
    %12 = math.exp %11 : vector<256x128xf32>
    %13 = math.log1p %12 : vector<256x128xf32>
    %cst_8 = arith.constant 0.00999999977 : f32
    %14 = vector.broadcast %cst_8 : f32 to vector<256x128xf32>
    %15 = arith.mulf %13, %14 : vector<256x128xf32>
    %cst_9 = arith.constant 2.000000e+01 : f32
    %16 = vector.broadcast %cst_9 : f32 to vector<256x128xf32>
    %17 = arith.cmpf ogt, %7, %16 : vector<256x128xf32>
    %18 = arith.select %17, %5, %15 : vector<256x128xi1>, vector<256x128xf32>
    %19 = arith.truncf %18 : vector<256x128xf32> to vector<256x128xbf16>
    %c0_10 = arith.constant 0 : index
    %c0_11 = arith.constant 0 : index
    %20 = vector.load %arg4[%c0_10, %c0_11] : memref<128x128xbf16, #tpu.memory_space<vmem>>, vector<128x128xbf16>
    %cst_12 = arith.constant dense<0.000000e+00> : vector<256x128xf32>
    %21 = tpu.matmul %19, %20, %cst_12 {dimension_numbers = #tpu.dot_dimension_numbers<[1], [0], [0], [1], [0, 0, 1, 1], [], []>} : vector<256x128xbf16>, vector<128x128xbf16>, vector<256x128xf32> -> vector<256x128xf32>
    %c0_13 = arith.constant 0 : index
    %c0_14 = arith.constant 0 : index
    %22 = vector.load %arg5[%c0_13, %c0_14] : memref<1x128xf32, #tpu.memory_space<vmem>>, vector<1x128xf32>
    %23 = vector.broadcast %22 : vector<1x128xf32> to vector<256x128xf32>
    %24 = arith.addf %21, %23 : vector<256x128xf32>
    %cst_15 = arith.constant 1.000000e+02 : f32
    %25 = vector.broadcast %cst_15 : f32 to vector<256x128xf32>
    %26 = arith.mulf %25, %24 : vector<256x128xf32>
    %cst_16 = arith.constant 2.000000e+01 : f32
    %27 = vector.broadcast %cst_16 : f32 to vector<256x128xf32>
    %28 = arith.cmpf ogt, %26, %27 : vector<256x128xf32>
    %cst_17 = arith.constant 0.000000e+00 : f32
    %29 = vector.broadcast %cst_17 : f32 to vector<256x128xf32>
    %30 = arith.select %28, %29, %26 : vector<256x128xi1>, vector<256x128xf32>
    %31 = math.exp %30 : vector<256x128xf32>
    %32 = math.log1p %31 : vector<256x128xf32>
    %cst_18 = arith.constant 0.00999999977 : f32
    %33 = vector.broadcast %cst_18 : f32 to vector<256x128xf32>
    %34 = arith.mulf %32, %33 : vector<256x128xf32>
    %cst_19 = arith.constant 2.000000e+01 : f32
    %35 = vector.broadcast %cst_19 : f32 to vector<256x128xf32>
    %36 = arith.cmpf ogt, %26, %35 : vector<256x128xf32>
    %37 = arith.select %36, %24, %34 : vector<256x128xi1>, vector<256x128xf32>
    %38 = arith.truncf %37 : vector<256x128xf32> to vector<256x128xbf16>
    %c0_20 = arith.constant 0 : index
    %c0_21 = arith.constant 0 : index
    %39 = vector.load %arg6[%c0_20, %c0_21] : memref<128x128xbf16, #tpu.memory_space<vmem>>, vector<128x128xbf16>
    %cst_22 = arith.constant dense<0.000000e+00> : vector<256x128xf32>
    %40 = tpu.matmul %38, %39, %cst_22 {dimension_numbers = #tpu.dot_dimension_numbers<[1], [0], [0], [1], [0, 0, 1, 1], [], []>} : vector<256x128xbf16>, vector<128x128xbf16>, vector<256x128xf32> -> vector<256x128xf32>
    %c0_23 = arith.constant 0 : index
    %c0_24 = arith.constant 0 : index
    %41 = vector.load %arg7[%c0_23, %c0_24] : memref<1x128xf32, #tpu.memory_space<vmem>>, vector<1x128xf32>
    %42 = vector.broadcast %41 : vector<1x128xf32> to vector<256x128xf32>
    %43 = arith.addf %40, %42 : vector<256x128xf32>
    %cst_25 = arith.constant 1.000000e+02 : f32
    %44 = vector.broadcast %cst_25 : f32 to vector<256x128xf32>
    %45 = arith.mulf %44, %43 : vector<256x128xf32>
    %cst_26 = arith.constant 2.000000e+01 : f32
    %46 = vector.broadcast %cst_26 : f32 to vector<256x128xf32>
    %47 = arith.cmpf ogt, %45, %46 : vector<256x128xf32>
    %cst_27 = arith.constant 0.000000e+00 : f32
    %48 = vector.broadcast %cst_27 : f32 to vector<256x128xf32>
    %49 = arith.select %47, %48, %45 : vector<256x128xi1>, vector<256x128xf32>
    %50 = math.exp %49 : vector<256x128xf32>
    %51 = math.log1p %50 : vector<256x128xf32>
    %cst_28 = arith.constant 0.00999999977 : f32
    %52 = vector.broadcast %cst_28 : f32 to vector<256x128xf32>
    %53 = arith.mulf %51, %52 : vector<256x128xf32>
    %cst_29 = arith.constant 2.000000e+01 : f32
    %54 = vector.broadcast %cst_29 : f32 to vector<256x128xf32>
    %55 = arith.cmpf ogt, %45, %54 : vector<256x128xf32>
    %56 = arith.select %55, %43, %53 : vector<256x128xi1>, vector<256x128xf32>
    %c0_30 = arith.constant 0 : index
    %c0_31 = arith.constant 0 : index
    %57 = vector.load %arg8[%c0_30, %c0_31] : memref<1x128xf32, #tpu.memory_space<vmem>>, vector<1x128xf32>
    %58 = vector.broadcast %57 : vector<1x128xf32> to vector<256x128xf32>
    %59 = arith.mulf %56, %58 : vector<256x128xf32>
    %cst_32 = arith.constant dense<0.000000e+00> : vector<256xf32>
    %60 = vector.multi_reduction <add>, %59, %cst_32 [1] : vector<256x128xf32> to vector<256xf32>
    %61 = vector.shape_cast %60 : vector<256xf32> to vector<256x1xf32>
    %c0_33 = arith.constant 0 : index
    %c0_34 = arith.constant 0 : index
    %62 = vector.load %arg9[%c0_33, %c0_34] : memref<1x1xf32, #tpu.memory_space<vmem>>, vector<1x1xf32>
    %63 = vector.broadcast %62 : vector<1x1xf32> to vector<256x1xf32>
    %64 = arith.addf %61, %63 : vector<256x1xf32>
    %c0_35 = arith.constant 0 : index
    %c0_36 = arith.constant 0 : index
    %65 = vector.load %arg10[%c0_35, %c0_36] : memref<256x1xf32, #tpu.memory_space<vmem>>, vector<256x1xf32>
    tpu.vector_store %arg10[%c0_35, %c0_36], %64 {strides = array<i32>} : memref<256x1xf32, #tpu.memory_space<vmem>>, vector<256x1xf32>,
    return
  }
  func.func @transform_0(%arg0: i32) -> (i32, i32) {
    %c0_i32 = arith.constant 0 : i32
    %c0_i32_0 = arith.constant 0 : i32
    return %arg0, %c0_i32 : i32, i32
  }
  func.func @transform_1(%arg0: i32) -> (i32, i32) {
    %c0_i32 = arith.constant 0 : i32
    %c0_i32_0 = arith.constant 0 : i32
    %c0_i32_1 = arith.constant 0 : i32
    return %c0_i32, %c0_i32_0 : i32, i32
  }
  func.func @transform_2(%arg0: i32) -> (i32, i32) {
    %c0_i32 = arith.constant 0 : i32
    %c0_i32_0 = arith.constant 0 : i32
    %c0_i32_1 = arith.constant 0 : i32
    return %c0_i32, %c0_i32_0 : i32, i32
  }
  func.func @transform_3(%arg0: i32) -> (i32, i32) {
    %c0_i32 = arith.constant 0 : i32
    %c0_i32_0 = arith.constant 0 : i32
    %c0_i32_1 = arith.constant 0 : i32
    return %c0_i32, %c0_i32_0 : i32, i32
  }
  func.func @transform_4(%arg0: i32) -> (i32, i32) {
    %c0_i32 = arith.constant 0 : i32
    %c0_i32_0 = arith.constant 0 : i32
    %c0_i32_1 = arith.constant 0 : i32
    return %c0_i32, %c0_i32_0 : i32, i32
  }
  func.func @transform_5(%arg0: i32) -> (i32, i32) {
    %c0_i32 = arith.constant 0 : i32
    %c0_i32_0 = arith.constant 0 : i32
    %c0_i32_1 = arith.constant 0 : i32
    return %c0_i32, %c0_i32_0 : i32, i32
  }
  func.func @transform_6(%arg0: i32) -> (i32, i32) {
    %c0_i32 = arith.constant 0 : i32
    %c0_i32_0 = arith.constant 0 : i32
    %c0_i32_1 = arith.constant 0 : i32
    return %c0_i32, %c0_i32_0 : i32, i32
  }
  func.func @transform_7(%arg0: i32) -> (i32, i32) {
    %c0_i32 = arith.constant 0 : i32
    %c0_i32_0 = arith.constant 0 : i32
    %c0_i32_1 = arith.constant 0 : i32
    return %c0_i32, %c0_i32_0 : i32, i32
  }
  func.func @transform_8(%arg0: i32) -> (i32, i32) {
    %c0_i32 = arith.constant 0 : i32
    %c0_i32_0 = arith.constant 0 : i32
    %c0_i32_1 = arith.constant 0 : i32
    return %c0_i32, %c0_i32_0 : i32, i32
  }
  func.func @transform_9(%arg0: i32) -> (i32, i32) {
    %c0_i32 = arith.constant 0 : i32
    %c0_i32_0 = arith.constant 0 : i32
    return %arg0, %c0_i32 : i32, i32
  }
}

</mosaic_0001>

<bundles_post_ra>
// kernel: tpu_custom_call.1
= control target key start
LH: loop header
LB: loop body
LE: loop exit
PB: predicated region body
PF: predicated region fallthrough
CT: control target
= control target key end

     0   :  { %s3749_s11 = smov 0   ;;  %s6310_s0 = inlined_call_operand.vmem [shape: f32[512,32], index: 0, kind: input, shape index: {}]   ;;  %s6311_s1 = inlined_call_operand.vmem [shape: f32[32,128], index: 1, kind: input, shape index: {}]   ;;  %s6312_s2 = inlined_call_operand.vmem [shape: f32[1,128], index: 2, kind: input, shape index: {}]   ;;  %s6313_s3 = inlined_call_operand.vmem [shape: bf16[128,128], index: 3, kind: input, shape index: {}]   ;;  %s6314_s4 = inlined_call_operand.vmem [shape: f32[1,128], index: 4, kind: input, shape index: {}]   ;;  %s6315_s5 = inlined_call_operand.vmem [shape: bf16[128,128], index: 5, kind: input, shape index: {}]   ;;  %s6316_s6 = inlined_call_operand.vmem [shape: f32[1,128], index: 6, kind: input, shape index: {}]   ;;  %s6317_s7 = inlined_call_operand.vmem [shape: f32[1,128], index: 7, kind: input, shape index: {}]   ;;  %s6318_s8 = inlined_call_operand.<no memory space> [shape: f32[1,1], index: 8, kind: input, shape index: {}]   ;;  %s6319_s9 = inlined_call_operand.vmem [shape: f32[512,1], index: 9, kind: output, shape index: {}]  }
   0x1   :  { %v14_v0 = vstv %s6318_s8 }
   0x2   :  { %15 = vst [vmem:[#allocation2] sm:$0x1] %v14_v0 }
   0x3 LB: > { %s2967_s12 = sadd.s32 4294967295, %s3694_s11   ;;  %p2971_p0 = scmp.ge.s32.totalorder %s3694_s11, 1  ;;  %s3694_s11 = sphi %s3749_s11, %s21_s11  }
   0x4   : > { %p290_p1 = scmp.lt.s32.totalorder %s3694_s11, 3 }
   0x6   : > { %p291_p2 = pnand %p2971_p0, %p290_p1 }
   0x8   : > { %294 = sbr.rel (%p291_p2) target bundleno = 1115 (0x45b), region = 56 }
   0xf   : > { %v371_v1 = vld [vmem:[%s6311_s1] sm:$0xff]  ;;  %v372_v2 = vld [vmem:[%s6311_s1 + $0x8] sm:$0xff]  ;;  %v373_v3 = vld [vmem:[%s6311_s1 + $0x10] sm:$0xff]  ;;  %s2972_s18 = sshll.u32 %s2967_s12, 5  ;;  %vm382_vm0 = vcmask 261120  }
  0x10   : > { %v3267_v4 = vpack.c.bf16 %v372_v2, %v371_v1  ;;  %v374_v5 = vld [vmem:[%s6311_s1 + $0x18] sm:$0xff]  ;;  %p327_p3 = scmp.lt.s32.totalorder %s2972_s18, 63  ;;  %v3287_v39 = vld [vmem:[%s6313_s3] sm:$0xff]   ;;  %v3288_v40 = vld [vmem:[%s6313_s3 + $0x8] sm:$0xff]  }
  0x11   : > { %v3271_v6 = vpack.c.bf16 %v374_v5, %v373_v3  ;;  %v3289_v41 = vld [vmem:[%s6313_s3 + $0x10] sm:$0xff]   ;;  %v3290_v42 = vld [vmem:[%s6313_s3 + $0x18] sm:$0xff]   ;;  %v3291_v43 = vld [vmem:[%s6313_s3 + $0x20] sm:$0xff]  }
  0x12   : > { %3268 = vmatprep.subr.bf16.mxu0 %v3267_v4  ;;  %3275 = vmatprep.subr.bf16.mxu1 %v3267_v4  ;;  %s6777_s18 = smov (!%p327_p3, %s2972_s18), 63  ;;  %v3292_v44 = vld [vmem:[%s6313_s3 + $0x28] sm:$0xff]   ;;  %v3293_v45 = vld [vmem:[%s6313_s3 + $0x30] sm:$0xff]   ;;  %v3294_v46 = vld [vmem:[%s6313_s3 + $0x38] sm:$0xff]  }
  0x13   : > { %3270 = vmatpush3.bf16.msra.mxu0 %v3267_v4  ;;  %3277 = vmatpush3.bf16.msra.mxu1 %v3267_v4  ;;  %s2973_s21 = sshll.u32 %s6777_s18, 3  ;;  %v3870_v47 = vld [vmem:[%s6312_s2] ss:$0 sm:$0xff] }
  0x14   : > { %3272 = vmatprep.subr.bf16.mxu0 %v3271_v6  ;;  %3276 = vmatprep.subr.bf16.mxu1 %v3271_v6  ;;  %s3777_s24 = scalar_lea.vmem %s6310_s0, %s2973_s21  ;;  %s6209_s10 = scalar_lea.vmem %s6319_s9, %s2973_s21 }
  0x15   : > { %v339_v7 = vld [vmem:[%s3777_s24] sm:$0xff]  ;;  %v340_v9 = vld [vmem:[%s3777_s24 + $0x8] sm:$0xff]  ;;  %v341_v11 = vld [vmem:[%s3777_s24 + $0x10] sm:$0xff] }
  0x16   : > { %v355_v8 = vld [vmem:[%s3777_s24 + $0x80] sm:$0xff]  ;;  %v356_v10 = vld [vmem:[%s3777_s24 + $0x88] sm:$0xff]  ;;  %3123 = vmatprep.mubr.msk.f32.mxu0 %vm382_vm0, %v339_v7  ;;  %v357_v12 = vld [vmem:[%s3777_s24 + $0x90] sm:$0xff] }
  0x17   : > { %3274 = vmatpush3.bf16.msra.mxu0 %v3271_v6  ;;  %3278 = vmatpush3.bf16.msra.mxu1 %v3271_v6  ;;  %v342_v13 = vld [vmem:[%s3777_s24 + $0x18] sm:$0xff]  ;;  %v343_v15 = vld [vmem:[%s3777_s24 + $0x20] sm:$0xff]  ;;  %v344_v17 = vld [vmem:[%s3777_s24 + $0x28] sm:$0xff] }
  0x18   : > { %3147 = vmatprep.mubr.msk.f32.mxu1 %vm382_vm0, %v355_v8  ;;  %v358_v14 = vld [vmem:[%s3777_s24 + $0x98] sm:$0xff]  ;;  %v359_v16 = vld [vmem:[%s3777_s24 + $0xa0] sm:$0xff]  ;;  %v360_v18 = vld [vmem:[%s3777_s24 + $0xa8] sm:$0xff]  ;;  %3171 = vmatprep.subr.bf16.mxu1 %v3287_v39 }
  0x19   : > { %v345_v19 = vld [vmem:[%s3777_s24 + $0x30] sm:$0xff]  ;;  %v346_v21 = vld [vmem:[%s3777_s24 + $0x38] sm:$0xff]  ;;  %v347_v23 = vld [vmem:[%s3777_s24 + $0x40] sm:$0xff] }
  0x1a   : > { %3124 = vmatmul.mubr.msk.f32.vlgmr.msra.gmra.mrb[0].mxu0 %vm382_vm0, %v340_v9  ;;  %3148 = vmatmul.mubr.msk.f32.vlgmr.msra.gmra.mrb[0].mxu1 %vm382_vm0, %v356_v10  ;;  %v361_v20 = vld [vmem:[%s3777_s24 + $0xb0] sm:$0xff]  ;;  %v362_v22 = vld [vmem:[%s3777_s24 + $0xb8] sm:$0xff]  ;;  %v363_v24 = vld [vmem:[%s3777_s24 + $0xc0] sm:$0xff] }
  0x1b   : > { %3126 = vmatprep.mubr.msk.f32.mxu0 %vm382_vm0, %v341_v11  ;;  %3150 = vmatprep.mubr.msk.f32.mxu1 %vm382_vm0, %v357_v12  ;;  %v348_v25 = vld [vmem:[%s3777_s24 + $0x48] sm:$0xff]  ;;  %v349_v27 = vld [vmem:[%s3777_s24 + $0x50] sm:$0xff]  ;;  %v350_v29 = vld [vmem:[%s3777_s24 + $0x58] sm:$0xff] }
  0x1c   : > { %v364_v26 = vld [vmem:[%s3777_s24 + $0xc8] sm:$0xff]  ;;  %v365_v28 = vld [vmem:[%s3777_s24 + $0xd0] sm:$0xff]  ;;  %v366_v30 = vld [vmem:[%s3777_s24 + $0xd8] sm:$0xff]  ;;  %3172 = vmatpush3.bf16.msra.mxu1 %v3287_v39 }
  0x1d   : > { %v351_v31 = vld [vmem:[%s3777_s24 + $0x60] sm:$0xff]  ;;  %v352_v33 = vld [vmem:[%s3777_s24 + $0x68] sm:$0xff]  ;;  %v353_v35 = vld [vmem:[%s3777_s24 + $0x70] sm:$0xff]  ;;  %3173 = vmatprep.subr.bf16.mxu1 %v3288_v40 }
  0x1e   : > { %3127 = vmatmul.mubr.msk.f32.gmra.mrb[2].mxu0 %vm382_vm0, %v342_v13  ;;  %3151 = vmatmul.mubr.msk.f32.gmra.mrb[2].mxu1 %vm382_vm0, %v358_v14  ;;  %v367_v32 = vld [vmem:[%s3777_s24 + $0xe0] sm:$0xff]  ;;  %v368_v34 = vld [vmem:[%s3777_s24 + $0xe8] sm:$0xff]  ;;  %v369_v36 = vld [vmem:[%s3777_s24 + $0xf0] sm:$0xff] }
  0x1f   : > { %3129 = vmatprep.mubr.msk.f32.mxu0 %vm382_vm0, %v343_v15  ;;  %3153 = vmatprep.mubr.msk.f32.mxu1 %vm382_vm0, %v359_v16  ;;  %v354_v37 = vld [vmem:[%s3777_s24 + $0x78] sm:$0xff] }
  0x20   : > { %v370_v38 = vld [vmem:[%s3777_s24 + $0xf8] sm:$0xff]  ;;  %3174 = vmatpush3.bf16.msra.mxu1 %v3288_v40 }
  0x21   : > { %3175 = vmatprep.subr.bf16.mxu1 %v3289_v41 }
  0x22   : > { %3130 = vmatmul.mubr.msk.f32.gmra.mrb[4].mxu0 %vm382_vm0, %v344_v17  ;;  %3154 = vmatmul.mubr.msk.f32.gmra.mrb[4].mxu1 %vm382_vm0, %v360_v18 }
  0x23   : > { %3132 = vmatprep.mubr.msk.f32.mxu0 %vm382_vm0, %v345_v19  ;;  %3156 = vmatprep.mubr.msk.f32.mxu1 %vm382_vm0, %v361_v20 }
  0x24   : > { %3176 = vmatpush3.bf16.msra.mxu1 %v3289_v41 }
  0x25   : > { %3177 = vmatprep.subr.bf16.mxu1 %v3290_v42 }
  0x26   : > { %3133 = vmatmul.mubr.msk.f32.gmra.mrb[6].mxu0 %vm382_vm0, %v346_v21  ;;  %3157 = vmatmul.mubr.msk.f32.gmra.mrb[6].mxu1 %vm382_vm0, %v362_v22 }
  0x27   : > { %3135 = vmatprep.mubr.msk.f32.mxu0 %vm382_vm0, %v347_v23  ;;  %3159 = vmatprep.mubr.msk.f32.mxu1 %vm382_vm0, %v363_v24 }
  0x28   : > { %3178 = vmatpush3.bf16.msra.mxu1 %v3290_v42 }
  0x29   : > { %3179 = vmatprep.subr.bf16.mxu1 %v3291_v43 }
  0x2a   : > { %3136 = vmatmul.mubr.msk.f32.gmra.mrb[8].mxu0 %vm382_vm0, %v348_v25  ;;  %3160 = vmatmul.mubr.msk.f32.gmra.mrb[8].mxu1 %vm382_vm0, %v364_v26 }
  0x2b   : > { %3138 = vmatprep.mubr.msk.f32.mxu0 %vm382_vm0, %v349_v27  ;;  %3162 = vmatprep.mubr.msk.f32.mxu1 %vm382_vm0, %v365_v28 }
  0x2c   : > { %3180 = vmatpush3.bf16.msra.mxu1 %v3291_v43 }
  0x2d   : > { %3181 = vmatprep.subr.bf16.mxu1 %v3292_v44 }
  0x2e   : > { %3139 = vmatmul.mubr.msk.f32.gmra.mrb[10].mxu0 %vm382_vm0, %v350_v29  ;;  %3163 = vmatmul.mubr.msk.f32.gmra.mrb[10].mxu1 %vm382_vm0, %v366_v30 }
  0x2f   : > { %3141 = vmatprep.mubr.msk.f32.mxu0 %vm382_vm0, %v351_v31  ;;  %3165 = vmatprep.mubr.msk.f32.mxu1 %vm382_vm0, %v367_v32 }
  0x30   : > { %3182 = vmatpush3.bf16.msra.mxu1 %v3292_v44 }
  0x31   : > { %3183 = vmatprep.subr.bf16.mxu1 %v3293_v45 }
  0x32   : > { %3142 = vmatmul.mubr.msk.f32.gmra.mrb[12].mxu0 %vm382_vm0, %v352_v33  ;;  %3166 = vmatmul.mubr.msk.f32.gmra.mrb[12].mxu1 %vm382_vm0, %v368_v34 }
  0x33   : > { %3144 = vmatprep.mubr.msk.f32.mxu0 %vm382_vm0, %v353_v35  ;;  %3168 = vmatprep.mubr.msk.f32.mxu1 %vm382_vm0, %v369_v36 }
  0x34   : > { %3184 = vmatpush3.bf16.msra.mxu1 %v3293_v45 }
  0x35   : > { %3185 = vmatprep.subr.bf16.mxu1 %v3294_v46 }
  0x36   : > { %3145 = vmatmul.mubr.msk.f32.gmra.mrb[14].mxu0 %vm382_vm0, %v354_v37  ;;  %3169 = vmatmul.mubr.msk.f32.gmra.mrb[14].mxu1 %vm382_vm0, %v370_v38 }
  0x38   : > { %3186 = vmatpush3.bf16.msra.mxu1 %v3294_v46 }
  0xed   : > { %v3125_v48 = vpop.f32.mrb[0].mxu0  ;;  %v3149_v49 = vpop.f32.mrb[0].mxu1 }
  0xee   : > { %v3873_v50 = vadd.f32 %v3125_v48, %v3870_v47  ;;  %v3876_v51 = vadd.f32 %v3149_v49, %v3870_v47  ;;  %v545_v52 = vpop.f32.mrb[1].mxu0  ;;  %v625_v53 = vpop.f32.mrb[1].mxu1 }
  0xef   : > { %v3879_v54 = vadd.f32 %v3870_v47, %v545_v52  ;;  %v3882_v55 = vadd.f32 %v3870_v47, %v625_v53 }
  0xf0   : > { %6438 = vst [vmem:[#allocation3_spill] sm:$0xff] %v3876_v51  ;;  %v3885_v56 = vmul.f32 100.0, %v3873_v50  ;;  %v3888_v57 = vmul.f32 100.0, %v3876_v51 }
  0xf1   : > { %6439 = vst [vmem:[#allocation4_spill] sm:$0xff] %v3882_v55  ;;  %v3891_v58 = vmul.f32 100.0, %v3879_v54  ;;  %v3894_v59 = vmul.f32 100.0, %v3882_v55  ;;  %v3128_v60 = vpop.f32.mrb[2].mxu0  ;;  %v3152_v61 = vpop.f32.mrb[2].mxu1 }
  0xf2   : > { %6440 = vst [vmem:[#allocation5_spill] sm:$0xff] %v3888_v57  ;;  %vm737_vm1 = vcmp.gt.f32.partialorder %v3885_v56, 20.0  ;;  %vm6344_vm2 = vcmp.gt.f32.partialorder %v3888_v57, 20.0  ;;  %v3899_v62 = vadd.f32 %v3128_v60, %v3870_v47  ;;  %v3902_v63 = vadd.f32 %v3152_v61, %v3870_v47  ;;  %v555_v0 = vpop.f32.mrb[3].mxu0  ;;  %v635_v1 = vpop.f32.mrb[3].mxu1 }
  0xf3   : > { %6441 = vst [vmem:[#allocation6_spill] sm:$0xff] %v3894_v59  ;;  %v769_v2 = vsel %vm737_vm1, 0.0, %v3885_v56  ;;  %v785_v3 = vsel %vm6344_vm2, 0.0, %v3888_v57  ;;  %vm736_vm3 = vcmp.gt.f32.partialorder %v3891_v58, 20.0  ;;  %vm6361_vm4 = vcmp.gt.f32.partialorder %v3894_v59, 20.0 }
  0xf4   : > { %6442 = vst [vmem:[#allocation7_spill] sm:$0xff] %v3902_v63  ;;  %v802_v4 = vmul.f32 1.442695, %v769_v2  ;;  %v834_v5 = vmul.f32 1.442695, %v785_v3  ;;  %v768_v6 = vsel %vm736_vm3, 0.0, %v3891_v58  ;;  %v3925_v12 = vadd.f32 %v3870_v47, %v555_v0 }
  0xf5   : > { %v784_v7 = vsel %vm6361_vm4, 0.0, %v3894_v59  ;;  %v800_v8 = vmul.f32 1.442695, %v768_v6  ;;  %v3919_v10 = vmul.f32 100.0, %v3899_v62  ;;  %v3922_v11 = vmul.f32 100.0, %v3902_v63  ;;  %v3131_v14 = vpop.f32.mrb[4].mxu0 }
  0xf6   : > { %v832_v9 = vmul.f32 1.442695, %v784_v7  ;;  %3303 = vpow2.f32 %v802_v4  ;;  %v3928_v13 = vadd.f32 %v3870_v47, %v635_v1  ;;  %v3155_v15 = vpop.f32.mrb[4].mxu1  ;;  %v3933_v16 = vadd.f32 %v3131_v14, %v3870_v47  ;;  %v565_v17 = vpop.f32.mrb[5].mxu0 }
  0xf7   : > { %6443 = vst [vmem:[#allocation8_spill] sm:$0xff] %v3922_v11  ;;  %3305 = vpow2.f32 %v834_v5  ;;  %vm739_vm5 = vcmp.gt.f32.partialorder %v3919_v10, 20.0  ;;  %vm6332_vm6 = vcmp.gt.f32.partialorder %v3922_v11, 20.0  ;;  %v645_v18 = vpop.f32.mrb[5].mxu1  ;;  %v3939_v20 = vmul.f32 100.0, %v3925_v12 }
  0xf8   : > { %6444 = vst [vmem:[#allocation9_spill] sm:$0xff] %v3928_v13  ;;  %3307 = vpow2.f32 %v800_v8  ;;  %v771_v19 = vsel %vm739_vm5, 0.0, %v3919_v10  ;;  %v787_v22 = vsel %vm6332_vm6, 0.0, %v3922_v11  ;;  %v3945_v23 = vmul.f32 100.0, %v3928_v13 }
  0xf9   : > { %3309 = vpow2.f32 %v832_v9  ;;  %v806_v21 = vmul.f32 1.442695, %v771_v19  ;;  %v3134_v24 = vpop.f32.mrb[6].mxu0  ;;  %vm738_vm7 = vcmp.gt.f32.partialorder %v3939_v20, 20.0  ;;  %v3949_v25 = vmul.f32 100.0, %v3933_v16  ;;  %v3158_v28 = vpop.f32.mrb[6].mxu1 }
  0xfa   : > { %6445 = vst [vmem:[#allocation10_spill] sm:$0xff] %v3945_v23  ;;  %v3952_v26 = vadd.f32 %v3155_v15, %v3870_v47  ;;  %v3955_v27 = vadd.f32 %v3870_v47, %v565_v17  ;;  %v575_v29 = vpop.f32.mrb[7].mxu0  ;;  %v770_v30 = vsel %vm738_vm7, 0.0, %v3939_v20  ;;  %vm6339_vm8 = vcmp.gt.f32.partialorder %v3945_v23, 20.0  ;;  %v655_v32 = vpop.f32.mrb[7].mxu1 }
  0xfb   : > { %3311 = vpow2.f32 %v806_v21  ;;  %v3962_v31 = vadd.f32 %v3870_v47, %v645_v18  ;;  %v838_v33 = vmul.f32 1.442695, %v787_v22  ;;  %v804_v34 = vmul.f32 1.442695, %v770_v30 }
  0xfc   : > { %6446 = vst [vmem:[#allocation11_spill] sm:$0xff] %v3952_v26  ;;  %v786_v35 = vsel %vm6339_vm8, 0.0, %v3945_v23  ;;  %vm741_vm9 = vcmp.gt.f32.partialorder %v3949_v25, 20.0  ;;  %v3972_v38 = vmul.f32 100.0, %v3952_v26  ;;  %v3975_v39 = vmul.f32 100.0, %v3955_v27 }
  0xfd   : > { %6447 = vst [vmem:[#allocation12_spill] sm:$0xff] %v3962_v31  ;;  %v836_v36 = vmul.f32 1.442695, %v786_v35  ;;  %v773_v37 = vsel %vm741_vm9, 0.0, %v3949_v25  ;;  %v3137_v40 = vpop.f32.mrb[8].mxu0  ;;  %3313 = vpow2.f32 %v804_v34  ;;  %v3978_v41 = vmul.f32 100.0, %v3962_v31 }
  0xfe   : > { %6448 = vst [vmem:[#allocation13_spill] sm:$0xff] %v3972_v38  ;;  %v3981_v42 = vadd.f32 %v3134_v24, %v3870_v47  ;;  %v3161_v43 = vpop.f32.mrb[8].mxu1  ;;  %v3983_v44 = vpop.f32.mrb[9].mxu0  ;;  %v810_v45 = vmul.f32 1.442695, %v773_v37  ;;  %vm6326_vm10 = vcmp.gt.f32.partialorder %v3972_v38, 20.0  ;;  %v3988_v46 = vadd.f32 %v3158_v28, %v3870_v47 }
  0xff   : > { %6449 = vst [vmem:[#allocation14_spill] sm:$0xff] %v3978_v41  ;;  %vm740_vm11 = vcmp.gt.f32.partialorder %v3975_v39, 20.0  ;;  %v3990_v48 = vpop.f32.mrb[9].mxu1  ;;  %3315 = vpow2.f32 %v838_v33  ;;  %v789_v52 = vsel %vm6326_vm10, 0.0, %v3972_v38  ;;  %vm6330_vm12 = vcmp.gt.f32.partialorder %v3978_v41, 20.0 }
 0x100   : > { %6450 = vst [vmem:[#allocation15_spill] sm:$0xff] %v3988_v46  ;;  %v3992_v49 = vpop.eup %3303  ;;  %v772_v53 = vsel %vm740_vm11, 0.0, %v3975_v39  ;;  %3317 = vpow2.f32 %v836_v36  ;;  %v842_v61 = vmul.f32 1.442695, %v789_v52  ;;  %v788_v0 = vsel %vm6330_vm12, 0.0, %v3978_v41 }
 0x101   : > { %v4001_v60 = vpop.eup %3305  ;;  %v4007_v1 = vmul.f32 100.0, %v3981_v42  ;;  %v808_v3 = vmul.f32 1.442695, %v772_v53  ;;  %v4012_v4 = vmul.f32 100.0, %v3988_v46  ;;  %v4015_v5 = vadd.f32 %v3870_v47, %v575_v29  ;;  %v4020_v7 = vpop.f32.mrb[10].mxu0 }
 0x102   : > { %v4009_v2 = vpop.eup %3307  ;;  %v4018_v6 = vadd.f32 %v3870_v47, %v655_v32  ;;  %v4022_v8 = vpop.f32.mrb[10].mxu1  ;;  %3319 = vpow2.f32 %v810_v45  ;;  %v840_v14 = vmul.f32 1.442695, %v788_v0  ;;  %v4028_v15 = vadd.f32 %v3137_v40, %v3870_v47 }
 0x103   : > { %6451 = vst [vmem:[#allocation16_spill] sm:$0xff] %v4012_v4  ;;  %v4024_v9 = vpop.eup %3309  ;;  %vm743_vm13 = vcmp.gt.f32.partialorder %v4007_v1, 20.0  ;;  %v4030_v17 = vpop.f32.mrb[11].mxu0  ;;  %3321 = vpow2.f32 %v842_v61  ;;  %vm6321_vm14 = vcmp.gt.f32.partialorder %v4012_v4, 20.0  ;;  %v4039_v21 = vmul.f32 100.0, %v4015_v5 }
 0x104   : > { %6452 = vst [vmem:[#allocation17_spill] sm:$0xff] %v4018_v6  ;;  %v4032_v18 = vpop.f32.mrb[11].mxu1  ;;  %v775_v19 = vsel %vm743_vm13, 0.0, %v4007_v1  ;;  %v791_v28 = vsel %vm6321_vm14, 0.0, %v4012_v4  ;;  %v4045_v29 = vmul.f32 100.0, %v4018_v6  ;;  %v4048_v30 = vadd.f32 %v3161_v43, %v3870_v47 }
 0x105   : > { %v3312_v22 = vpop.eup %3311  ;;  %v814_v24 = vmul.f32 1.442695, %v775_v19  ;;  %v4050_v32 = vpop.f32.mrb[12].mxu0  ;;  %3323 = vpow2.f32 %v808_v3  ;;  %v846_v36 = vmul.f32 1.442695, %v791_v28  ;;  %vm742_vm15 = vcmp.gt.f32.partialorder %v4039_v21, 20.0 }
 0x106   : > { %6453 = vst [vmem:[#allocation18_spill] sm:$0xff] %v4045_v29  ;;  %6454 = vst [vmem:[#allocation19_spill] sm:$0xff] %v4048_v30  ;;  %v4052_v33 = vpop.f32.mrb[12].mxu1  ;;  %v891_v34 = vadd.f32 1.0, %v3312_v22  ;;  %v894_v35 = vmul.f32 -0.5, %v3312_v22  ;;  %3325 = vpow2.f32 %v840_v14  ;;  %vm6329_vm0 = vcmp.gt.f32.partialorder %v4045_v29, 20.0 }
 0x107   : > { %v4057_v37 = vmul.f32 100.0, %v4028_v15  ;;  %v4059_v40 = vpop.f32.mrb[13].mxu0  ;;  %v4061_v43 = vpop.f32.mrb[13].mxu1  ;;  %v897_v53 = vand.u32 2147483647, %v3312_v22  ;;  %v774_v61 = vsel %vm742_vm15, 0.0, %v4039_v21  ;;  %v4099_v41 = vadd.f32 %v3870_v47, %v3983_v44 }
 0x108   : > { %v4063_v45 = vpop.eup %3313  ;;  %3327 = vlog2.f32 %v891_v34  ;;  %v895_v52 = vadd.f32 1.0, %v894_v35  ;;  %v812_v4 = vmul.f32 1.442695, %v774_v61  ;;  %v790_v34 = vsel %vm6329_vm0, 0.0, %v4045_v29 }
 0x109   : > { %v882_v0 = vadd.f32 1.0, %v4063_v45  ;;  %v885_v3 = vmul.f32 -0.5, %v4063_v45  ;;  %3329 = vpow2.f32 %v814_v24  ;;  %v4070_v14 = vpop.f32.mrb[14].mxu0  ;;  %v4072_v19 = vpop.f32.mrb[14].mxu1  ;;  %vm745_vm14 = vcmp.gt.f32.partialorder %v4057_v37, 20.0 }
 0x10a   : > { %v4074_v28 = vpop.eup %3315  ;;  %3331 = vpow2.f32 %v846_v36  ;;  %v4080_v35 = vpop.f32.mrb[15].mxu0  ;;  %v896_v24 = vmul.f32 %v3312_v22, %v895_v52  ;;  %v888_v38 = vand.u32 2147483647, %v4063_v45  ;;  %v844_v26 = vmul.f32 1.442695, %v790_v34 }
 0x10b   : > { %v4082_v46 = vpop.f32.mrb[15].mxu1  ;;  %v4084_v6 = vpop.eup %3317  ;;  %3333 = vlog2.f32 %v882_v0  ;;  %vm4087_vm10 = vcmp.lt.f32.partialorder %v897_v53, 0.0004427343  ;;  %v777_v61 = vsel %vm745_vm14, 0.0, %v4057_v37  ;;  %v4095_v29 = vmul.f32 100.0, %v4048_v30 }
 0x10c   : > { %3335 = vpow2.f32 %v812_v4  ;;  %v4101_v22 = vpop.eup %3319  ;;  %v886_v52 = vadd.f32 1.0, %v885_v3  ;;  %v818_v53 = vmul.f32 1.442695, %v777_v61  ;;  %v4105_v0 = vadd.f32 %v3870_v47, %v3990_v48 }
 0x10d   : > { %6457 = vst [vmem:[#allocation20_spill] sm:$0xff] %v4095_v29  ;;  %3337 = vpow2.f32 %v844_v26  ;;  %v4107_v4 = vpop.eup %3321  ;;  %vm6335_vm0 = vcmp.gt.f32.partialorder %v4095_v29, 20.0  ;;  %v4111_v34 = vmul.f32 100.0, %v4099_v41  ;;  %v4115_v44 = vadd.f32 %v4020_v7, %v3870_v47 }
 0x10e   : > { %6458 = vst [vmem:[#allocation21_spill] sm:$0xff] %v4105_v0  ;;  %6459 = vst [vmem:[#allocation22_spill] sm:$0xff] %v4107_v4  ;;  %v4119_v3 = vadd.f32 %v4022_v8, %v3870_v47  ;;  %vm4121_vm12 = vcmp.lt.f32.partialorder %v888_v38, 0.0004427343  ;;  %3339 = vpow2.f32 %v818_v53  ;;  %v793_v48 = vsel %vm6335_vm0, 0.0, %v4095_v29 }
 0x10f   : > { %v4129_v61 = vmul.f32 100.0, %v4105_v0  ;;  %v4133_v7 = vadd.f32 %v3870_v47, %v4030_v17  ;;  %v4135_v30 = vpop.eup %3323  ;;  %v850_v8 = vmul.f32 1.442695, %v793_v48  ;;  %vm744_vm6 = vcmp.gt.f32.partialorder %v4111_v34, 20.0 }
 0x110   : > { %6460 = vst [vmem:[#allocation23_spill] sm:$0xff] %v4119_v3  ;;  %v4139_v38 = vmul.f32 100.0, %v4115_v44  ;;  %v4142_v53 = vmul.f32 100.0, %v4119_v3  ;;  %v4144_v31 = vpop.eup %3325  ;;  %v776_v29 = vsel %vm744_vm6, 0.0, %v4111_v34  ;;  %v4155_v48 = vadd.f32 %v3870_v47, %v4032_v18 }
 0x111   : > { %6463 = vst [vmem:[#allocation24_spill] sm:$0xff] %v4129_v61  ;;  %6465 = vst [vmem:[#allocation26_spill] sm:$0xff] %v4144_v31  ;;  %vm6345_vm0 = vcmp.gt.f32.partialorder %v4129_v61, 20.0  ;;  %v4151_v17 = vmul.f32 100.0, %v4133_v7  ;;  %3341 = vpow2.f32 %v850_v8  ;;  %v816_v11 = vmul.f32 1.442695, %v776_v29 }
 0x112   : > { %6464 = vst [vmem:[#allocation25_spill] sm:$0xff] %v4142_v53  ;;  %6466 = vst [vmem:[#allocation27_spill] sm:$0xff] %v4155_v48  ;;  %v3328_v0 = vpop.eup %3327  ;;  %v792_v3 = vsel %vm6345_vm0, 0.0, %v4129_v61  ;;  %vm747_vm8 = vcmp.gt.f32.partialorder %v4139_v38, 20.0  ;;  %vm6354_vm2 = vcmp.gt.f32.partialorder %v4142_v53, 20.0  ;;  %v4184_v4 = vmul.f32 100.0, %v4155_v48 }
 0x113   : > { %v4161_v63 = vpop.eup %3329  ;;  %v893_v23 = vmul.f32 0.6931472, %v3328_v0  ;;  %v848_v13 = vmul.f32 1.442695, %v792_v3  ;;  %v779_v57 = vsel %vm747_vm8, 0.0, %v4139_v38  ;;  %3343 = vpow2.f32 %v816_v11 }
 0x114   : > { %v4167_v18 = vpop.eup %3331  ;;  %v822_v29 = vmul.f32 1.442695, %v779_v57  ;;  %v795_v8 = vsel %vm6354_vm2, 0.0, %v4142_v53  ;;  %vm746_vm0 = vcmp.gt.f32.partialorder %v4151_v17, 20.0  ;;  %6469 = vst [vmem:[#allocation30_spill] sm:$0xff] %v4184_v4  ;;  %v4226_v26 = vadd.f32 %v4070_v14, %v3870_v47 }
 0x115   : > { %6467 = vst [vmem:[#allocation28_spill] sm:$0xff] %v4167_v18  ;;  %v3334_v61 = vpop.eup %3333  ;;  %v899_v0 = vsel %vm4087_vm10, %v896_v24, %v893_v23  ;;  %3345 = vpow2.f32 %v848_v13  ;;  %v854_v3 = vmul.f32 1.442695, %v795_v8  ;;  %v778_v51 = vsel %vm746_vm0, 0.0, %v4151_v17 }
 0x116   : > { %v4178_v59 = vpop.eup %3335  ;;  %v1155_v11 = vmul.f32 0.01, %v899_v0  ;;  %v884_v57 = vmul.f32 0.6931472, %v3334_v61  ;;  %v887_v18 = vmul.f32 %v4063_v45, %v886_v52  ;;  %3347 = vpow2.f32 %v822_v29  ;;  %6475 = vst [vmem:[#allocation36_spill] sm:$0xff] %v4226_v26 }
 0x117   : > { %v4181_v53 = vpop.eup %3337  ;;  %v820_v55 = vmul.f32 1.442695, %v778_v51  ;;  %v4188_v13 = vadd.f32 %v4050_v32, %v3870_v47  ;;  %v4192_v23 = vadd.f32 %v4052_v33, %v3870_v47  ;;  %3349 = vpow2.f32 %v854_v3 }
 0x118   : > { %6468 = vst [vmem:[#allocation29_spill] sm:$0xff] %v4181_v53  ;;  %v4197_v24 = vsel %vm739_vm5, %v3899_v62, %v1155_v11  ;;  %v890_v45 = vsel %vm4121_vm12, %v887_v18, %v884_v57  ;;  %v4203_v51 = vadd.f32 %v3870_v47, %v4059_v40  ;;  %v4205_v36 = vpop.eup %3339  ;;  %vm6356_vm10 = vcmp.gt.f32.partialorder %v4184_v4, 20.0 }
 0x119   : > { %6470 = vst [vmem:[#allocation31_spill] sm:$0xff] %v4188_v13  ;;  %6471 = vst [vmem:[#allocation32_spill] sm:$0xff] %v4192_v23  ;;  %v1154_v32 = vmul.f32 0.01, %v890_v45  ;;  %v4209_v33 = vmul.f32 100.0, %v4188_v13  ;;  %v4212_v10 = vmul.f32 100.0, %v4192_v23  ;;  %v4222_v40 = vadd.f32 %v3870_v47, %v4061_v43 }
 0x11a   : > { %v794_v62 = vsel %vm6356_vm10, 0.0, %v4184_v4  ;;  %v4218_v52 = vmul.f32 100.0, %v4203_v51  ;;  %3351 = vpow2.f32 %v820_v55  ;;  %v4255_v11 = vmul.f32 100.0, %v4226_v26 }
 0x11b   : > { %6472 = vst [vmem:[#allocation33_spill] sm:$0xff] %v4209_v33  ;;  %6473 = vst [vmem:[#allocation34_spill] sm:$0xff] %v4212_v10  ;;  %v4231_v61 = vsel %vm738_vm7, %v3925_v12, %v1154_v32  ;;  %v852_v18 = vmul.f32 1.442695, %v794_v62  ;;  %vm6385_vm5 = vcmp.gt.f32.partialorder %v4209_v33, 20.0  ;;  %vm6353_vm12 = vcmp.gt.f32.partialorder %v4212_v10, 20.0  ;;  %v4235_v29 = vpop.eup %3341 }
 0x11c   : > { %6474 = vst [vmem:[#allocation35_spill] sm:$0xff] %v4222_v40  ;;  %6476 = vst [vmem:[#allocation37_spill] sm:$0xff] %v4235_v29  ;;  %v781_v14 = vsel %vm6385_vm5, 0.0, %v4209_v33  ;;  %v797_v20 = vsel %vm6353_vm12, 0.0, %v4212_v10  ;;  %vm6387_vm7 = vcmp.gt.f32.partialorder %v4218_v52, 20.0  ;;  %v4252_v3 = vmul.f32 100.0, %v4222_v40 }
 0x11d   : > { %v826_v12 = vmul.f32 1.442695, %v781_v14  ;;  %v780_v8 = vsel %vm6387_vm7, 0.0, %v4218_v52  ;;  %v4249_v0 = vpop.eup %3343  ;;  %3353 = vpow2.f32 %v852_v18  ;;  %6478 = vst [vmem:[#allocation39_spill] sm:$0xff] %v4255_v11  ;;  %v4259_v57 = vadd.f32 %v4072_v19, %v3870_v47  ;;  %v6534_v38 = vld [vmem:[#allocation36_spill] sm:$0xff] }
 0x11e   : > { %6477 = vst [vmem:[#allocation38_spill] sm:$0xff] %v4252_v3  ;;  %v858_v55 = vmul.f32 1.442695, %v797_v20  ;;  %v4265_v32 = vadd.f32 %v3870_v47, %v4080_v35  ;;  %v4269_v62 = vadd.f32 %v3870_v47, %v4082_v46  ;;  %v864_v18 = vadd.f32 1.0, %v4009_v2 }
 0x11f   : > { %6479 = vst [vmem:[#allocation40_spill] sm:$0xff] %v4259_v57  ;;  %v4261_v45 = vpop.eup %3345  ;;  %v824_v43 = vmul.f32 1.442695, %v780_v8  ;;  %vm6358_vm12 = vcmp.gt.f32.partialorder %v4252_v3, 20.0  ;;  %vm6372_vm2 = vcmp.gt.f32.partialorder %v4255_v11, 20.0  ;;  %v4277_v19 = vmul.f32 100.0, %v4259_v57 }
 0x120   : > { %6480 = vst [vmem:[#allocation41_spill] sm:$0xff] %v4261_v45  ;;  %6481 = vst [vmem:[#allocation42_spill] sm:$0xff] %v4265_v32  ;;  %v4272_v14 = vpop.eup %3347  ;;  %3355 = vpow2.f32 %v826_v12  ;;  %v796_v35 = vsel %vm6358_vm12, 0.0, %v4252_v3  ;;  %v783_v47 = vsel %vm6372_vm2, 0.0, %v4255_v11  ;;  %v4286_v46 = vmul.f32 100.0, %v4265_v32 }
 0x121   : > { %6482 = vst [vmem:[#allocation43_spill] sm:$0xff] %v4269_v62  ;;  %6483 = vst [vmem:[#allocation44_spill] sm:$0xff] %v4277_v19  ;;  %v4288_v20 = vpop.eup %3349  ;;  %v856_v8 = vmul.f32 1.442695, %v796_v35  ;;  %v830_v10 = vmul.f32 1.442695, %v783_v47  ;;  %3357 = vlog2.f32 %v864_v18 }
 0x122   : > { %6484 = vst [vmem:[#allocation45_spill] sm:$0xff] %v4286_v46  ;;  %6485 = vst [vmem:[#allocation46_spill] sm:$0xff] %v4288_v20  ;;  %vm6368_vm10 = vcmp.gt.f32.partialorder %v4277_v19, 20.0  ;;  %v4292_v57 = vmul.f32 100.0, %v4269_v62  ;;  %vm6381_vm12 = vcmp.gt.f32.partialorder %v4286_v46, 20.0  ;;  %v867_v23 = vmul.f32 -0.5, %v4009_v2 }
 0x123   : > { %v799_v12 = vsel %vm6368_vm10, 0.0, %v4277_v19  ;;  %3359 = vpow2.f32 %v858_v55  ;;  %v782_v35 = vsel %vm6381_vm12, 0.0, %v4286_v46  ;;  %v873_v47 = vadd.f32 1.0, %v3992_v49 }
 0x124   : > { %6486 = vst [vmem:[#allocation47_spill] sm:$0xff] %v4292_v57  ;;  %v862_v3 = vmul.f32 1.442695, %v799_v12  ;;  %3361 = vpow2.f32 %v824_v43  ;;  %vm6375_vm4 = vcmp.gt.f32.partialorder %v4292_v57, 20.0  ;;  %v4304_v62 = vpop.eup %3351  ;;  %v828_v19 = vmul.f32 1.442695, %v782_v35 }
 0x125   : > { %3363 = vpow2.f32 %v856_v8  ;;  %v868_v40 = vadd.f32 1.0, %v867_v23  ;;  %v876_v18 = vmul.f32 -0.5, %v3992_v49  ;;  %v870_v55 = vand.u32 2147483647, %v4009_v2 }
 0x126   : > { %3365 = vpow2.f32 %v830_v10  ;;  %v900_v12 = vadd.f32 1.0, %v4135_v30  ;;  %v903_v43 = vmul.f32 -0.5, %v4135_v30  ;;  %v879_v48 = vand.u32 2147483647, %v3992_v49 }
 0x127   : > { %v4307_v4 = vpop.eup %3353  ;;  %3367 = vpow2.f32 %v862_v3  ;;  %v877_v8 = vadd.f32 1.0, %v876_v18  ;;  %v906_v10 = vand.u32 2147483647, %v4135_v30  ;;  %v909_v23 = vadd.f32 1.0, %v4101_v22 }
 0x128   : > { %6487 = vst [vmem:[#allocation48_spill] sm:$0xff] %v4307_v4  ;;  %3369 = vlog2.f32 %v873_v47  ;;  %v912_v35 = vmul.f32 -0.5, %v4101_v22  ;;  %v4321_v3 = vsel %vm6375_vm4, 0.0, %v4292_v57  ;;  %v869_v47 = vmul.f32 %v4009_v2, %v868_v40 }
 0x129   : > { %3371 = vlog2.f32 %v900_v12  ;;  %v918_v18 = vadd.f32 1.0, %v4178_v59  ;;  %vm4325_vm10 = vcmp.lt.f32.partialorder %v870_v55, 0.0004427343  ;;  %v904_v4 = vadd.f32 1.0, %v903_v43 }
 0x12a   : > { %v4316_v20 = vpop.eup %3355  ;;  %3373 = vpow2.f32 %v828_v19  ;;  %v921_v29 = vmul.f32 -0.5, %v4178_v59  ;;  %v878_v19 = vmul.f32 %v3992_v49, %v877_v8  ;;  %vm4331_vm2 = vcmp.lt.f32.partialorder %v879_v48, 0.0004427343 }
 0x12b   : > { %3375 = vlog2.f32 %v909_v23  ;;  %v3358_v45 = vpop.eup %3357  ;;  %v915_v57 = vand.u32 2147483647, %v4101_v22  ;;  %v927_v2 = vadd.f32 1.0, %v4161_v63  ;;  %vm4339_vm4 = vcmp.lt.f32.partialorder %v906_v10, 0.0004427343 }
 0x12c   : > { %3377 = vlog2.f32 %v918_v18  ;;  %v866_v55 = vmul.f32 0.6931472, %v3358_v45  ;;  %v913_v23 = vadd.f32 1.0, %v912_v35  ;;  %v930_v26 = vmul.f32 -0.5, %v4161_v63 }
 0x12d   : > { %v4337_v40 = vpop.eup %3359  ;;  %v922_v48 = vadd.f32 1.0, %v921_v29  ;;  %v924_v8 = vand.u32 2147483647, %v4178_v59  ;;  %3379 = vlog2.f32 %v927_v2  ;;  %v936_v18 = vadd.f32 1.0, %v4249_v0 }
 0x12e   : > { %6492 = vst [vmem:[#allocation49_spill] sm:$0xff] %v4337_v40  ;;  %v4344_v49 = vpop.eup %3361  ;;  %v872_v45 = vsel %vm4325_vm10, %v869_v47, %v866_v55  ;;  %v931_v10 = vadd.f32 1.0, %v930_v26  ;;  %v933_v40 = vand.u32 2147483647, %v4161_v63  ;;  %v939_v35 = vmul.f32 -0.5, %v4249_v0 }
 0x12f   : > { %v4348_v53 = vpop.eup %3363  ;;  %v1152_v32 = vmul.f32 0.01, %v872_v45  ;;  %v905_v29 = vmul.f32 %v4135_v30, %v904_v4  ;;  %vm4357_vm12 = vcmp.lt.f32.partialorder %v915_v57, 0.0004427343  ;;  %3381 = vlog2.f32 %v936_v18 }
 0x130   : > { %6495 = vst [vmem:[#allocation50_spill] sm:$0xff] %v4348_v53  ;;  %v4354_v46 = vpop.eup %3365  ;;  %v914_v12 = vmul.f32 %v4101_v22, %v913_v23  ;;  %v940_v47 = vadd.f32 1.0, %v939_v35  ;;  %v942_v26 = vand.u32 2147483647, %v4249_v0  ;;  %v945_v55 = vadd.f32 1.0, %v4205_v36 }
 0x131   : > { %v4361_v2 = vpop.eup %3367  ;;  %v923_v13 = vmul.f32 %v4178_v59, %v922_v48  ;;  %vm4367_vm10 = vcmp.lt.f32.partialorder %v924_v8, 0.0004427343  ;;  %v948_v30 = vmul.f32 -0.5, %v4205_v36  ;;  %v954_v4 = vadd.f32 1.0, %v4304_v62 }
 0x132   : > { %6498 = vst [vmem:[#allocation51_spill] sm:$0xff] %v4361_v2  ;;  %v3370_v53 = vpop.eup %3369  ;;  %v932_v22 = vmul.f32 %v4161_v63, %v931_v10  ;;  %vm4374_vm5 = vcmp.lt.f32.partialorder %v933_v40, 0.0004427343  ;;  %3383 = vlog2.f32 %v945_v55  ;;  %v1184_v59 = vsel %vm736_vm3, %v3879_v54, %v1152_v32 }
 0x133   : > { %v3372_v57 = vpop.eup %3371  ;;  %v875_v18 = vmul.f32 0.6931472, %v3370_v53  ;;  %v951_v8 = vand.u32 2147483647, %v4205_v36  ;;  %3385 = vlog2.f32 %v954_v4  ;;  %v941_v63 = vmul.f32 %v4249_v0, %v940_v47 }
 0x134   : > { %v4378_v35 = vpop.eup %3373  ;;  %v902_v48 = vmul.f32 0.6931472, %v3372_v57  ;;  %vm4387_vm7 = vcmp.lt.f32.partialorder %v942_v26, 0.0004427343  ;;  %v963_v10 = vadd.f32 1.0, %v4272_v14  ;;  %v949_v32 = vadd.f32 1.0, %v948_v30 }
 0x135   : > { %v3376_v2 = vpop.eup %3375  ;;  %v881_v53 = vsel %vm4331_vm2, %v878_v19, %v875_v18  ;;  %v957_v11 = vmul.f32 -0.5, %v4304_v62  ;;  %vm4400_vm2 = vcmp.lt.f32.partialorder %v951_v8, 0.0004427343  ;;  %v960_v43 = vand.u32 2147483647, %v4304_v62 }
 0x136   : > { %v3378_v55 = vpop.eup %3377  ;;  %v1153_v31 = vmul.f32 0.01, %v881_v53  ;;  %v908_v54 = vsel %vm4339_vm4, %v905_v29, %v902_v48  ;;  %v911_v58 = vmul.f32 0.6931472, %v3376_v2  ;;  %3387 = vlog2.f32 %v963_v10 }
 0x137   : > { %v1156_v4 = vmul.f32 0.01, %v908_v54  ;;  %v920_v57 = vmul.f32 0.6931472, %v3378_v55  ;;  %v3380_v19 = vpop.eup %3379  ;;  %v966_v33 = vmul.f32 -0.5, %v4272_v14  ;;  %v950_v8 = vmul.f32 %v4205_v36, %v949_v32 }
 0x138   : > { %v1185_v0 = vsel %vm737_vm1, %v3873_v50, %v1153_v31  ;;  %v917_v47 = vsel %vm4357_vm12, %v914_v12, %v911_v58  ;;  %v929_v50 = vmul.f32 0.6931472, %v3380_v19  ;;  %v972_v12 = vadd.f32 1.0, %v4344_v49 }
 0x139   : > { %v1216_v29 = vpack.c.bf16 %v1185_v0, %v1184_v59  ;;  %v1157_v2 = vmul.f32 0.01, %v917_v47  ;;  %v1188_v30 = vsel %vm740_vm11, %v3955_v27, %v1156_v4  ;;  %v926_v18 = vsel %vm4367_vm10, %v923_v13, %v920_v57  ;;  %v3382_v56 = vpop.eup %3381 }
 0x13a   : > { %v1158_v31 = vmul.f32 0.01, %v926_v18  ;;  %v938_v48 = vmul.f32 0.6931472, %v3382_v56  ;;  %v958_v39 = vadd.f32 1.0, %v957_v11  ;;  %v6507_v27 = vpack.c.bf16 %v4197_v24, %v4231_v61 }
 0x13b   : > { %3187 = vmatprep.mubr.bf16.mxu1 %v1216_v29  ;;  %v1189_v59 = vsel %vm741_vm9, %v3933_v16, %v1157_v2  ;;  %v935_v45 = vsel %vm4374_vm5, %v932_v22, %v929_v50  ;;  %vm4421_vm1 = vcmp.lt.f32.partialorder %v960_v43, 0.0004427343  ;;  %v975_v10 = vmul.f32 -0.5, %v4344_v49 }
 0x13c   : > { %3188 = vmatmul.mubr.bf16.vlgmr.msra.gmra.mrb[16].mxu1 %v6507_v27  ;;  %v1218_v13 = vpack.c.bf16 %v1189_v59, %v1188_v30  ;;  %v3384_v25 = vpop.eup %3383  ;;  %v1159_v16 = vmul.f32 0.01, %v935_v45  ;;  %v1190_v36 = vsel %vm742_vm15, %v4015_v5, %v1158_v31  ;;  %v944_v24 = vsel %vm4387_vm7, %v941_v63, %v938_v48 }
 0x13d   : > { %3389 = vlog2.f32 %v972_v12  ;;  %v3386_v61 = vpop.eup %3385  ;;  %v947_v23 = vmul.f32 0.6931472, %v3384_v25  ;;  %v1160_v22 = vmul.f32 0.01, %v944_v24  ;;  %v967_v55 = vadd.f32 1.0, %v966_v33 }
 0x13e   : > { %3191 = vmatprep.mubr.bf16.mxu1 %v1218_v13  ;;  %v981_v54 = vadd.f32 1.0, %v4316_v20  ;;  %v1191_v58 = vsel %vm743_vm13, %v3981_v42, %v1159_v16  ;;  %v956_v32 = vmul.f32 0.6931472, %v3386_v61  ;;  %v959_v4 = vmul.f32 %v4304_v62, %v958_v39 }
 0x13f   : > { %v969_v5 = vand.u32 2147483647, %v4272_v14  ;;  %v1219_v21 = vpack.c.bf16 %v1191_v58, %v1190_v36  ;;  %v953_v63 = vsel %vm4400_vm2, %v950_v8, %v947_v23  ;;  %v976_v40 = vadd.f32 1.0, %v975_v10 }
 0x140   : > { %v984_v57 = vmul.f32 -0.5, %v4316_v20  ;;  %v3388_v11 = vpop.eup %3387  ;;  %v1161_v19 = vmul.f32 0.01, %v953_v63  ;;  %v1192_v0 = vsel %vm744_vm6, %v4099_v41, %v1160_v22  ;;  %v962_v42 = vsel %vm4421_vm1, %v959_v4, %v956_v32 }
 0x141   : > { %3391 = vlog2.f32 %v981_v54  ;;  %v965_v1 = vmul.f32 0.6931472, %v3388_v11  ;;  %v968_v62 = vmul.f32 %v4272_v14, %v967_v55  ;;  %v1162_v47 = vmul.f32 0.01, %v962_v42 }
 0x142   : > { %v990_v26 = vadd.f32 1.0, %v4378_v35  ;;  %v4448_v43 = vmul.f32 1.442695, %v4321_v3  ;;  %v1193_v29 = vsel %vm745_vm14, %v4028_v15, %v1161_v19  ;;  %vm970_vm3 = vcmp.lt.f32.partialorder %v969_v5, 0.0004427343  ;;  %v6518_v19 = vld [vmem:[#allocation31_spill] sm:$0xff] }
 0x143   : > { %v993_v41 = vmul.f32 -0.5, %v4378_v35  ;;  %v1220_v34 = vpack.c.bf16 %v1193_v29, %v1192_v0  ;;  %v971_v2 = vsel %vm970_vm3, %v968_v62, %v965_v1  ;;  %v977_v30 = vmul.f32 %v4344_v49, %v976_v40  ;;  %v6519_v0 = vld [vmem:[#allocation33_spill] sm:$0xff] }
 0x144   : > { %3192 = vmatmul.mubr.bf16.gmra.mrb[20].mxu1 %v1219_v21  ;;  %v978_v14 = vand.u32 2147483647, %v4344_v49  ;;  %v1163_v18 = vmul.f32 0.01, %v971_v2  ;;  %v1194_v3 = vsel %vm746_vm0, %v4133_v7, %v1162_v47  ;;  %v985_v56 = vadd.f32 1.0, %v984_v57  ;;  %v6517_v57 = vld [vmem:[#allocation26_spill] sm:$0xff] }
 0x145   : > { %3393 = vlog2.f32 %v990_v26  ;;  %3195 = vmatprep.mubr.bf16.mxu1 %v1220_v34  ;;  %v987_v15 = vand.u32 2147483647, %v4316_v20  ;;  %v996_v37 = vand.u32 2147483647, %v4378_v35  ;;  %v999_v50 = vadd.f32 1.0, %v4354_v46 }
 0x146   : > { %v1002_v31 = vmul.f32 -0.5, %v4354_v46  ;;  %v1195_v49 = vsel %vm747_vm8, %v4115_v44, %v1163_v18  ;;  %v994_v12 = vadd.f32 1.0, %v993_v41  ;;  %v1008_v17 = vadd.f32 1.0, %v4024_v9 }
 0x147   : > { %v3390_v33 = vpop.eup %3389  ;;  %v1011_v7 = vmul.f32 -0.5, %v4024_v9  ;;  %v1221_v59 = vpack.c.bf16 %v1195_v49, %v1194_v3  ;;  %3395 = vlog2.f32 %v999_v50  ;;  %v1005_v8 = vand.u32 2147483647, %v4354_v46 }
 0x148   : > { %v974_v48 = vmul.f32 0.6931472, %v3390_v33  ;;  %vm979_vm4 = vcmp.lt.f32.partialorder %v978_v14, 0.0004427343  ;;  %v1003_v39 = vadd.f32 1.0, %v1002_v31  ;;  %3397 = vlog2.f32 %v1008_v17  ;;  %v6530_v17 = vld [vmem:[#allocation42_spill] sm:$0xff] }
 0x149   : > { %v1012_v27 = vadd.f32 1.0, %v1011_v7  ;;  %v986_v45 = vmul.f32 %v4316_v20, %v985_v56  ;;  %vm4470_vm6 = vcmp.lt.f32.partialorder %v987_v15, 0.0004427343  ;;  %v1017_v44 = vadd.f32 1.0, %v4001_v60  ;;  %v6525_v15 = vld [vmem:[#allocation22_spill] sm:$0xff]  ;;  %v6531_v7 = vld [vmem:[#allocation45_spill] sm:$0xff] }
 0x14a   : > { %v980_v13 = vsel %vm979_vm4, %v977_v30, %v974_v48  ;;  %v995_v25 = vmul.f32 %v4378_v35, %v994_v12  ;;  %vm4476_vm8 = vcmp.lt.f32.partialorder %v996_v37, 0.0004427343  ;;  %v1020_v36 = vmul.f32 -0.5, %v4001_v60 }
 0x14b   : > { %v3392_v53 = vpop.eup %3391  ;;  %v1164_v10 = vmul.f32 0.01, %v980_v13  ;;  %vm4481_vm9 = vcmp.lt.f32.partialorder %v1005_v8, 0.0004427343  ;;  %3399 = vlog2.f32 %v1017_v44  ;;  %v1026_v61 = vadd.f32 1.0, %v4084_v6  ;;  %v6535_v44 = vld [vmem:[#allocation39_spill] sm:$0xff] }
 0x14c   : > { %3196 = vmatmul.mubr.bf16.gmra.mrb[24].mxu1 %v1221_v59  ;;  %v983_v24 = vmul.f32 0.6931472, %v3392_v53  ;;  %v1004_v23 = vmul.f32 %v4354_v46, %v1003_v39  ;;  %v1013_v22 = vmul.f32 %v4024_v9, %v1012_v27  ;;  %v1014_v35 = vand.u32 2147483647, %v4024_v9  ;;  %v6533_v27 = vld [vmem:[#allocation29_spill] sm:$0xff] }
 0x14d   : > { %v1029_v55 = vmul.f32 -0.5, %v4084_v6  ;;  %v1023_v58 = vand.u32 2147483647, %v4001_v60  ;;  %3401 = vlog2.f32 %v1026_v61  ;;  %v1035_v32 = vadd.f32 1.0, %v4074_v28 }
 0x14e   : > { %v989_v54 = vsel %vm4470_vm6, %v986_v45, %v983_v24  ;;  %vm6516_vm11 = vcmp.gt.f32.partialorder %v4218_v52, 20.0  ;;  %v1021_v21 = vadd.f32 1.0, %v1020_v36  ;;  %v1032_v63 = vand.u32 2147483647, %v4084_v6 }
 0x14f   : > { %v3394_v4 = vpop.eup %3393  ;;  %v1165_v5 = vmul.f32 0.01, %v989_v54  ;;  %v1196_v46 = vsel %vm6516_vm11, %v4203_v51, %v1164_v10  ;;  %3403 = vlog2.f32 %v1035_v32  ;;  %v1038_v40 = vmul.f32 -0.5, %v4074_v28 }
 0x150   : > { %v992_v9 = vmul.f32 0.6931472, %v3394_v4  ;;  %v1044_v11 = vadd.f32 1.0, %v6517_v57  ;;  %vm6520_vm13 = vcmp.gt.f32.partialorder %v6519_v0, 20.0  ;;  %v1030_v1 = vadd.f32 1.0, %v1029_v55  ;;  %v6538_v55 = vld [vmem:[#allocation6_spill] sm:$0xff] }
 0x151   : > { %v1197_v42 = vsel %vm6520_vm13, %v6518_v19, %v1165_v5  ;;  %v1041_v62 = vand.u32 2147483647, %v4074_v28  ;;  %v1047_v47 = vmul.f32 -0.5, %v6517_v57  ;;  %v3396_v52 = vpop.eup %3395  ;;  %vm4507_vm14 = vcmp.lt.f32.partialorder %v1014_v35, 0.0004427343  ;;  %v6537_v35 = vld [vmem:[#allocation4_spill] sm:$0xff] }
 0x152   : > { %v1222_v51 = vpack.c.bf16 %v1197_v42, %v1196_v46  ;;  %v998_v26 = vsel %vm4476_vm8, %v995_v25, %v992_v9  ;;  %3405 = vlog2.f32 %v1044_v11  ;;  %v3398_v41 = vpop.eup %3397  ;;  %v1001_v34 = vmul.f32 0.6931472, %v3396_v52  ;;  %v6540_v5 = vld [vmem:[#allocation28_spill] sm:$0xff]  ;;  %v6542_v9 = vld [vmem:[#allocation5_spill] sm:$0xff]  ;;  %v6547_v52 = vld [vmem:[#allocation10_spill] sm:$0xff] }
 0x153   : > { %v1166_v2 = vmul.f32 0.01, %v998_v26  ;;  %v1022_v30 = vmul.f32 %v4001_v60, %v1021_v21  ;;  %vm4512_vm15 = vcmp.lt.f32.partialorder %v1023_v58, 0.0004427343  ;;  %v1010_v18 = vmul.f32 0.6931472, %v3398_v41 }
 0x154   : > { %3199 = vmatprep.mubr.bf16.mxu1 %v1222_v51  ;;  %v1039_v3 = vadd.f32 1.0, %v1038_v40  ;;  %v1048_v56 = vadd.f32 1.0, %v1047_v47  ;;  %v1053_v37 = vadd.f32 1.0, %v6525_v15  ;;  %v1007_v50 = vsel %vm4481_vm9, %v1004_v23, %v1001_v34  ;;  %v6546_v47 = vld [vmem:[#allocation9_spill] sm:$0xff] }
 0x155   : > { %v1031_v31 = vmul.f32 %v4084_v6, %v1030_v1  ;;  %vm4520_vm0 = vcmp.lt.f32.partialorder %v1032_v63, 0.0004427343  ;;  %vm4524_vm5 = vcmp.lt.f32.partialorder %v1041_v62, 0.0004427343  ;;  %v3400_v49 = vpop.eup %3399  ;;  %v1167_v12 = vmul.f32 0.01, %v1007_v50 }
 0x156   : > { %vm6532_vm12 = vcmp.gt.f32.partialorder %v6531_v7, 20.0  ;;  %v1016_v48 = vsel %vm4507_vm14, %v1013_v22, %v1010_v18  ;;  %3407 = vlog2.f32 %v1053_v37  ;;  %v1019_v8 = vmul.f32 0.6931472, %v3400_v49  ;;  %v6541_v63 = vld [vmem:[#allocation3_spill] sm:$0xff] }
 0x157   : > { %v1198_v59 = vsel %vm6532_vm12, %v6530_v17, %v1166_v2  ;;  %v1168_v6 = vmul.f32 0.01, %v1016_v48  ;;  %v1056_v39 = vmul.f32 -0.5, %v6525_v15  ;;  %v1062_v13 = vadd.f32 1.0, %v6533_v27  ;;  %v3402_v45 = vpop.eup %3401  ;;  %v6549_v2 = vld [vmem:[#allocation41_spill] sm:$0xff]  ;;  %v6550_v18 = vld [vmem:[#allocation7_spill] sm:$0xff] }
 0x158   : > { %vm6536_vm7 = vcmp.gt.f32.partialorder %v6535_v44, 20.0  ;;  %v1040_v10 = vmul.f32 %v4074_v28, %v1039_v3  ;;  %v1049_v25 = vmul.f32 %v6517_v57, %v1048_v56  ;;  %v1050_v16 = vand.u32 2147483647, %v6517_v57  ;;  %v6551_v3 = vld [vmem:[#allocation8_spill] sm:$0xff] }
 0x159   : > { %v1199_v53 = vsel %vm6536_vm7, %v6534_v38, %v1167_v12  ;;  %v1025_v24 = vsel %vm4512_vm15, %v1022_v30, %v1019_v8  ;;  %v1028_v20 = vmul.f32 0.6931472, %v3402_v45  ;;  %v1059_v61 = vand.u32 2147483647, %v6525_v15  ;;  %v3404_v23 = vpop.eup %3403  ;;  %v6557_v12 = vld [vmem:[#allocation37_spill] sm:$0xff]  ;;  %v6559_v45 = vld [vmem:[#allocation12_spill] sm:$0xff] }
 0x15a   : > { %v1223_v36 = vpack.c.bf16 %v1199_v53, %v1198_v59  ;;  %v1169_v22 = vmul.f32 0.01, %v1025_v24  ;;  %vm6539_vm10 = vcmp.gt.f32.partialorder %v6538_v55, 20.0  ;;  %3409 = vlog2.f32 %v1062_v13  ;;  %v6560_v38 = vld [vmem:[#allocation14_spill] sm:$0xff]  ;;  %v6563_v24 = vld [vmem:[#allocation13_spill] sm:$0xff] }
 0x15b   : > { %v1200_v54 = vsel %vm6539_vm10, %v6537_v35, %v1168_v6  ;;  %v1065_v28 = vmul.f32 -0.5, %v6533_v27  ;;  %v1034_v58 = vsel %vm4520_vm0, %v1031_v31, %v1028_v20  ;;  %v1037_v32 = vmul.f32 0.6931472, %v3404_v23  ;;  %v6558_v6 = vld [vmem:[#allocation48_spill] sm:$0xff] }
 0x15c   : > { %3200 = vmatmul.mubr.bf16.gmra.mrb[28].mxu1 %v1223_v36  ;;  %v1057_v4 = vadd.f32 1.0, %v1056_v39  ;;  %v1071_v46 = vadd.f32 1.0, %v6540_v5  ;;  %v3406_v21 = vpop.eup %3405  ;;  %vm6543_vm2 = vcmp.gt.f32.partialorder %v6542_v9, 20.0  ;;  %v1170_v57 = vmul.f32 0.01, %v1034_v58  ;;  %v6562_v36 = vld [vmem:[#allocation11_spill] sm:$0xff] }
 0x15d   : > { %v1201_v40 = vsel %vm6543_vm2, %v6541_v63, %v1169_v22  ;;  %vm4554_vm1 = vcmp.lt.f32.partialorder %v1050_v16, 0.0004427343  ;;  %v1074_v19 = vmul.f32 -0.5, %v6540_v5  ;;  %v1043_v42 = vsel %vm4524_vm5, %v1040_v10, %v1037_v32  ;;  %v6565_v22 = vld [vmem:[#allocation46_spill] sm:$0xff] }
 0x15e   : > { %v1224_v0 = vpack.c.bf16 %v1201_v40, %v1200_v54  ;;  %v1046_v1 = vmul.f32 0.6931472, %v3406_v21  ;;  %3411 = vlog2.f32 %v1071_v46  ;;  %v1171_v62 = vmul.f32 0.01, %v1043_v42  ;;  %v6593_v40 = vld [vmem:[#allocation27_spill] sm:$0xff] }
 0x15f   : > { %vm6548_vm3 = vcmp.gt.f32.partialorder %v6547_v52, 20.0  ;;  %v1066_v26 = vadd.f32 1.0, %v1065_v28  ;;  %v1068_v29 = vand.u32 2147483647, %v6533_v27  ;;  %3413 = vpow2.f32 %v4448_v43 }
 0x160   : > { %v1202_v51 = vsel %vm6548_vm3, %v6546_v47, %v1170_v57  ;;  %3203 = vmatprep.mubr.bf16.mxu1 %v1224_v0  ;;  %v1052_v41 = vsel %vm4554_vm1, %v1049_v25, %v1046_v1  ;;  %v1058_v34 = vmul.f32 %v6525_v15, %v1057_v4  ;;  %v1080_v30 = vadd.f32 1.0, %v6549_v2  ;;  %v3408_v14 = vpop.eup %3407  ;;  %v6572_v57 = vld [vmem:[#allocation50_spill] sm:$0xff]  ;;  %v6573_v1 = vld [vmem:[#allocation49_spill] sm:$0xff] }
 0x161   : > { %vm6552_vm4 = vcmp.gt.f32.partialorder %v6551_v3, 20.0  ;;  %vm4573_vm6 = vcmp.lt.f32.partialorder %v1059_v61, 0.0004427343  ;;  %v1172_v50 = vmul.f32 0.01, %v1052_v41  ;;  %v1075_v31 = vadd.f32 1.0, %v1074_v19 }
 0x162   : > { %v1203_v56 = vsel %vm6552_vm4, %v6550_v18, %v1171_v62  ;;  %v1055_v33 = vmul.f32 0.6931472, %v3408_v14  ;;  %3415 = vlog2.f32 %v1080_v30  ;;  %v1083_v60 = vmul.f32 -0.5, %v6549_v2  ;;  %v6579_v14 = vld [vmem:[#allocation15_spill] sm:$0xff]  ;;  %v6580_v18 = vld [vmem:[#allocation16_spill] sm:$0xff] }
 0x163   : > { %v1225_v43 = vpack.c.bf16 %v1203_v56, %v1202_v51  ;;  %v1067_v15 = vmul.f32 %v6533_v27, %v1066_v26  ;;  %vm4579_vm8 = vcmp.lt.f32.partialorder %v1068_v29, 0.0004427343  ;;  %v1089_v17 = vadd.f32 1.0, %v6557_v12  ;;  %v6574_v51 = vld [vmem:[#allocation17_spill] sm:$0xff]  ;;  %v6575_v26 = vld [vmem:[#allocation18_spill] sm:$0xff] }
 0x164   : > { %v1092_v7 = vmul.f32 -0.5, %v6557_v12  ;;  %v1061_v59 = vsel %vm4573_vm6, %v1058_v34, %v1055_v33  ;;  %v1077_v48 = vand.u32 2147483647, %v6540_v5  ;;  %v1086_v8 = vand.u32 2147483647, %v6549_v2  ;;  %v3410_v13 = vpop.eup %3409 }
 0x165   : > { %3204 = vmatmul.mubr.bf16.gmra.mrb[32].mxu1 %v1225_v43  ;;  %v1098_v39 = vadd.f32 1.0, %v6558_v6  ;;  %v1173_v27 = vmul.f32 0.01, %v1061_v59  ;;  %vm6561_vm9 = vcmp.gt.f32.partialorder %v6560_v38, 20.0  ;;  %v1076_v53 = vmul.f32 %v6540_v5, %v1075_v31 }
 0x166   : > { %v1204_v44 = vsel %vm6561_vm9, %v6559_v45, %v1172_v50  ;;  %3417 = vlog2.f32 %v1089_v17  ;;  %v1064_v10 = vmul.f32 0.6931472, %v3410_v13  ;;  %v1084_v25 = vadd.f32 1.0, %v1083_v60 }
 0x167   : > { %v1095_v16 = vand.u32 2147483647, %v6557_v12  ;;  %3419 = vlog2.f32 %v1098_v39  ;;  %vm6564_vm11 = vcmp.gt.f32.partialorder %v6563_v24, 20.0  ;;  %v1093_v61 = vadd.f32 1.0, %v1092_v7  ;;  %v6582_v39 = vld [vmem:[#allocation51_spill] sm:$0xff] }
 0x168   : > { %v1205_v20 = vsel %vm6564_vm11, %v6562_v36, %v1173_v27  ;;  %v1101_v23 = vmul.f32 -0.5, %v6558_v6  ;;  %v1107_v35 = vadd.f32 1.0, %v6565_v22  ;;  %v3412_v55 = vpop.eup %3411  ;;  %v1070_v28 = vsel %vm4579_vm8, %v1067_v15, %v1064_v10  ;;  %v6585_v10 = vld [vmem:[#allocation21_spill] sm:$0xff] }
 0x169   : > { %v1226_v54 = vpack.c.bf16 %v1205_v20, %v1204_v44  ;;  %vm4602_vm13 = vcmp.lt.f32.partialorder %v1077_v48, 0.0004427343  ;;  %v1110_v32 = vmul.f32 -0.5, %v6565_v22  ;;  %v1073_v4 = vmul.f32 0.6931472, %v3412_v55  ;;  %v4608_v21 = vpop.eup %3413 }
 0x16a   : > { %v1174_v5 = vmul.f32 0.01, %v1070_v28  ;;  %v1104_v46 = vand.u32 2147483647, %v6558_v6  ;;  %3421 = vlog2.f32 %v1107_v35  ;;  %v1085_v63 = vmul.f32 %v6549_v2, %v1084_v25  ;;  %v6586_v25 = vld [vmem:[#allocation24_spill] sm:$0xff] }
 0x16b   : > { %3207 = vmatprep.mubr.bf16.mxu1 %v1226_v54  ;;  %vm4611_vm14 = vcmp.lt.f32.partialorder %v1086_v8, 0.0004427343  ;;  %vm4615_vm15 = vcmp.lt.f32.partialorder %v1095_v16, 0.0004427343  ;;  %v1116_v11 = vadd.f32 1.0, %v6572_v57  ;;  %v1079_v19 = vsel %vm4602_vm13, %v1076_v53, %v1073_v4 }
 0x16c   : > { %v1094_v0 = vmul.f32 %v6557_v12, %v1093_v61  ;;  %v1102_v42 = vadd.f32 1.0, %v1101_v23  ;;  %v1125_v62 = vadd.f32 1.0, %v6573_v1  ;;  %v3416_v47 = vpop.eup %3415  ;;  %v1175_v52 = vmul.f32 0.01, %v1079_v19  ;;  %v6590_v23 = vld [vmem:[#allocation19_spill] sm:$0xff] }
 0x16d   : > { %vm6576_vm0 = vcmp.gt.f32.partialorder %v6575_v26, 20.0  ;;  %v1111_v41 = vadd.f32 1.0, %v1110_v32  ;;  %3423 = vlog2.f32 %v1116_v11  ;;  %v1082_v34 = vmul.f32 0.6931472, %v3416_v47  ;;  %v6594_v11 = vld [vmem:[#allocation30_spill] sm:$0xff]  ;;  %v6597_v47 = vld [vmem:[#allocation25_spill] sm:$0xff] }
 0x16e   : > { %v1206_v29 = vsel %vm6576_vm0, %v6574_v51, %v1174_v5  ;;  %vm4627_vm5 = vcmp.lt.f32.partialorder %v1104_v46, 0.0004427343  ;;  %v1119_v30 = vmul.f32 -0.5, %v6572_v57  ;;  %3425 = vlog2.f32 %v1125_v62  ;;  %v6596_v62 = vld [vmem:[#allocation23_spill] sm:$0xff] }
 0x16f   : > { %vm6581_vm12 = vcmp.gt.f32.partialorder %v6580_v18, 20.0  ;;  %v1113_v56 = vand.u32 2147483647, %v6565_v22  ;;  %v1128_v37 = vmul.f32 -0.5, %v6573_v1  ;;  %v1134_v50 = vadd.f32 1.0, %v4608_v21  ;;  %v6599_v18 = vld [vmem:[#allocation35_spill] sm:$0xff] }
 0x170   : > { %v1207_v3 = vsel %vm6581_vm12, %v6579_v14, %v1175_v52  ;;  %v3418_v31 = vpop.eup %3417  ;;  %v1088_v33 = vsel %vm4611_vm14, %v1085_v63, %v1082_v34  ;;  %v1103_v60 = vmul.f32 %v6558_v6, %v1102_v42  ;;  %v1122_v15 = vand.u32 2147483647, %v6572_v57  ;;  %v3295_v6 = vld [vmem:[%s6315_s5] sm:$0xff]  }
 0x171   : > { %v1227_v43 = vpack.c.bf16 %v1207_v3, %v1206_v29  ;;  %v3420_v49 = vpop.eup %3419  ;;  %v1091_v12 = vmul.f32 0.6931472, %v3418_v31  ;;  %v1176_v17 = vmul.f32 0.01, %v1088_v33  ;;  %v1112_v7 = vmul.f32 %v6565_v22, %v1111_v41  ;;  %v6591_v22 = vld [vmem:[#allocation20_spill] sm:$0xff]  ;;  %v6600_v3 = vld [vmem:[#allocation38_spill] sm:$0xff]  ;;  %3219 = vmatprep.subr.bf16.mxu0 %v3295_v6 }
 0x172   : > { %3427 = vlog2.f32 %v1134_v50  ;;  %v1100_v59 = vmul.f32 0.6931472, %v3420_v49  ;;  %v1120_v48 = vadd.f32 1.0, %v1119_v30  ;;  %v1137_v8 = vmul.f32 -0.5, %v4608_v21  ;;  %v6602_v31 = vld [vmem:[#allocation32_spill] sm:$0xff]  ;;  %3220 = vmatpush3.bf16.msra.mxu0 %v3295_v6 }
 0x173   : > { %3208 = vmatmul.mubr.bf16.gmra.mrb[36].mxu1 %v1227_v43  ;;  %v1143_v13 = vadd.f32 1.0, %v6582_v39  ;;  %v1097_v27 = vsel %vm4615_vm15, %v1094_v0, %v1091_v12  ;;  %vm4647_vm7 = vcmp.lt.f32.partialorder %v1113_v56, 0.0004427343  ;;  %v1129_v45 = vadd.f32 1.0, %v1128_v37  ;;  %v6603_v43 = vld [vmem:[#allocation34_spill] sm:$0xff] }
 0x174   : > { %v1131_v38 = vand.u32 2147483647, %v6573_v1  ;;  %v3422_v44 = vpop.eup %3421  ;;  %v1177_v53 = vmul.f32 0.01, %v1097_v27  ;;  %vm6587_vm10 = vcmp.gt.f32.partialorder %v6586_v25, 20.0  ;;  %v1106_v36 = vsel %vm4627_vm5, %v1103_v60, %v1100_v59  ;;  %v6606_v59 = vld [vmem:[#allocation47_spill] sm:$0xff] }
 0x175   : > { %v1208_v16 = vsel %vm6587_vm10, %v6585_v10, %v1176_v17  ;;  %3429 = vlog2.f32 %v1143_v13  ;;  %v1109_v24 = vmul.f32 0.6931472, %v3422_v44  ;;  %v1178_v20 = vmul.f32 0.01, %v1106_v36  ;;  %v6609_v13 = vld [vmem:[#allocation44_spill] sm:$0xff]  ;;  %v3298_v44 = vld [vmem:[%s6315_s5 + $0x18] sm:$0xff]  }
 0x176   : > { %vm4657_vm2 = vcmp.lt.f32.partialorder %v1122_v15, 0.0004427343  ;;  %vm6592_vm1 = vcmp.gt.f32.partialorder %v6591_v22, 20.0  ;;  %v1121_v55 = vmul.f32 %v6572_v57, %v1120_v48  ;;  %v1138_v54 = vadd.f32 1.0, %v1137_v8  ;;  %v6608_v8 = vld [vmem:[#allocation40_spill] sm:$0xff] }
 0x177   : > { %v1209_v35 = vsel %vm6592_vm1, %v6590_v23, %v1177_v53  ;;  %v1146_v28 = vmul.f32 -0.5, %v6582_v39  ;;  %v3424_v58 = vpop.eup %3423  ;;  %v1115_v4 = vsel %vm4647_vm7, %v1112_v7, %v1109_v24  ;;  %v1130_v5 = vmul.f32 %v6573_v1, %v1129_v45  ;;  %v6605_v7 = vld [vmem:[#allocation43_spill] sm:$0xff]  ;;  %v3301_v25 = vld [vmem:[%s6315_s5 + $0x30] sm:$0xff]   ;;  %v4720_v36 = vld [vmem:[%s6314_s4] ss:$0 sm:$0xff] }
 0x178   : > { %v1228_v32 = vpack.c.bf16 %v1209_v35, %v1208_v16  ;;  %v1140_v46 = vand.u32 2147483647, %v4608_v21  ;;  %v3426_v63 = vpop.eup %3425  ;;  %v1179_v9 = vmul.f32 0.01, %v1115_v4  ;;  %vm6595_vm3 = vcmp.gt.f32.partialorder %v6594_v11, 20.0  ;;  %v3296_v45 = vld [vmem:[%s6315_s5 + $0x8] sm:$0xff]  }
 0x179   : > { %v1210_v19 = vsel %vm6595_vm3, %v6593_v40, %v1178_v20  ;;  %v1118_v0 = vmul.f32 0.6931472, %v3424_v58  ;;  %vm1132_vm4 = vcmp.lt.f32.partialorder %v1131_v38, 0.0004427343  ;;  %v1127_v57 = vmul.f32 0.6931472, %v3426_v63  ;;  %3221 = vmatprep.subr.bf16.mxu0 %v3296_v45 }
 0x17a   : > { %3211 = vmatprep.mubr.bf16.mxu1 %v1228_v32  ;;  %v1147_v42 = vadd.f32 1.0, %v1146_v28  ;;  %vm6598_vm6 = vcmp.gt.f32.partialorder %v6597_v47, 20.0  ;;  %v1139_v51 = vmul.f32 %v4608_v21, %v1138_v54  ;;  %v1149_v26 = vand.u32 2147483647, %v6582_v39  ;;  %v3297_v38 = vld [vmem:[%s6315_s5 + $0x10] sm:$0xff]   ;;  %3222 = vmatpush3.bf16.msra.mxu0 %v3296_v45  ;;  %v3299_v53 = vld [vmem:[%s6315_s5 + $0x20] sm:$0xff]  }
 0x17b   : > { %v1211_v52 = vsel %vm6598_vm6, %v6596_v62, %v1179_v9  ;;  %v1124_v1 = vsel %vm4657_vm2, %v1121_v55, %v1118_v0  ;;  %v1133_v34 = vsel %vm1132_vm4, %v1130_v5, %v1127_v57  ;;  %vm1141_vm8 = vcmp.lt.f32.partialorder %v1140_v46, 0.0004427343  ;;  %3223 = vmatprep.subr.bf16.mxu0 %v3297_v38  ;;  %v3300_v10 = vld [vmem:[%s6315_s5 + $0x28] sm:$0xff]   ;;  %v3302_v16 = vld [vmem:[%s6315_s5 + $0x38] sm:$0xff]  }
 0x17c   : > { %v3428_v29 = vpop.eup %3427  ;;  %v1229_v41 = vpack.c.bf16 %v1211_v52, %v1210_v19  ;;  %v1180_v2 = vmul.f32 0.01, %v1124_v1  ;;  %v1181_v30 = vmul.f32 0.01, %v1133_v34  ;;  %vm6601_vm9 = vcmp.gt.f32.partialorder %v6600_v3, 20.0 }
 0x17d   : > { %v1136_v14 = vmul.f32 0.6931472, %v3428_v29  ;;  %v1148_v37 = vmul.f32 %v6582_v39, %v1147_v42  ;;  %vm6604_vm11 = vcmp.gt.f32.partialorder %v6603_v43, 20.0  ;;  %vm1150_vm13 = vcmp.lt.f32.partialorder %v1149_v26, 0.0004427343 }
 0x17e   : > { %3212 = vmatmul.mubr.bf16.gmra.mrb[40].mxu1 %v1229_v41  ;;  %v1212_v56 = vsel %vm6601_vm9, %v6599_v18, %v1180_v2  ;;  %v1213_v21 = vsel %vm6604_vm11, %v6602_v31, %v1181_v30  ;;  %vm6607_vm14 = vcmp.gt.f32.partialorder %v6606_v59, 20.0  ;;  %vm6610_vm15 = vcmp.gt.f32.partialorder %v6609_v13, 20.0  ;;  %3224 = vmatpush3.bf16.msra.mxu0 %v3297_v38 }
 0x17f   : > { %v3430_v50 = vpop.eup %3429  ;;  %v1142_v33 = vsel %vm1141_vm8, %v1139_v51, %v1136_v14  ;;  %v1230_v60 = vpack.c.bf16 %v1213_v21, %v1212_v56  ;;  %3225 = vmatprep.subr.bf16.mxu0 %v3298_v44 }
 0x180   : > { %v1145_v15 = vmul.f32 0.6931472, %v3430_v50  ;;  %v1182_v49 = vmul.f32 0.01, %v1142_v33 }
 0x181   : > { %3215 = vmatprep.mubr.bf16.mxu1 %v1230_v60 }
 0x182   : > { %v1151_v12 = vsel %vm1150_vm13, %v1148_v37, %v1145_v15  ;;  %v1214_v48 = vsel %vm6607_vm14, %v6605_v7, %v1182_v49  ;;  %3226 = vmatpush3.bf16.msra.mxu0 %v3298_v44 }
 0x183   : > { %v1183_v17 = vmul.f32 0.01, %v1151_v12  ;;  %3227 = vmatprep.subr.bf16.mxu0 %v3299_v53 }
 0x185   : > { %v1215_v39 = vsel %vm6610_vm15, %v6608_v8, %v1183_v17 }
 0x186   : > { %v1231_v27 = vpack.c.bf16 %v1215_v39, %v1214_v48  ;;  %3228 = vmatpush3.bf16.msra.mxu0 %v3299_v53 }
 0x187   : > { %3229 = vmatprep.subr.bf16.mxu0 %v3300_v10 }
 0x188   : > { %3216 = vmatmul.mubr.bf16.gmra.mrb[44].mxu1 %v1231_v27 }
 0x18a   : > { %3230 = vmatpush3.bf16.msra.mxu0 %v3300_v10 }
 0x18b   : > { %3231 = vmatprep.subr.bf16.mxu0 %v3301_v25 }
 0x18e   : > { %3232 = vmatpush3.bf16.msra.mxu0 %v3301_v25 }
 0x18f   : > { %3233 = vmatprep.subr.bf16.mxu0 %v3302_v16 }
 0x192   : > { %3234 = vmatpush3.bf16.msra.mxu0 %v3302_v16 }
 0x20f   : > { %v3189_v24 = vpop.f32.mrb[16].mxu1 }
 0x210   : > { %v4723_v20 = vadd.f32 %v3189_v24, %v4720_v36  ;;  %v1337_v61 = vpop.f32.mrb[17].mxu1 }
 0x211   : > { %v4726_v23 = vadd.f32 %v4720_v36, %v1337_v61  ;;  %v3190_v22 = vpop.f32.mrb[18].mxu1 }
 0x212   : > { %v4729_v35 = vmul.f32 100.0, %v4723_v20  ;;  %v4732_v55 = vadd.f32 %v3190_v22, %v4720_v36  ;;  %v1340_v54 = vpop.f32.mrb[19].mxu1 }
 0x213   : > { %v4735_v28 = vmul.f32 100.0, %v4726_v23  ;;  %v4738_v58 = vadd.f32 %v4720_v36, %v1340_v54 }
 0x214   : > { %vm1498_vm0 = vcmp.gt.f32.partialorder %v4729_v35, 20.0  ;;  %v4742_v32 = vmul.f32 100.0, %v4732_v55 }
 0x215   : > { %v1530_v4 = vsel %vm1498_vm0, 0.0, %v4729_v35  ;;  %vm1496_vm5 = vcmp.gt.f32.partialorder %v4735_v28, 20.0  ;;  %v4749_v5 = vmul.f32 100.0, %v4738_v58 }
 0x216   : > { %v1564_v46 = vmul.f32 1.442695, %v1530_v4  ;;  %v1528_v63 = vsel %vm1496_vm5, 0.0, %v4735_v28  ;;  %vm1499_vm12 = vcmp.gt.f32.partialorder %v4742_v32, 20.0 }
 0x217   : > { %v1560_v9 = vmul.f32 1.442695, %v1528_v63  ;;  %v1531_v40 = vsel %vm1499_vm12, 0.0, %v4742_v32  ;;  %vm1497_vm7 = vcmp.gt.f32.partialorder %v4749_v5, 20.0  ;;  %v3193_v11 = vpop.f32.mrb[20].mxu1 }
 0x218   : > { %3431 = vpow2.f32 %v1564_v46  ;;  %v1566_v19 = vmul.f32 1.442695, %v1531_v40  ;;  %v1529_v0 = vsel %vm1497_vm7, 0.0, %v4749_v5  ;;  %v4763_v57 = vadd.f32 %v3193_v11, %v4720_v36  ;;  %v1353_v42 = vpop.f32.mrb[21].mxu1 }
 0x219   : > { %v4766_v62 = vadd.f32 %v4720_v36, %v1353_v42  ;;  %v3194_v47 = vpop.f32.mrb[22].mxu1  ;;  %v1562_v52 = vmul.f32 1.442695, %v1529_v0 }
 0x21a   : > { %3433 = vpow2.f32 %v1566_v19  ;;  %v4769_v1 = vmul.f32 100.0, %v4763_v57  ;;  %v4772_v51 = vadd.f32 %v3194_v47, %v4720_v36  ;;  %v1356_v26 = vpop.f32.mrb[23].mxu1 }
 0x21b   : > { %v4775_v29 = vmul.f32 100.0, %v4766_v62  ;;  %v4778_v41 = vadd.f32 %v4720_v36, %v1356_v26  ;;  %3435 = vpow2.f32 %v1560_v9 }
 0x21c   : > { %vm1502_vm10 = vcmp.gt.f32.partialorder %v4769_v1, 20.0  ;;  %v4782_v34 = vmul.f32 100.0, %v4772_v51  ;;  %3437 = vpow2.f32 %v1562_v52 }
 0x21d   : > { %v1534_v2 = vsel %vm1502_vm10, 0.0, %v4769_v1  ;;  %vm1500_vm2 = vcmp.gt.f32.partialorder %v4775_v29, 20.0  ;;  %v4789_v30 = vmul.f32 100.0, %v4778_v41 }
 0x21e   : > { %v1532_v14 = vsel %vm1500_vm2, 0.0, %v4775_v29  ;;  %vm1503_vm1 = vcmp.gt.f32.partialorder %v4782_v34, 20.0  ;;  %v1572_v18 = vmul.f32 1.442695, %v1534_v2 }
 0x21f   : > { %v1568_v3 = vmul.f32 1.442695, %v1532_v14  ;;  %v3197_v56 = vpop.f32.mrb[24].mxu1  ;;  %v1535_v37 = vsel %vm1503_vm1, 0.0, %v4782_v34  ;;  %vm1501_vm3 = vcmp.gt.f32.partialorder %v4789_v30, 20.0 }
 0x220   : > { %v4800_v50 = vadd.f32 %v3197_v56, %v4720_v36  ;;  %v1369_v31 = vpop.f32.mrb[25].mxu1  ;;  %v1574_v17 = vmul.f32 1.442695, %v1535_v37  ;;  %v1533_v7 = vsel %vm1501_vm3, 0.0, %v4789_v30 }
 0x221   : > { %3439 = vpow2.f32 %v1568_v3  ;;  %v4803_v43 = vadd.f32 %v4720_v36, %v1369_v31  ;;  %v3198_v21 = vpop.f32.mrb[26].mxu1  ;;  %v1570_v38 = vmul.f32 1.442695, %v1533_v7 }
 0x222   : > { %v3432_v33 = vpop.eup %3431  ;;  %v4806_v60 = vmul.f32 100.0, %v4800_v50  ;;  %v4809_v15 = vadd.f32 %v3198_v21, %v4720_v36  ;;  %v1372_v49 = vpop.f32.mrb[27].mxu1  ;;  %3441 = vpow2.f32 %v1572_v18 }
 0x223   : > { %v1642_v12 = vadd.f32 1.0, %v3432_v33  ;;  %v1645_v48 = vmul.f32 -0.5, %v3432_v33  ;;  %v4816_v8 = vmul.f32 100.0, %v4803_v43  ;;  %v4822_v27 = vadd.f32 %v4720_v36, %v1372_v49 }
 0x224   : > { %v3434_v59 = vpop.eup %3433  ;;  %vm1506_vm4 = vcmp.gt.f32.partialorder %v4806_v60, 20.0  ;;  %v4819_v13 = vmul.f32 100.0, %v4809_v15  ;;  %v1648_v24 = vand.u32 2147483647, %v3432_v33 }
 0x225   : > { %3443 = vlog2.f32 %v1642_v12  ;;  %v1651_v39 = vadd.f32 1.0, %v3434_v59  ;;  %v4824_v6 = vpop.eup %3435  ;;  %v1654_v45 = vmul.f32 -0.5, %v3434_v59  ;;  %v1538_v44 = vsel %vm1506_vm4, 0.0, %v4806_v60 }
 0x226   : > { %vm1504_vm6 = vcmp.gt.f32.partialorder %v4816_v8, 20.0  ;;  %v1580_v53 = vmul.f32 1.442695, %v1538_v44  ;;  %v4833_v25 = vpop.eup %3437  ;;  %v1646_v16 = vadd.f32 1.0, %v1645_v48  ;;  %vm6389_vm8 = vcmp.gt.f32.partialorder %v4819_v13, 20.0 }
 0x227   : > { %3445 = vlog2.f32 %v1651_v39  ;;  %v1536_v10 = vsel %vm1504_vm6, 0.0, %v4816_v8  ;;  %v1657_v61 = vand.u32 2147483647, %v3434_v59  ;;  %v1539_v22 = vsel %vm6389_vm8, 0.0, %v4819_v13 }
 0x228   : > { %3447 = vpow2.f32 %v1574_v17  ;;  %v4840_v54 = vmul.f32 100.0, %v4822_v27  ;;  %v1624_v4 = vadd.f32 1.0, %v4824_v6  ;;  %v1655_v46 = vadd.f32 1.0, %v1654_v45 }
 0x229   : > { %3449 = vpow2.f32 %v1570_v38  ;;  %v1576_v63 = vmul.f32 1.442695, %v1536_v10  ;;  %v1627_v9 = vmul.f32 -0.5, %v4824_v6  ;;  %v1582_v11 = vmul.f32 1.442695, %v1539_v22 }
 0x22a   : > { %3451 = vpow2.f32 %v1580_v53  ;;  %vm1505_vm9 = vcmp.gt.f32.partialorder %v4840_v54, 20.0  ;;  %v1633_v19 = vadd.f32 1.0, %v4833_v25  ;;  %vm4848_vm11 = vcmp.lt.f32.partialorder %v1648_v24, 0.0004427343 }
 0x22b   : > { %v4844_v40 = vpop.eup %3439  ;;  %v1537_v42 = vsel %vm1505_vm9, 0.0, %v4840_v54  ;;  %3453 = vlog2.f32 %v1624_v4  ;;  %v1628_v47 = vadd.f32 1.0, %v1627_v9  ;;  %v1647_v26 = vmul.f32 %v3432_v33, %v1646_v16 }
 0x22c   : > { %v4855_v52 = vpop.eup %3441  ;;  %vm4857_vm13 = vcmp.lt.f32.partialorder %v1657_v61, 0.0004427343  ;;  %3455 = vlog2.f32 %v1633_v19  ;;  %v1636_v14 = vmul.f32 -0.5, %v4833_v25  ;;  %v1656_v18 = vmul.f32 %v3434_v59, %v1655_v46 }
 0x22d   : > { %3457 = vpow2.f32 %v1576_v63  ;;  %v1630_v56 = vand.u32 2147483647, %v4824_v6  ;;  %v1660_v37 = vadd.f32 1.0, %v4844_v40  ;;  %v1578_v21 = vmul.f32 1.442695, %v1537_v42 }
 0x22e   : > { %3459 = vpow2.f32 %v1582_v11  ;;  %v1639_v12 = vand.u32 2147483647, %v4833_v25  ;;  %v4872_v48 = vmul.f32 %v4824_v6, %v1628_v47  ;;  %v1637_v53 = vadd.f32 1.0, %v1636_v14 }
 0x22f   : > { %v3201_v3 = vpop.f32.mrb[28].mxu1  ;;  %v3444_v31 = vpop.eup %3443  ;;  %3461 = vlog2.f32 %v1660_v37  ;;  %v1663_v10 = vmul.f32 -0.5, %v4844_v40  ;;  %vm4895_vm15 = vcmp.lt.f32.partialorder %v1630_v56, 0.0004427343 }
 0x230   : > { %v4865_v49 = vadd.f32 %v3201_v3, %v4720_v36  ;;  %v1385_v33 = vpop.f32.mrb[29].mxu1  ;;  %v1644_v17 = vmul.f32 0.6931472, %v3444_v31  ;;  %vm4899_vm8 = vcmp.lt.f32.partialorder %v1639_v12, 0.0004427343  ;;  %3463 = vpow2.f32 %v1578_v21 }
 0x231   : > { %v4869_v7 = vadd.f32 %v4720_v36, %v1385_v33  ;;  %v3202_v59 = vpop.f32.mrb[30].mxu1  ;;  %v3446_v39 = vpop.eup %3445  ;;  %v1638_v31 = vmul.f32 %v4833_v25, %v1637_v53 }
 0x232   : > { %v4875_v45 = vmul.f32 100.0, %v4865_v49  ;;  %v4878_v38 = vadd.f32 %v3202_v59, %v4720_v36  ;;  %v1388_v44 = vpop.f32.mrb[31].mxu1  ;;  %v4881_v16 = vpop.eup %3447  ;;  %v1650_v24 = vsel %vm4848_vm11, %v1647_v26, %v1644_v17  ;;  %v1653_v61 = vmul.f32 0.6931472, %v3446_v39 }
 0x233   : > { %v4886_v6 = vmul.f32 100.0, %v4869_v7  ;;  %v4889_v22 = vadd.f32 %v4720_v36, %v1388_v44  ;;  %v1914_v4 = vmul.f32 0.01, %v1650_v24  ;;  %v4904_v19 = vpop.eup %3449  ;;  %v1664_v39 = vadd.f32 1.0, %v1663_v10 }
 0x234   : > { %vm6390_vm14 = vcmp.gt.f32.partialorder %v4875_v45, 20.0  ;;  %v4893_v46 = vmul.f32 100.0, %v4878_v38  ;;  %v1659_v0 = vsel %vm4857_vm13, %v1656_v18, %v1653_v61  ;;  %v4915_v26 = vpop.eup %3451  ;;  %v1675_v5 = vand.u32 2147483647, %v4904_v19 }
 0x235   : > { %v1542_v42 = vsel %vm6390_vm14, 0.0, %v4875_v45  ;;  %vm1508_vm11 = vcmp.gt.f32.partialorder %v4886_v6, 20.0  ;;  %v4913_v47 = vmul.f32 100.0, %v4889_v22  ;;  %v1915_v14 = vmul.f32 0.01, %v1659_v0  ;;  %v3454_v2 = vpop.eup %3453 }
 0x236   : > { %v1588_v3 = vmul.f32 1.442695, %v1542_v42  ;;  %v1540_v56 = vsel %vm1508_vm11, 0.0, %v4886_v6  ;;  %vm6391_vm13 = vcmp.gt.f32.partialorder %v4893_v46, 20.0  ;;  %v3456_v33 = vpop.eup %3455  ;;  %v4926_v12 = vsel %vm1498_vm0, %v4723_v20, %v1914_v4 }
 0x237   : > { %v1584_v18 = vmul.f32 1.442695, %v1540_v56  ;;  %vm1509_vm14 = vcmp.gt.f32.partialorder %v4913_v47, 20.0  ;;  %v4931_v21 = vsel %vm1499_vm12, %v4732_v55, %v1915_v14  ;;  %v1543_v17 = vsel %vm6391_vm13, 0.0, %v4893_v46  ;;  %v4936_v44 = vpop.eup %3457 }
 0x238   : > { %v3205_v37 = vpop.f32.mrb[32].mxu1  ;;  %3465 = vpow2.f32 %v1588_v3  ;;  %v1541_v20 = vsel %vm1509_vm14, 0.0, %v4913_v47  ;;  %v1669_v55 = vadd.f32 1.0, %v4904_v19  ;;  %v4944_v32 = vpop.eup %3459  ;;  %v1626_v4 = vmul.f32 0.6931472, %v3454_v2 }
 0x239   : > { %v1401_v59 = vpop.f32.mrb[33].mxu1  ;;  %v4947_v53 = vadd.f32 %v3205_v37, %v4720_v36  ;;  %v3462_v0 = vpop.eup %3461  ;;  %3467 = vpow2.f32 %v1584_v18  ;;  %v1590_v42 = vmul.f32 1.442695, %v1543_v17  ;;  %v1635_v3 = vmul.f32 0.6931472, %v3456_v33 }
 0x23a   : > { %v3206_v35 = vpop.f32.mrb[34].mxu1  ;;  %v4950_v10 = vadd.f32 %v4720_v36, %v1401_v59  ;;  %v1586_v56 = vmul.f32 1.442695, %v1541_v20  ;;  %v1632_v2 = vsel %vm4895_vm15, %v4872_v48, %v1626_v4  ;;  %v1662_v33 = vmul.f32 0.6931472, %v3462_v0  ;;  %v4988_v9 = vpop.eup %3463 }
 0x23b   : > { %v4953_v24 = vadd.f32 %v3206_v35, %v4720_v36  ;;  %v1404_v61 = vpop.f32.mrb[35].mxu1  ;;  %v4959_v25 = vmul.f32 100.0, %v4947_v53  ;;  %v1641_v18 = vsel %vm4899_vm8, %v1638_v31, %v1635_v3  ;;  %v1912_v17 = vmul.f32 0.01, %v1632_v2 }
 0x23c   : > { %v4956_v14 = vadd.f32 %v4720_v36, %v1404_v61  ;;  %v4962_v37 = vmul.f32 100.0, %v4950_v10  ;;  %3469 = vpow2.f32 %v1590_v42  ;;  %v1665_v61 = vmul.f32 %v4844_v40, %v1664_v39 }
 0x23d   : > { %6619 = vst [vmem:[#allocation26_spill] sm:$0xff] %v4953_v24  ;;  %v4965_v59 = vmul.f32 100.0, %v4953_v24  ;;  %vm1514_vm0 = vcmp.gt.f32.partialorder %v4959_v25, 20.0  ;;  %v1672_v4 = vmul.f32 -0.5, %v4904_v19  ;;  %v1913_v2 = vmul.f32 0.01, %v1641_v18 }
 0x23e   : > { %v4968_v35 = vmul.f32 100.0, %v4956_v14  ;;  %vm1512_vm12 = vcmp.gt.f32.partialorder %v4962_v37, 20.0  ;;  %v1546_v20 = vsel %vm1514_vm0, 0.0, %v4959_v25  ;;  %3471 = vlog2.f32 %v1669_v55 }
 0x23f   : > { %6620 = vst [vmem:[#allocation31_spill] sm:$0xff] %v4965_v59  ;;  %vm6395_vm13 = vcmp.gt.f32.partialorder %v4965_v59, 20.0  ;;  %v1544_v63 = vsel %vm1512_vm12, 0.0, %v4962_v37  ;;  %v1596_v31 = vmul.f32 1.442695, %v1546_v20  ;;  %3473 = vpow2.f32 %v1586_v56 }
 0x240   : > { %v1547_v48 = vsel %vm6395_vm13, 0.0, %v4965_v59  ;;  %vm1513_vm8 = vcmp.gt.f32.partialorder %v4968_v35, 20.0  ;;  %v1592_v0 = vmul.f32 1.442695, %v1544_v63  ;;  %v6621_v59 = vand.u32 2147483647, %v4844_v40 }
 0x241   : > { %v1545_v3 = vsel %vm1513_vm8, 0.0, %v4968_v35  ;;  %v1598_v11 = vmul.f32 1.442695, %v1547_v48  ;;  %v1944_v39 = vsel %vm1496_vm5, %v4726_v23, %v1912_v17  ;;  %v1945_v20 = vsel %vm1497_vm7, %v4738_v58, %v1913_v2 }
 0x242   : > { %vm4997_vm15 = vcmp.lt.f32.partialorder %v6621_v59, 0.0004427343  ;;  %v5001_v42 = vpop.eup %3465  ;;  %v1678_v56 = vadd.f32 1.0, %v4855_v52  ;;  %3475 = vpow2.f32 %v1596_v31  ;;  %v1594_v40 = vmul.f32 1.442695, %v1545_v3 }
 0x243   : > { %v1668_v55 = vsel %vm4997_vm15, %v1665_v61, %v1662_v33  ;;  %v1976_v18 = vpack.c.bf16 %v1945_v20, %v1944_v39  ;;  %v1673_v63 = vadd.f32 1.0, %v1672_v4  ;;  %v5012_v48 = vpop.eup %3467  ;;  %3477 = vpow2.f32 %v1592_v0 }
 0x244   : > { %v1681_v58 = vmul.f32 -0.5, %v4855_v52  ;;  %v1916_v17 = vmul.f32 0.01, %v1668_v55  ;;  %3479 = vlog2.f32 %v1678_v56  ;;  %v1687_v31 = vadd.f32 1.0, %v4881_v16 }
 0x245   : > { %3235 = vmatprep.mubr.bf16.mxu0 %v1976_v18  ;;  %3481 = vpow2.f32 %v1598_v11  ;;  %v6628_v3 = vpack.c.bf16 %v4931_v21, %v4926_v12  ;;  %v1690_v2 = vmul.f32 -0.5, %v4881_v16  ;;  %v1674_v11 = vmul.f32 %v4904_v19, %v1673_v63 }
 0x246   : > { %v3209_v59 = vpop.f32.mrb[36].mxu1  ;;  %3483 = vlog2.f32 %v1687_v31  ;;  %v1682_v56 = vadd.f32 1.0, %v1681_v58  ;;  %v1684_v12 = vand.u32 2147483647, %v4855_v52  ;;  %v5045_v21 = vpop.eup %3469  ;;  %vm1676_vm13 = vcmp.lt.f32.partialorder %v1675_v5, 0.0004427343 }
 0x247   : > { %v5015_v28 = vadd.f32 %v3209_v59, %v4720_v36  ;;  %v1417_v23 = vpop.f32.mrb[37].mxu1  ;;  %3236 = vmatmul.mubr.bf16.vlgmr.msra.gmra.mrb[16].mxu0 %v6628_v3  ;;  %v1691_v19 = vadd.f32 1.0, %v1690_v2  ;;  %3485 = vpow2.f32 %v1594_v40 }
 0x248   : > { %v5020_v24 = vadd.f32 %v4720_v36, %v1417_v23  ;;  %v3210_v33 = vpop.f32.mrb[38].mxu1  ;;  %v3472_v63 = vpop.eup %3471 }
 0x249   : > { %6624 = vst [vmem:[#allocation33_spill] sm:$0xff] %v5015_v28  ;;  %v5024_v61 = vmul.f32 100.0, %v5015_v28  ;;  %v5027_v4 = vadd.f32 %v3210_v33, %v4720_v36  ;;  %v1420_v0 = vpop.f32.mrb[39].mxu1  ;;  %v1693_v33 = vand.u32 2147483647, %v4881_v16  ;;  %v5059_v31 = vpop.eup %3473  ;;  %v1683_v28 = vmul.f32 %v4855_v52, %v1682_v56 }
 0x24a   : > { %6625 = vst [vmem:[#allocation22_spill] sm:$0xff] %v5020_v24  ;;  %v5034_v39 = vmul.f32 100.0, %v5020_v24  ;;  %v5037_v20 = vadd.f32 %v4720_v36, %v1420_v0  ;;  %v1671_v2 = vmul.f32 0.6931472, %v3472_v63  ;;  %v1699_v56 = vmul.f32 -0.5, %v4936_v44 }
 0x24b   : > { %6626 = vst [vmem:[#allocation42_spill] sm:$0xff] %v5024_v61  ;;  %6627 = vst [vmem:[#allocation45_spill] sm:$0xff] %v5027_v4  ;;  %vm6394_vm5 = vcmp.gt.f32.partialorder %v5024_v61, 20.0  ;;  %v5042_v55 = vmul.f32 100.0, %v5027_v4 }
 0x24c   : > { %6629 = vst [vmem:[#allocation29_spill] sm:$0xff] %v5034_v39  ;;  %6630 = vst [vmem:[#allocation36_spill] sm:$0xff] %v5037_v20  ;;  %v1550_v59 = vsel %vm6394_vm5, 0.0, %v5024_v61  ;;  %vm6396_vm7 = vcmp.gt.f32.partialorder %v5034_v39, 20.0  ;;  %v5052_v18 = vmul.f32 100.0, %v5037_v20  ;;  %v5072_v61 = vpop.eup %3475  ;;  %v1696_v20 = vadd.f32 1.0, %v4936_v44 }
 0x24d   : > { %6631 = vst [vmem:[#allocation39_spill] sm:$0xff] %v5042_v55  ;;  %v1604_v23 = vmul.f32 1.442695, %v1550_v59  ;;  %v1548_v58 = vsel %vm6396_vm7, 0.0, %v5034_v39  ;;  %vm1519_vm15 = vcmp.gt.f32.partialorder %v5042_v55, 20.0  ;;  %v1948_v59 = vsel %vm1500_vm2, %v4766_v62, %v1916_v17  ;;  %v5077_v63 = vpop.eup %3477 }
 0x24e   : > { %6632 = vst [vmem:[#allocation4_spill] sm:$0xff] %v5052_v18  ;;  %v1600_v0 = vmul.f32 1.442695, %v1548_v58  ;;  %v1551_v3 = vsel %vm1519_vm15, 0.0, %v5042_v55  ;;  %vm1517_vm5 = vcmp.gt.f32.partialorder %v5052_v18, 20.0  ;;  %v1677_v58 = vsel %vm1676_vm13, %v1674_v11, %v1671_v2  ;;  %v3480_v17 = vpop.eup %3479 }
 0x24f   : > { %vm5068_vm7 = vcmp.lt.f32.partialorder %v1684_v12, 0.0004427343  ;;  %v1692_v55 = vmul.f32 %v4881_v16, %v1691_v19  ;;  %3487 = vpow2.f32 %v1604_v23  ;;  %v1606_v40 = vmul.f32 1.442695, %v1551_v3  ;;  %v5090_v12 = vpop.eup %3481 }
 0x250   : > { %v1549_v62 = vsel %vm1517_vm5, 0.0, %v5052_v18  ;;  %v1917_v5 = vmul.f32 0.01, %v1677_v58  ;;  %3489 = vpow2.f32 %v1600_v0  ;;  %vm5085_vm2 = vcmp.lt.f32.partialorder %v1693_v33, 0.0004427343  ;;  %v3484_v2 = vpop.eup %3483 }
 0x251   : > { %v3213_v29 = vpop.f32.mrb[40].mxu1  ;;  %v1680_v3 = vmul.f32 0.6931472, %v3480_v17  ;;  %3491 = vlog2.f32 %v1696_v20  ;;  %v1602_v58 = vmul.f32 1.442695, %v1549_v62 }
 0x252   : > { %v5083_v11 = vadd.f32 %v3213_v29, %v4720_v36  ;;  %v1433_v52 = vpop.f32.mrb[41].mxu1  ;;  %v1949_v0 = vsel %vm1501_vm3, %v4778_v41, %v1917_v5  ;;  %v1689_v30 = vmul.f32 0.6931472, %v3484_v2  ;;  %v1700_v5 = vadd.f32 1.0, %v1699_v56  ;;  %v5129_v56 = vpop.eup %3485 }
 0x253   : > { %v5093_v19 = vadd.f32 %v4720_v36, %v1433_v52  ;;  %v3214_v23 = vpop.f32.mrb[42].mxu1  ;;  %v1978_v39 = vpack.c.bf16 %v1949_v0, %v1948_v59  ;;  %v1686_v41 = vsel %vm5068_vm7, %v1683_v28, %v1680_v3  ;;  %3493 = vpow2.f32 %v1606_v40 }
 0x254   : > { %v5099_v33 = vmul.f32 100.0, %v5083_v11  ;;  %v5102_v29 = vadd.f32 %v3214_v23, %v4720_v36  ;;  %v1436_v18 = vpop.f32.mrb[43].mxu1  ;;  %v1918_v62 = vmul.f32 0.01, %v1686_v41  ;;  %v1695_v28 = vsel %vm5085_vm2, %v1692_v55, %v1689_v30 }
 0x255   : > { %v5105_v52 = vmul.f32 100.0, %v5093_v19  ;;  %v5108_v24 = vadd.f32 %v4720_v36, %v1436_v18  ;;  %3239 = vmatprep.mubr.bf16.mxu0 %v1978_v39  ;;  %v1919_v39 = vmul.f32 0.01, %v1695_v28  ;;  %v1705_v3 = vadd.f32 1.0, %v4988_v9 }
 0x256   : > { %6637 = vst [vmem:[#allocation6_spill] sm:$0xff] %v5099_v33  ;;  %6638 = vst [vmem:[#allocation28_spill] sm:$0xff] %v5102_v29  ;;  %vm6405_vm3 = vcmp.gt.f32.partialorder %v5099_v33, 20.0  ;;  %v5114_v20 = vmul.f32 100.0, %v5102_v29  ;;  %v1950_v55 = vsel %vm1502_vm10, %v4763_v57, %v1918_v62  ;;  %3495 = vpow2.f32 %v1602_v58 }
 0x257   : > { %v1554_v59 = vsel %vm6405_vm3, 0.0, %v5099_v33  ;;  %vm1520_vm13 = vcmp.gt.f32.partialorder %v5105_v52, 20.0  ;;  %v5121_v18 = vmul.f32 100.0, %v5108_v24  ;;  %v1951_v16 = vsel %vm1503_vm1, %v4772_v51, %v1919_v39 }
 0x258   : > { %6639 = vst [vmem:[#allocation3_spill] sm:$0xff] %v5114_v20  ;;  %v1612_v4 = vmul.f32 1.442695, %v1554_v59  ;;  %v1552_v17 = vsel %vm1520_vm13, 0.0, %v5105_v52  ;;  %vm6407_vm7 = vcmp.gt.f32.partialorder %v5114_v20, 20.0  ;;  %v1979_v40 = vpack.c.bf16 %v1951_v16, %v1950_v55 }
 0x259   : > { %v1608_v23 = vmul.f32 1.442695, %v1552_v17  ;;  %vm1521_vm3 = vcmp.gt.f32.partialorder %v5121_v18, 20.0  ;;  %v1555_v0 = vsel %vm6407_vm7, 0.0, %v5114_v20  ;;  %v5142_v2 = vpop.eup %3487  ;;  %v1702_v30 = vand.u32 2147483647, %v4936_v44 }
 0x25a   : > { %v1708_v59 = vmul.f32 -0.5, %v4988_v9  ;;  %v5146_v28 = vpop.eup %3489  ;;  %3497 = vpow2.f32 %v1612_v4  ;;  %v1553_v57 = vsel %vm1521_vm3, 0.0, %v5121_v18  ;;  %v1701_v34 = vmul.f32 %v4936_v44, %v1700_v5  ;;  %3240 = vmatmul.mubr.bf16.gmra.mrb[20].mxu0 %v1979_v40 }
 0x25b   : > { %v3217_v41 = vpop.f32.mrb[44].mxu1  ;;  %v3492_v58 = vpop.eup %3491  ;;  %3499 = vpow2.f32 %v1608_v23  ;;  %v1614_v62 = vmul.f32 1.442695, %v1555_v0  ;;  %v1714_v4 = vadd.f32 1.0, %v4915_v26  ;;  %v1610_v44 = vmul.f32 1.442695, %v1553_v57 }
 0x25c   : > { %v5152_v1 = vadd.f32 %v3217_v41, %v4720_v36  ;;  %v1449_v51 = vpop.f32.mrb[45].mxu1  ;;  %v1698_v20 = vmul.f32 0.6931472, %v3492_v58  ;;  %3501 = vlog2.f32 %v1705_v3  ;;  %vm5171_vm10 = vcmp.lt.f32.partialorder %v1702_v30, 0.0004427343 }
 0x25d   : > { %v5156_v17 = vadd.f32 %v4720_v36, %v1449_v51  ;;  %v3218_v39 = vpop.f32.mrb[46].mxu1  ;;  %3503 = vlog2.f32 %v1714_v4  ;;  %v1717_v51 = vmul.f32 -0.5, %v4915_v26  ;;  %v5193_v4 = vpop.eup %3493  ;;  %v1810_v37 = vand.u32 2147483647, %v5146_v28 }
 0x25e   : > { %6640 = vst [vmem:[#allocation5_spill] sm:$0xff] %v5152_v1  ;;  %v5160_v55 = vmul.f32 100.0, %v5152_v1  ;;  %v5163_v16 = vadd.f32 %v3218_v39, %v4720_v36  ;;  %v1452_v41 = vpop.f32.mrb[47].mxu1  ;;  %v1704_v30 = vsel %vm5171_vm10, %v1701_v34, %v1698_v20  ;;  %v1709_v39 = vadd.f32 1.0, %v1708_v59 }
 0x25f   : > { %6641 = vst [vmem:[#allocation9_spill] sm:$0xff] %v5156_v17  ;;  %v5166_v5 = vmul.f32 100.0, %v5156_v17  ;;  %v5169_v23 = vadd.f32 %v4720_v36, %v1452_v41  ;;  %3505 = vpow2.f32 %v1614_v62  ;;  %v1920_v34 = vmul.f32 0.01, %v1704_v30 }
 0x260   : > { %6642 = vst [vmem:[#allocation10_spill] sm:$0xff] %v5160_v55  ;;  %6643 = vst [vmem:[#allocation41_spill] sm:$0xff] %v5163_v16  ;;  %vm6419_vm1 = vcmp.gt.f32.partialorder %v5160_v55, 20.0  ;;  %v5177_v40 = vmul.f32 100.0, %v5163_v16  ;;  %3507 = vpow2.f32 %v1610_v44  ;;  %v5200_v0 = vpop.eup %3495  ;;  %v1723_v59 = vadd.f32 1.0, %v4944_v32 }
 0x261   : > { %6644 = vst [vmem:[#allocation7_spill] sm:$0xff] %v5166_v5  ;;  %6645 = vst [vmem:[#allocation8_spill] sm:$0xff] %v5169_v23  ;;  %v1558_v3 = vsel %vm6419_vm1, 0.0, %v5160_v55  ;;  %vm1524_vm2 = vcmp.gt.f32.partialorder %v5166_v5, 20.0  ;;  %v5185_v36 = vmul.f32 100.0, %v5169_v23  ;;  %v1710_v62 = vmul.f32 %v4988_v9, %v1709_v39 }
 0x262   : > { %6648 = vst [vmem:[#allocation37_spill] sm:$0xff] %v5177_v40  ;;  %v1620_v57 = vmul.f32 1.442695, %v1558_v3  ;;  %v1556_v58 = vsel %vm1524_vm2, 0.0, %v5166_v5  ;;  %vm6412_vm7 = vcmp.gt.f32.partialorder %v5177_v40, 20.0  ;;  %v1718_v3 = vadd.f32 1.0, %v1717_v51 }
 0x263   : > { %6649 = vst [vmem:[#allocation48_spill] sm:$0xff] %v5185_v36  ;;  %v1616_v41 = vmul.f32 1.442695, %v1556_v58  ;;  %v1559_v16 = vsel %vm6412_vm7, 0.0, %v5177_v40  ;;  %v1711_v55 = vand.u32 2147483647, %v4988_v9  ;;  %v1952_v9 = vsel %vm1504_vm6, %v4803_v43, %v1920_v34 }
 0x264   : > { %v1622_v20 = vmul.f32 1.442695, %v1559_v16  ;;  %vm1525_vm10 = vcmp.gt.f32.partialorder %v5185_v36, 20.0  ;;  %3509 = vpow2.f32 %v1620_v57  ;;  %v5203_v1 = vpop.eup %3497  ;;  %v1732_v58 = vadd.f32 1.0, %v5012_v48 }
 0x265   : > { %3511 = vpow2.f32 %v1616_v41  ;;  %v5207_v40 = vpop.eup %3499  ;;  %v1557_v16 = vsel %vm1525_vm10, 0.0, %v5185_v36  ;;  %vm5212_vm7 = vcmp.lt.f32.partialorder %v1711_v55, 0.0004427343  ;;  %v1720_v51 = vand.u32 2147483647, %v4915_v26 }
 0x266   : > { %3513 = vpow2.f32 %v1622_v20  ;;  %v3502_v30 = vpop.eup %3501  ;;  %v1726_v57 = vmul.f32 -0.5, %v4944_v32  ;;  %v1741_v39 = vadd.f32 1.0, %v5059_v31  ;;  %v1719_v20 = vmul.f32 %v4915_v26, %v1718_v3 }
 0x267   : > { %3515 = vlog2.f32 %v1723_v59  ;;  %v1707_v41 = vmul.f32 0.6931472, %v3502_v30  ;;  %v1735_v55 = vmul.f32 -0.5, %v5012_v48  ;;  %v3504_v36 = vpop.eup %3503  ;;  %v1618_v23 = vmul.f32 1.442695, %v1557_v16 }
 0x268   : > { %3517 = vlog2.f32 %v1732_v58  ;;  %v1729_v5 = vand.u32 2147483647, %v4944_v32  ;;  %v1744_v17 = vmul.f32 -0.5, %v5059_v31  ;;  %v1716_v8 = vmul.f32 0.6931472, %v3504_v36 }
 0x269   : > { %3519 = vlog2.f32 %v1741_v39  ;;  %v1713_v43 = vsel %vm5212_vm7, %v1710_v62, %v1707_v41  ;;  %vm5228_vm6 = vcmp.lt.f32.partialorder %v1720_v51, 0.0004427343  ;;  %v1750_v26 = vadd.f32 1.0, %v5001_v42  ;;  %v5235_v30 = vpop.eup %3505 }
 0x26a   : > { %v1921_v3 = vmul.f32 0.01, %v1713_v43  ;;  %v1727_v59 = vadd.f32 1.0, %v1726_v57  ;;  %v1738_v58 = vand.u32 2147483647, %v5012_v48  ;;  %v1753_v16 = vmul.f32 -0.5, %v5001_v42  ;;  %v5240_v62 = vpop.eup %3507 }
 0x26b   : > { %v1722_v39 = vsel %vm5228_vm6, %v1719_v20, %v1716_v8  ;;  %v1736_v44 = vadd.f32 1.0, %v1735_v55  ;;  %3521 = vlog2.f32 %v1750_v26  ;;  %v1759_v36 = vadd.f32 1.0, %v5045_v21 }
 0x26c   : > { %v1953_v51 = vsel %vm1505_vm9, %v4822_v27, %v1921_v3  ;;  %v1745_v57 = vadd.f32 1.0, %v1744_v17  ;;  %v1747_v41 = vand.u32 2147483647, %v5059_v31  ;;  %v1756_v43 = vand.u32 2147483647, %v5001_v42 }
 0x26d   : > { %v1980_v33 = vpack.c.bf16 %v1953_v51, %v1952_v9  ;;  %v1922_v34 = vmul.f32 0.01, %v1722_v39  ;;  %3523 = vlog2.f32 %v1759_v36  ;;  %v1762_v20 = vmul.f32 -0.5, %v5045_v21 }
 0x26e   : > { %v5247_v29 = vpop.eup %3509  ;;  %3525 = vpow2.f32 %v1618_v23  ;;  %v1754_v8 = vadd.f32 1.0, %v1753_v16  ;;  %v1768_v26 = vadd.f32 1.0, %v5077_v63  ;;  %v1728_v27 = vmul.f32 %v4944_v32, %v1727_v59 }
 0x26f   : > { %v5250_v55 = vpop.eup %3511  ;;  %3243 = vmatprep.mubr.bf16.mxu0 %v1980_v33  ;;  %vm5256_vm9 = vcmp.lt.f32.partialorder %v1729_v5, 0.0004427343  ;;  %vm5260_vm7 = vcmp.lt.f32.partialorder %v1738_v58, 0.0004427343  ;;  %v1777_v3 = vadd.f32 1.0, %v5129_v56  ;;  %v1737_v23 = vmul.f32 %v5012_v48, %v1736_v44 }
 0x270   : > { %v5253_v54 = vpop.eup %3513  ;;  %v1746_v16 = vmul.f32 %v5059_v31, %v1745_v57  ;;  %vm5267_vm6 = vcmp.lt.f32.partialorder %v1747_v41, 0.0004427343  ;;  %3527 = vlog2.f32 %v1768_v26  ;;  %v1954_v5 = vsel %vm1506_vm4, %v4800_v50, %v1922_v34 }
 0x271   : > { %v3516_v39 = vpop.eup %3515  ;;  %vm5274_vm1 = vcmp.lt.f32.partialorder %v1756_v43, 0.0004427343  ;;  %v1763_v58 = vadd.f32 1.0, %v1762_v20  ;;  %v1755_v31 = vmul.f32 %v5001_v42, %v1754_v8  ;;  %v1771_v44 = vmul.f32 -0.5, %v5077_v63 }
 0x272   : > { %v3518_v32 = vpop.eup %3517  ;;  %v1725_v33 = vmul.f32 0.6931472, %v3516_v39  ;;  %3529 = vlog2.f32 %v1777_v3  ;;  %v1780_v26 = vmul.f32 -0.5, %v5129_v56  ;;  %v1786_v50 = vadd.f32 1.0, %v5072_v61 }
 0x273   : > { %v3520_v51 = vpop.eup %3519  ;;  %v1734_v48 = vmul.f32 0.6931472, %v3518_v32  ;;  %v1765_v34 = vand.u32 2147483647, %v5045_v21  ;;  %v1774_v20 = vand.u32 2147483647, %v5077_v63 }
 0x274   : > { %v1731_v57 = vsel %vm5256_vm9, %v1728_v27, %v1725_v33  ;;  %v1743_v41 = vmul.f32 0.6931472, %v3520_v51  ;;  %v1764_v27 = vmul.f32 %v5045_v21, %v1763_v58  ;;  %3531 = vlog2.f32 %v1786_v50 }
 0x275   : > { %v1923_v60 = vmul.f32 0.01, %v1731_v57  ;;  %v1740_v43 = vsel %vm5260_vm7, %v1737_v23, %v1734_v48  ;;  %v3522_v42 = vpop.eup %3521  ;;  %vm6662_vm4 = vcmp.gt.f32.partialorder %v4819_v13, 20.0  ;;  %v1789_v9 = vmul.f32 -0.5, %v5072_v61 }
 0x276   : > { %v1749_v8 = vsel %vm5267_vm6, %v1746_v16, %v1743_v41  ;;  %v1924_v3 = vmul.f32 0.01, %v1740_v43  ;;  %v1752_v32 = vmul.f32 0.6931472, %v3522_v42  ;;  %v1772_v51 = vadd.f32 1.0, %v1771_v44 }
 0x277   : > { %v1955_v17 = vsel %vm6662_vm4, %v4809_v15, %v1923_v60  ;;  %v1925_v39 = vmul.f32 0.01, %v1749_v8  ;;  %v3524_v23 = vpop.eup %3523  ;;  %v1781_v48 = vadd.f32 1.0, %v1780_v26  ;;  %v1795_v57 = vadd.f32 1.0, %v5090_v12 }
 0x278   : > { %v1981_v33 = vpack.c.bf16 %v1955_v17, %v1954_v5  ;;  %v5296_v36 = vpop.eup %3525  ;;  %v1956_v21 = vsel %vm1508_vm11, %v4869_v7, %v1924_v3  ;;  %v1758_v13 = vsel %vm5274_vm1, %v1755_v31, %v1752_v32  ;;  %v1761_v16 = vmul.f32 0.6931472, %v3524_v23 }
 0x279   : > { %v1957_v15 = vsel %vm1509_vm14, %v4889_v22, %v1925_v39  ;;  %vm1766_vm9 = vcmp.lt.f32.partialorder %v1765_v34, 0.0004427343  ;;  %v1926_v58 = vmul.f32 0.01, %v1758_v13  ;;  %3533 = vlog2.f32 %v1795_v57 }
 0x27a   : > { %3244 = vmatmul.mubr.bf16.gmra.mrb[24].mxu0 %v1981_v33  ;;  %v1982_v5 = vpack.c.bf16 %v1957_v15, %v1956_v21  ;;  %v3528_v44 = vpop.eup %3527  ;;  %v1767_v41 = vsel %vm1766_vm9, %v1764_v27, %v1761_v16  ;;  %v1783_v26 = vand.u32 2147483647, %v5129_v56  ;;  %v1790_v50 = vadd.f32 1.0, %v1789_v9 }
 0x27b   : > { %v1804_v7 = vadd.f32 1.0, %v5146_v28  ;;  %v1927_v6 = vmul.f32 0.01, %v1767_v41  ;;  %v1770_v47 = vmul.f32 0.6931472, %v3528_v44  ;;  %v1773_v22 = vmul.f32 %v5077_v63, %v1772_v51 }
 0x27c   : > { %3247 = vmatprep.mubr.bf16.mxu0 %v1982_v5  ;;  %vm1775_vm14 = vcmp.lt.f32.partialorder %v1774_v20, 0.0004427343  ;;  %v3530_v59 = vpop.eup %3529  ;;  %v1782_v31 = vmul.f32 %v5129_v56, %v1781_v48  ;;  %v1792_v60 = vand.u32 2147483647, %v5072_v61  ;;  %v1798_v43 = vmul.f32 -0.5, %v5090_v12 }
 0x27d   : > { %3535 = vlog2.f32 %v1804_v7  ;;  %vm6663_vm11 = vcmp.gt.f32.partialorder %v4875_v45, 20.0  ;;  %vm6664_vm1 = vcmp.gt.f32.partialorder %v4893_v46, 20.0  ;;  %v1776_v8 = vsel %vm1775_vm14, %v1773_v22, %v1770_v47 }
 0x27e   : > { %v1958_v34 = vsel %vm6663_vm11, %v4865_v49, %v1926_v58  ;;  %v1959_v42 = vsel %vm6664_vm1, %v4878_v38, %v1927_v6  ;;  %v1779_v3 = vmul.f32 0.6931472, %v3530_v59  ;;  %vm1784_vm7 = vcmp.lt.f32.partialorder %v1783_v26, 0.0004427343  ;;  %v3532_v27 = vpop.eup %3531 }
 0x27f   : > { %v1983_v63 = vpack.c.bf16 %v1959_v42, %v1958_v34  ;;  %v1928_v20 = vmul.f32 0.01, %v1776_v8  ;;  %v1791_v56 = vmul.f32 %v5072_v61, %v1790_v50  ;;  %v1801_v39 = vand.u32 2147483647, %v5090_v12  ;;  %v6669_v42 = vld [vmem:[#allocation26_spill] sm:$0xff]  ;;  %v6670_v8 = vld [vmem:[#allocation31_spill] sm:$0xff] }
 0x280   : > { %v1785_v17 = vsel %vm1784_vm7, %v1782_v31, %v1779_v3  ;;  %v1807_v32 = vmul.f32 -0.5, %v5146_v28  ;;  %v1813_v45 = vadd.f32 1.0, %v5200_v0  ;;  %v1788_v9 = vmul.f32 0.6931472, %v3532_v27 }
 0x281   : > { %v1929_v49 = vmul.f32 0.01, %v1785_v17  ;;  %v1799_v23 = vadd.f32 1.0, %v1798_v43  ;;  %v1822_v38 = vadd.f32 1.0, %v5142_v2  ;;  %vm5323_vm6 = vcmp.lt.f32.partialorder %v1792_v60, 0.0004427343 }
 0x282   : > { %3248 = vmatmul.mubr.bf16.gmra.mrb[28].mxu0 %v1983_v63  ;;  %3537 = vlog2.f32 %v1813_v45  ;;  %v1816_v61 = vmul.f32 -0.5, %v5200_v0  ;;  %v1960_v33 = vsel %vm1512_vm12, %v4950_v10, %v1928_v20  ;;  %v1794_v48 = vsel %vm5323_vm6, %v1791_v56, %v1788_v9 }
 0x283   : > { %v1961_v51 = vsel %vm1513_vm8, %v4956_v14, %v1929_v49  ;;  %3539 = vlog2.f32 %v1822_v38  ;;  %v3534_v57 = vpop.eup %3533  ;;  %vm5336_vm4 = vcmp.lt.f32.partialorder %v1801_v39, 0.0004427343  ;;  %v1808_v13 = vadd.f32 1.0, %v1807_v32 }
 0x284   : > { %v1984_v21 = vpack.c.bf16 %v1961_v51, %v1960_v33  ;;  %v1825_v16 = vmul.f32 -0.5, %v5142_v2  ;;  %v1797_v5 = vmul.f32 0.6931472, %v3534_v57  ;;  %v1800_v10 = vmul.f32 %v5090_v12, %v1799_v23 }
 0x285   : > { %v1831_v14 = vadd.f32 1.0, %v5193_v4  ;;  %v1930_v35 = vmul.f32 0.01, %v1794_v48  ;;  %v1817_v58 = vadd.f32 1.0, %v1816_v61  ;;  %v1819_v44 = vand.u32 2147483647, %v5200_v0 }
 0x286   : > { %3251 = vmatprep.mubr.bf16.mxu0 %v1984_v21  ;;  %v1840_v41 = vadd.f32 1.0, %v5207_v40  ;;  %v1803_v50 = vsel %vm5336_vm4, %v1800_v10, %v1797_v5  ;;  %v1828_v7 = vand.u32 2147483647, %v5142_v2  ;;  %v1834_v12 = vmul.f32 -0.5, %v5193_v4 }
 0x287   : > { %v3536_v26 = vpop.eup %3535  ;;  %3541 = vlog2.f32 %v1831_v14  ;;  %v1931_v6 = vmul.f32 0.01, %v1803_v50  ;;  %v1826_v22 = vadd.f32 1.0, %v1825_v16  ;;  %v1809_v59 = vmul.f32 %v5146_v28, %v1808_v13  ;;  %v6680_v14 = vld [vmem:[#allocation22_spill] sm:$0xff]  ;;  %v6703_v28 = vld [vmem:[#allocation9_spill] sm:$0xff] }
 0x288   : > { %v1806_v47 = vmul.f32 0.6931472, %v3536_v26  ;;  %3543 = vlog2.f32 %v1840_v41  ;;  %v1837_v31 = vand.u32 2147483647, %v5193_v4  ;;  %v1843_v60 = vmul.f32 -0.5, %v5207_v40  ;;  %v6700_v41 = vld [vmem:[#allocation28_spill] sm:$0xff] }
 0x289   : > { %v1849_v43 = vadd.f32 1.0, %v5240_v62  ;;  %v1962_v34 = vsel %vm1514_vm0, %v4947_v53, %v1930_v35  ;;  %vm6671_vm12 = vcmp.gt.f32.partialorder %v6670_v8, 20.0  ;;  %vm5360_vm8 = vcmp.lt.f32.partialorder %v1810_v37, 0.0004427343  ;;  %v6681_v35 = vld [vmem:[#allocation29_spill] sm:$0xff] }
 0x28a   : > { %v1963_v3 = vsel %vm6671_vm12, %v6669_v42, %v1931_v6  ;;  %vm5364_vm9 = vcmp.lt.f32.partialorder %v1819_v44, 0.0004427343  ;;  %v1812_v56 = vsel %vm5360_vm8, %v1809_v59, %v1806_v47  ;;  %v1818_v27 = vmul.f32 %v5200_v0, %v1817_v58  ;;  %v6683_v44 = vld [vmem:[#allocation36_spill] sm:$0xff] }
 0x28b   : > { %v1985_v20 = vpack.c.bf16 %v1963_v3, %v1962_v34  ;;  %v1835_v25 = vadd.f32 1.0, %v1834_v12  ;;  %v1827_v17 = vmul.f32 %v5142_v2, %v1826_v22  ;;  %vm5372_vm0 = vcmp.lt.f32.partialorder %v1828_v7, 0.0004427343 }
 0x28c   : > { %v3538_v53 = vpop.eup %3537  ;;  %3545 = vlog2.f32 %v1849_v43  ;;  %v1858_v32 = vadd.f32 1.0, %v5203_v1  ;;  %vm5377_vm14 = vcmp.lt.f32.partialorder %v1837_v31, 0.0004427343  ;;  %v1844_v23 = vadd.f32 1.0, %v1843_v60 }
 0x28d   : > { %v3540_v45 = vpop.eup %3539  ;;  %3252 = vmatmul.mubr.bf16.gmra.mrb[32].mxu0 %v1985_v20  ;;  %v1815_v49 = vmul.f32 0.6931472, %v3538_v53  ;;  %v1852_v0 = vmul.f32 -0.5, %v5240_v62  ;;  %v1932_v38 = vmul.f32 0.01, %v1812_v56  ;;  %v1867_v2 = vadd.f32 1.0, %v5235_v30 }
 0x28e   : > { %v1824_v46 = vmul.f32 0.6931472, %v3540_v45  ;;  %3547 = vlog2.f32 %v1858_v32  ;;  %v1836_v33 = vmul.f32 %v5193_v4, %v1835_v25  ;;  %v1846_v51 = vand.u32 2147483647, %v5207_v40  ;;  %v6691_v56 = vld [vmem:[#allocation33_spill] sm:$0xff] }
 0x28f   : > { %v1821_v61 = vsel %vm5364_vm9, %v1818_v27, %v1815_v49  ;;  %v1855_v48 = vand.u32 2147483647, %v5240_v62  ;;  %v1861_v15 = vmul.f32 -0.5, %v5203_v1  ;;  %3549 = vlog2.f32 %v1867_v2  ;;  %v6692_v27 = vld [vmem:[#allocation42_spill] sm:$0xff]  ;;  %v6694_v53 = vld [vmem:[#allocation45_spill] sm:$0xff] }
 0x290   : > { %v1933_v57 = vmul.f32 0.01, %v1821_v61  ;;  %v1830_v21 = vsel %vm5372_vm0, %v1827_v17, %v1824_v46  ;;  %v1845_v16 = vmul.f32 %v5207_v40, %v1844_v23  ;;  %v1853_v5 = vadd.f32 1.0, %v1852_v0 }
 0x291   : > { %v3542_v13 = vpop.eup %3541  ;;  %v1870_v10 = vmul.f32 -0.5, %v5235_v30  ;;  %v1876_v37 = vadd.f32 1.0, %v5250_v55  ;;  %vm6682_vm11 = vcmp.gt.f32.partialorder %v6681_v35, 20.0  ;;  %v1864_v7 = vand.u32 2147483647, %v5203_v1 }
 0x292   : > { %v3544_v4 = vpop.eup %3543  ;;  %v1964_v58 = vsel %vm6682_vm11, %v6680_v14, %v1932_v38  ;;  %v1965_v26 = vsel %vm1517_vm5, %v6683_v44, %v1933_v57  ;;  %v1833_v50 = vmul.f32 0.6931472, %v3542_v13  ;;  %v1934_v6 = vmul.f32 0.01, %v1830_v21 }
 0x293   : > { %v1986_v12 = vpack.c.bf16 %v1965_v26, %v1964_v58  ;;  %v1842_v40 = vmul.f32 0.6931472, %v3544_v4  ;;  %vm5401_vm1 = vcmp.lt.f32.partialorder %v1846_v51, 0.0004427343  ;;  %v1862_v59 = vadd.f32 1.0, %v1861_v15  ;;  %v6701_v26 = vld [vmem:[#allocation3_spill] sm:$0xff] }
 0x294   : > { %v1839_v22 = vsel %vm5377_vm14, %v1836_v33, %v1833_v50  ;;  %v1873_v31 = vand.u32 2147483647, %v5235_v30  ;;  %3551 = vlog2.f32 %v1876_v37  ;;  %v1871_v34 = vadd.f32 1.0, %v1870_v10 }
 0x295   : > { %3255 = vmatprep.mubr.bf16.mxu0 %v1986_v12  ;;  %v1935_v60 = vmul.f32 0.01, %v1839_v22  ;;  %v1848_v43 = vsel %vm5401_vm1, %v1845_v16, %v1842_v40  ;;  %v1885_v42 = vadd.f32 1.0, %v5296_v36  ;;  %v1854_v3 = vmul.f32 %v5240_v62, %v1853_v5 }
 0x296   : > { %v3546_v8 = vpop.eup %3545  ;;  %vm5412_vm5 = vcmp.lt.f32.partialorder %v1855_v48, 0.0004427343  ;;  %vm5416_vm7 = vcmp.lt.f32.partialorder %v1864_v7, 0.0004427343  ;;  %v1879_v20 = vmul.f32 -0.5, %v5250_v55  ;;  %vm6693_vm6 = vcmp.gt.f32.partialorder %v6692_v27, 20.0 }
 0x297   : > { %v1966_v25 = vsel %vm6693_vm6, %v6691_v56, %v1934_v6  ;;  %v1967_v39 = vsel %vm1519_vm15, %v6694_v53, %v1935_v60  ;;  %v1851_v32 = vmul.f32 0.6931472, %v3546_v8  ;;  %3553 = vlog2.f32 %v1885_v42  ;;  %v6705_v56 = vld [vmem:[#allocation8_spill] sm:$0xff] }
 0x298   : > { %v3548_v62 = vpop.eup %3547  ;;  %v1987_v45 = vpack.c.bf16 %v1967_v39, %v1966_v25  ;;  %v1936_v49 = vmul.f32 0.01, %v1848_v43  ;;  %v1863_v9 = vmul.f32 %v5203_v1, %v1862_v59  ;;  %v1894_v23 = vadd.f32 1.0, %v5247_v29 }
 0x299   : > { %v1857_v0 = vsel %vm5412_vm5, %v1854_v3, %v1851_v32  ;;  %v1860_v38 = vmul.f32 0.6931472, %v3548_v62  ;;  %v1872_v46 = vmul.f32 %v5235_v30, %v1871_v34  ;;  %vm5432_vm4 = vcmp.lt.f32.partialorder %v1873_v31, 0.0004427343  ;;  %v3550_v61 = vpop.eup %3549 }
 0x29a   : > { %3256 = vmatmul.mubr.bf16.gmra.mrb[36].mxu0 %v1987_v45  ;;  %v1937_v33 = vmul.f32 0.01, %v1857_v0  ;;  %v1888_v51 = vmul.f32 -0.5, %v5296_v36  ;;  %3555 = vlog2.f32 %v1894_v23  ;;  %v1903_v1 = vadd.f32 1.0, %v5253_v54  ;;  %v6707_v45 = vld [vmem:[#allocation5_spill] sm:$0xff] }
 0x29b   : > { %v1866_v48 = vsel %vm5416_vm7, %v1863_v9, %v1860_v38  ;;  %v1869_v57 = vmul.f32 0.6931472, %v3550_v61  ;;  %v1880_v21 = vadd.f32 1.0, %v1879_v20  ;;  %v1882_v15 = vand.u32 2147483647, %v5250_v55  ;;  %v6710_v9 = vld [vmem:[#allocation41_spill] sm:$0xff] }
 0x29c   : > { %v1968_v30 = vsel %vm1520_vm13, %v5093_v19, %v1936_v49  ;;  %v1969_v13 = vsel %vm1521_vm3, %v5108_v24, %v1937_v33  ;;  %v1938_v16 = vmul.f32 0.01, %v1866_v48  ;;  %3557 = vlog2.f32 %v1903_v1  ;;  %v6698_v24 = vld [vmem:[#allocation6_spill] sm:$0xff]  ;;  %v6711_v23 = vld [vmem:[#allocation37_spill] sm:$0xff] }
 0x29d   : > { %v1988_v5 = vpack.c.bf16 %v1969_v13, %v1968_v30  ;;  %v1875_v10 = vsel %vm5432_vm4, %v1872_v46, %v1869_v57  ;;  %v1897_v37 = vmul.f32 -0.5, %v5247_v29  ;;  %v1889_v35 = vadd.f32 1.0, %v1888_v51  ;;  %v6708_v49 = vld [vmem:[#allocation10_spill] sm:$0xff] }
 0x29e   : > { %v3552_v4 = vpop.eup %3551  ;;  %v1939_v14 = vmul.f32 0.01, %v1875_v10  ;;  %v1906_v58 = vmul.f32 -0.5, %v5253_v54  ;;  %v1881_v19 = vmul.f32 %v5250_v55, %v1880_v21  ;;  %v1891_v18 = vand.u32 2147483647, %v5296_v36 }
 0x29f   : > { %3259 = vmatprep.mubr.bf16.mxu0 %v1988_v5  ;;  %v1878_v52 = vmul.f32 0.6931472, %v3552_v4  ;;  %vm6699_vm15 = vcmp.gt.f32.partialorder %v6698_v24, 20.0  ;;  %vm6702_vm3 = vcmp.gt.f32.partialorder %v6701_v26, 20.0  ;;  %vm1883_vm13 = vcmp.lt.f32.partialorder %v1882_v15, 0.0004427343 }
 0x2a0   : > { %v1970_v44 = vsel %vm6699_vm15, %v5083_v11, %v1938_v16  ;;  %v1971_v50 = vsel %vm6702_vm3, %v6700_v41, %v1939_v14  ;;  %v1898_v40 = vadd.f32 1.0, %v1897_v37  ;;  %v1890_v22 = vmul.f32 %v5296_v36, %v1889_v35  ;;  %v5479_v46 = vld [vmem:[%s6316_s6] ss:$0 sm:$0xff] }
 0x2a1   : > { %v3554_v7 = vpop.eup %3553  ;;  %v1989_v12 = vpack.c.bf16 %v1971_v50, %v1970_v44  ;;  %v1884_v6 = vsel %vm1883_vm13, %v1881_v19, %v1878_v52  ;;  %v1900_v55 = vand.u32 2147483647, %v5247_v29  ;;  %v1907_v59 = vadd.f32 1.0, %v1906_v58 }
 0x2a2   : > { %v1887_v47 = vmul.f32 0.6931472, %v3554_v7  ;;  %vm1892_vm12 = vcmp.lt.f32.partialorder %v1891_v18, 0.0004427343  ;;  %v1940_v31 = vmul.f32 0.01, %v1884_v6  ;;  %v1899_v8 = vmul.f32 %v5247_v29, %v1898_v40 }
 0x2a3   : > { %3260 = vmatmul.mubr.bf16.gmra.mrb[40].mxu0 %v1989_v12  ;;  %v1909_v43 = vand.u32 2147483647, %v5253_v54  ;;  %vm1901_vm8 = vcmp.lt.f32.partialorder %v1900_v55, 0.0004427343  ;;  %v1908_v63 = vmul.f32 %v5253_v54, %v1907_v59  ;;  %vm6709_vm0 = vcmp.gt.f32.partialorder %v6708_v49, 20.0 }
 0x2a4   : > { %v3556_v60 = vpop.eup %3555  ;;  %v1893_v11 = vsel %vm1892_vm12, %v1890_v22, %v1887_v47  ;;  %v1972_v20 = vsel %vm1524_vm2, %v6703_v28, %v1940_v31  ;;  %vm6712_vm14 = vcmp.gt.f32.partialorder %v6711_v23, 20.0 }
 0x2a5   : > { %v1941_v34 = vmul.f32 0.01, %v1893_v11  ;;  %v1896_v42 = vmul.f32 0.6931472, %v3556_v60  ;;  %vm1910_vm9 = vcmp.lt.f32.partialorder %v1909_v43, 0.0004427343 }
 0x2a6   : > { %v3558_v3 = vpop.eup %3557 }
 0x2a7   : > { %v1973_v25 = vsel %vm1525_vm10, %v6705_v56, %v1941_v34  ;;  %v1902_v53 = vsel %vm1901_vm8, %v1899_v8, %v1896_v42  ;;  %v1905_v17 = vmul.f32 0.6931472, %v3558_v3 }
 0x2a8   : > { %v1990_v39 = vpack.c.bf16 %v1973_v25, %v1972_v20  ;;  %v1942_v32 = vmul.f32 0.01, %v1902_v53 }
 0x2a9   : > { %v1911_v62 = vsel %vm1910_vm9, %v1908_v63, %v1905_v17 }
 0x2aa   : > { %3263 = vmatprep.mubr.bf16.mxu0 %v1990_v39  ;;  %v1943_v29 = vmul.f32 0.01, %v1911_v62  ;;  %v1974_v54 = vsel %vm6709_vm0, %v6707_v45, %v1942_v32 }
 0x2ac   : > { %v1975_v0 = vsel %vm6712_vm14, %v6710_v9, %v1943_v29 }
 0x2ad   : > { %v1991_v38 = vpack.c.bf16 %v1975_v0, %v1974_v54 }
 0x2af   : > { %3264 = vmatmul.mubr.bf16.gmra.mrb[44].mxu0 %v1991_v38 }
 0x31a   : > { %v3237_v2 = vpop.f32.mrb[16].mxu0 }
 0x31b   : > { %v5482_v61 = vadd.f32 %v3237_v2, %v5479_v46  ;;  %v2097_v33 = vpop.f32.mrb[17].mxu0 }
 0x31c   : > { %v5485_v51 = vadd.f32 %v5479_v46, %v2097_v33  ;;  %v3238_v1 = vpop.f32.mrb[18].mxu0 }
 0x31d   : > { %v5488_v48 = vmul.f32 100.0, %v5482_v61  ;;  %v5491_v57 = vadd.f32 %v3238_v1, %v5479_v46  ;;  %v2100_v21 = vpop.f32.mrb[19].mxu0 }
 0x31e   : > { %v5494_v15 = vmul.f32 100.0, %v5485_v51  ;;  %v5497_v30 = vadd.f32 %v5479_v46, %v2100_v21  ;;  %v5573_v21 = vld [vmem:[%s6317_s7] ss:$0 sm:$0xff] }
 0x31f   : > { %v5500_v13 = vmul.f32 100.0, %v5491_v57  ;;  %vm2258_vm2 = vcmp.gt.f32.partialorder %v5488_v48, 20.0 }
 0x320   : > { %v5504_v16 = vmul.f32 100.0, %v5497_v30  ;;  %v2290_v5 = vsel %vm2258_vm2, 0.0, %v5488_v48  ;;  %vm2256_vm10 = vcmp.gt.f32.partialorder %v5494_v15, 20.0 }
 0x321   : > { %vm2259_vm11 = vcmp.gt.f32.partialorder %v5500_v13, 20.0  ;;  %v2324_v10 = vmul.f32 1.442695, %v2290_v5  ;;  %v2288_v37 = vsel %vm2256_vm10, 0.0, %v5494_v15 }
 0x322   : > { %v2291_v4 = vsel %vm2259_vm11, 0.0, %v5500_v13  ;;  %vm2257_vm1 = vcmp.gt.f32.partialorder %v5504_v16, 20.0  ;;  %v2320_v14 = vmul.f32 1.442695, %v2288_v37 }
 0x323   : > { %v2326_v35 = vmul.f32 1.442695, %v2291_v4  ;;  %3559 = vpow2.f32 %v2324_v10  ;;  %v2289_v58 = vsel %vm2257_vm1, 0.0, %v5504_v16 }
 0x324   : > { %3561 = vpow2.f32 %v2320_v14  ;;  %v2322_v52 = vmul.f32 1.442695, %v2289_v58 }
 0x325   : > { %3563 = vpow2.f32 %v2326_v35 }
 0x326   : > { %3565 = vpow2.f32 %v2322_v52 }
 0x32d   : > { %v3560_v19 = vpop.eup %3559  ;;  %v3241_v24 = vpop.f32.mrb[20].mxu0 }
 0x32e   : > { %v3562_v18 = vpop.eup %3561  ;;  %v2402_v44 = vadd.f32 1.0, %v3560_v19  ;;  %v5522_v41 = vadd.f32 %v3241_v24, %v5479_v46  ;;  %v2113_v26 = vpop.f32.mrb[21].mxu0  ;;  %v2405_v31 = vmul.f32 -0.5, %v3560_v19  ;;  %v2408_v20 = vand.u32 2147483647, %v3560_v19 }
 0x32f   : > { %v2384_v50 = vadd.f32 1.0, %v3562_v18  ;;  %v5524_v7 = vpop.eup %3563  ;;  %v5527_v12 = vadd.f32 %v5479_v46, %v2113_v26  ;;  %v3242_v6 = vpop.f32.mrb[22].mxu0  ;;  %v2387_v11 = vmul.f32 -0.5, %v3562_v18  ;;  %v2390_v32 = vand.u32 2147483647, %v3562_v18 }
 0x330   : > { %3567 = vlog2.f32 %v2402_v44  ;;  %v5530_v40 = vmul.f32 100.0, %v5522_v41  ;;  %v5533_v47 = vadd.f32 %v3242_v6, %v5479_v46  ;;  %v2116_v22 = vpop.f32.mrb[23].mxu0  ;;  %v2411_v43 = vadd.f32 1.0, %v5524_v7  ;;  %v5553_v8 = vpop.eup %3565 }
 0x331   : > { %3569 = vlog2.f32 %v2384_v50  ;;  %v5536_v55 = vmul.f32 100.0, %v5527_v12  ;;  %v5539_v59 = vadd.f32 %v5479_v46, %v2116_v22  ;;  %v2406_v27 = vadd.f32 1.0, %v2405_v31 }
 0x332   : > { %vm2262_vm5 = vcmp.gt.f32.partialorder %v5530_v40, 20.0  ;;  %v5543_v60 = vmul.f32 100.0, %v5533_v47  ;;  %3571 = vlog2.f32 %v2411_v43  ;;  %v2388_v25 = vadd.f32 1.0, %v2387_v11 }
 0x333   : > { %v2294_v34 = vsel %vm2262_vm5, 0.0, %v5530_v40  ;;  %vm2260_vm7 = vcmp.gt.f32.partialorder %v5536_v55, 20.0  ;;  %v5551_v42 = vmul.f32 100.0, %v5539_v59  ;;  %v2414_v17 = vmul.f32 -0.5, %v5524_v7 }
 0x334   : > { %v2332_v3 = vmul.f32 1.442695, %v2294_v34  ;;  %v2292_v63 = vsel %vm2260_vm7, 0.0, %v5536_v55  ;;  %vm2263_vm6 = vcmp.gt.f32.partialorder %v5543_v60, 20.0  ;;  %v2393_v39 = vadd.f32 1.0, %v5553_v8 }
 0x335   : > { %v2328_v28 = vmul.f32 1.442695, %v2292_v63  ;;  %v2295_v36 = vsel %vm2263_vm6, 0.0, %v5543_v60  ;;  %vm2261_vm4 = vcmp.gt.f32.partialorder %v5551_v42, 20.0  ;;  %v2407_v54 = vmul.f32 %v3560_v19, %v2406_v27 }
 0x336   : > { %3573 = vpow2.f32 %v2332_v3  ;;  %v2334_v56 = vmul.f32 1.442695, %v2295_v36  ;;  %v2293_v53 = vsel %vm2261_vm4, 0.0, %v5551_v42  ;;  %vm2409_vm15 = vcmp.lt.f32.partialorder %v2408_v20, 0.0004427343 }
 0x337   : > { %3575 = vpow2.f32 %v2328_v28  ;;  %v2330_v45 = vmul.f32 1.442695, %v2293_v53  ;;  %v2389_v23 = vmul.f32 %v3562_v18, %v2388_v25  ;;  %v2415_v0 = vadd.f32 1.0, %v2414_v17 }
 0x338   : > { %3577 = vpow2.f32 %v2334_v56  ;;  %vm2391_vm3 = vcmp.lt.f32.partialorder %v2390_v32, 0.0004427343  ;;  %v2417_v2 = vand.u32 2147483647, %v5524_v7  ;;  %v2396_v33 = vmul.f32 -0.5, %v5553_v8 }
 0x339   : > { %3579 = vlog2.f32 %v2393_v39  ;;  %v2416_v35 = vmul.f32 %v5524_v7, %v2415_v0  ;;  %v2399_v48 = vand.u32 2147483647, %v5553_v8 }
 0x33a   : > { %v3568_v62 = vpop.eup %3567  ;;  %3581 = vpow2.f32 %v2330_v45  ;;  %vm2418_vm13 = vcmp.lt.f32.partialorder %v2417_v2, 0.0004427343  ;;  %v2397_v18 = vadd.f32 1.0, %v2396_v33 }
 0x33b   : > { %v3570_v29 = vpop.eup %3569  ;;  %v2404_v49 = vmul.f32 0.6931472, %v3568_v62  ;;  %vm2400_vm12 = vcmp.lt.f32.partialorder %v2399_v48, 0.0004427343 }
 0x33c   : > { %v2386_v9 = vmul.f32 0.6931472, %v3570_v29  ;;  %v3572_v10 = vpop.eup %3571  ;;  %v2398_v15 = vmul.f32 %v5553_v8, %v2397_v18 }
 0x33d   : > { %v2410_v38 = vsel %vm2409_vm15, %v2407_v54, %v2404_v49  ;;  %v2413_v14 = vmul.f32 0.6931472, %v3572_v10 }
 0x33e   : > { %v2674_v1 = vmul.f32 0.01, %v2410_v38  ;;  %v2392_v5 = vsel %vm2391_vm3, %v2389_v23, %v2386_v9 }
 0x33f   : > { %v2672_v37 = vmul.f32 0.01, %v2392_v5  ;;  %v2419_v26 = vsel %vm2418_vm13, %v2416_v35, %v2413_v14 }
 0x340   : > { %v2706_v4 = vsel %vm2258_vm2, %v5482_v61, %v2674_v1  ;;  %v3574_v58 = vpop.eup %3573  ;;  %v2675_v61 = vmul.f32 0.01, %v2419_v26 }
 0x341   : > { %v2745_v52 = vmul.f32 %v5573_v21, %v2706_v4  ;;  %v2704_v19 = vsel %vm2256_vm10, %v5485_v51, %v2672_v37  ;;  %v3576_v24 = vpop.eup %3575  ;;  %v2438_v50 = vadd.f32 1.0, %v3574_v58  ;;  %v2441_v11 = vmul.f32 -0.5, %v3574_v58 }
 0x342   : > { %v2743_v44 = vmul.f32 %v5573_v21, %v2704_v19  ;;  %v3578_v6 = vpop.eup %3577  ;;  %v2420_v7 = vadd.f32 1.0, %v3576_v24  ;;  %v2707_v51 = vsel %vm2259_vm11, %v5491_v57, %v2675_v61  ;;  %v2423_v63 = vmul.f32 -0.5, %v3576_v24 }
 0x343   : > { %2779 = vadd.xlane.f32.xlu1 %v2745_v52  ;;  %3583 = vlog2.f32 %v2438_v50  ;;  %v2447_v22 = vadd.f32 1.0, %v3578_v6  ;;  %v3580_v31 = vpop.eup %3579  ;;  %v2746_v43 = vmul.f32 %v5573_v21, %v2707_v51  ;;  %v2450_v3 = vmul.f32 -0.5, %v3578_v6 }
 0x344   : > { %2775 = vadd.xlane.f32.xlu0 %v2743_v44  ;;  %3585 = vlog2.f32 %v2420_v7  ;;  %v2395_v34 = vmul.f32 0.6931472, %v3580_v31  ;;  %v2444_v36 = vand.u32 2147483647, %v3574_v58  ;;  %v5590_v20 = vpop.eup %3581  ;;  %v2442_v27 = vadd.f32 1.0, %v2441_v11 }
 0x345   : > { %3587 = vlog2.f32 %v2447_v22  ;;  %v2453_v13 = vand.u32 2147483647, %v3578_v6  ;;  %v2451_v57 = vadd.f32 1.0, %v2450_v3  ;;  %v2424_v25 = vadd.f32 1.0, %v2423_v63 }
 0x346   : > { %v2401_v28 = vsel %vm2400_vm12, %v2398_v15, %v2395_v34  ;;  %v2426_v39 = vand.u32 2147483647, %v3576_v24  ;;  %v2429_v32 = vadd.f32 1.0, %v5590_v20  ;;  %v2443_v45 = vmul.f32 %v3574_v58, %v2442_v27 }
 0x347   : > { %2781 = vadd.xlane.f32.xlu1 %v2746_v43  ;;  %v2673_v56 = vmul.f32 0.01, %v2401_v28  ;;  %vm5600_vm8 = vcmp.lt.f32.partialorder %v2444_v36, 0.0004427343  ;;  %vm5604_vm9 = vcmp.lt.f32.partialorder %v2453_v13, 0.0004427343  ;;  %v2452_v23 = vmul.f32 %v3578_v6, %v2451_v57 }
 0x348   : > { %v2432_v0 = vmul.f32 -0.5, %v5590_v20  ;;  %v2435_v38 = vand.u32 2147483647, %v5590_v20  ;;  %v2425_v37 = vmul.f32 %v3576_v24, %v2424_v25  ;;  %vm5625_vm0 = vcmp.lt.f32.partialorder %v2426_v39, 0.0004427343 }
 0x349   : > { %v2705_v8 = vsel %vm2257_vm1, %v5497_v30, %v2673_v56  ;;  %3589 = vlog2.f32 %v2429_v32 }
 0x34a   : > { %v2744_v17 = vmul.f32 %v5573_v21, %v2705_v8  ;;  %v2433_v40 = vadd.f32 1.0, %v2432_v0 }
 0x34c   : > { %2777 = vadd.xlane.f32.xlu0 %v2744_v17 }
 0x34d   : > { %v3245_v53 = vpop.f32.mrb[24].mxu0  ;;  %v3584_v30 = vpop.eup %3583 }
 0x34e   : > { %v5598_v62 = vadd.f32 %v3245_v53, %v5479_v46  ;;  %v2129_v29 = vpop.f32.mrb[25].mxu0  ;;  %v3586_v2 = vpop.eup %3585  ;;  %v2440_v10 = vmul.f32 0.6931472, %v3584_v30 }
 0x34f   : > { %v5609_v16 = vadd.f32 %v5479_v46, %v2129_v29  ;;  %v3246_v9 = vpop.f32.mrb[26].mxu0  ;;  %v3588_v4 = vpop.eup %3587  ;;  %v2422_v61 = vmul.f32 0.6931472, %v3586_v2  ;;  %v2434_v2 = vmul.f32 %v5590_v20, %v2433_v40 }
 0x350   : > { %v5614_v33 = vmul.f32 100.0, %v5598_v62  ;;  %v5617_v1 = vadd.f32 %v3246_v9, %v5479_v46  ;;  %v2132_v5 = vpop.f32.mrb[27].mxu0  ;;  %v2446_v19 = vsel %vm5600_vm8, %v2443_v45, %v2440_v10  ;;  %v2449_v18 = vmul.f32 0.6931472, %v3588_v4 }
 0x351   : > { %v5620_v14 = vmul.f32 100.0, %v5609_v16  ;;  %v5623_v35 = vadd.f32 %v5479_v46, %v2132_v5  ;;  %v2678_v26 = vmul.f32 0.01, %v2446_v19  ;;  %v2428_v25 = vsel %vm5625_vm0, %v2425_v37, %v2422_v61 }
 0x352   : > { %vm2266_vm14 = vcmp.gt.f32.partialorder %v5614_v33, 20.0  ;;  %v5631_v52 = vmul.f32 100.0, %v5617_v1  ;;  %v2455_v31 = vsel %vm5604_vm9, %v2452_v23, %v2449_v18  ;;  %v2676_v39 = vmul.f32 0.01, %v2428_v25 }
 0x353   : > { %v2298_v24 = vsel %vm2266_vm14, 0.0, %v5614_v33  ;;  %vm2264_vm2 = vcmp.gt.f32.partialorder %v5620_v14, 20.0  ;;  %v5640_v44 = vmul.f32 100.0, %v5623_v35  ;;  %v2710_v22 = vsel %vm2262_vm5, %v5522_v41, %v2678_v26  ;;  %v3590_v32 = vpop.eup %3589 }
 0x354   : > { %v2340_v50 = vmul.f32 1.442695, %v2298_v24  ;;  %v2296_v6 = vsel %vm2264_vm2, 0.0, %v5620_v14  ;;  %vm2267_vm10 = vcmp.gt.f32.partialorder %v5631_v52, 20.0  ;;  %v2749_v41 = vmul.f32 %v5573_v21, %v2710_v22 }
 0x355   : > { %v2299_v48 = vsel %vm2267_vm10, 0.0, %v5631_v52  ;;  %vm2265_vm11 = vcmp.gt.f32.partialorder %v5640_v44, 20.0  ;;  %v3249_v7 = vpop.f32.mrb[28].mxu0  ;;  %v2336_v34 = vmul.f32 1.442695, %v2296_v6 }
 0x356   : > { %3591 = vpow2.f32 %v2340_v50  ;;  %v2342_v51 = vmul.f32 1.442695, %v2299_v48  ;;  %v2297_v15 = vsel %vm2265_vm11, 0.0, %v5640_v44  ;;  %v5659_v11 = vadd.f32 %v3249_v7, %v5479_v46  ;;  %v2145_v43 = vpop.f32.mrb[29].mxu0  ;;  %2787 = vadd.xlane.f32.xlu0 %v2749_v41 }
 0x357   : > { %v5662_v3 = vadd.f32 %v5479_v46, %v2145_v43  ;;  %v3250_v63 = vpop.f32.mrb[30].mxu0  ;;  %v2679_v27 = vmul.f32 0.01, %v2455_v31  ;;  %v2338_v13 = vmul.f32 1.442695, %v2297_v15 }
 0x358   : > { %3593 = vpow2.f32 %v2342_v51  ;;  %v5666_v28 = vmul.f32 100.0, %v5659_v11  ;;  %v5669_v36 = vadd.f32 %v3250_v63, %v5479_v46  ;;  %v2148_v56 = vpop.f32.mrb[31].mxu0  ;;  %v2431_v0 = vmul.f32 0.6931472, %v3590_v32 }
 0x359   : > { %v5672_v57 = vmul.f32 100.0, %v5662_v3  ;;  %v5675_v8 = vadd.f32 %v5479_v46, %v2148_v56  ;;  %v2711_v17 = vsel %vm2263_vm6, %v5533_v47, %v2679_v27  ;;  %3595 = vpow2.f32 %v2336_v34 }
 0x35a   : > { %vm2270_vm1 = vcmp.gt.f32.partialorder %v5666_v28, 20.0  ;;  %v5681_v53 = vmul.f32 100.0, %v5669_v36  ;;  %v2750_v49 = vmul.f32 %v5573_v21, %v2711_v17  ;;  %v2708_v47 = vsel %vm2260_vm7, %v5527_v12, %v2676_v39 }
 0x35b   : > { %v2302_v29 = vsel %vm2270_vm1, 0.0, %v5666_v28  ;;  %vm2268_vm5 = vcmp.gt.f32.partialorder %v5672_v57, 20.0  ;;  %v5691_v45 = vmul.f32 100.0, %v5675_v8  ;;  %v2747_v9 = vmul.f32 %v5573_v21, %v2708_v47 }
 0x35c   : > { %v2300_v54 = vsel %vm2268_vm5, 0.0, %v5672_v57  ;;  %vm2271_vm6 = vcmp.gt.f32.partialorder %v5681_v53, 20.0  ;;  %v2348_v60 = vmul.f32 1.442695, %v2302_v29  ;;  %2789 = vadd.xlane.f32.xlu1 %v2750_v49  ;;  %3597 = vpow2.f32 %v2338_v13 }
 0x35d   : > { %v2303_v30 = vsel %vm2271_vm6, 0.0, %v5681_v53  ;;  %vm2269_vm15 = vcmp.gt.f32.partialorder %v5691_v45, 20.0  ;;  %v2344_v23 = vmul.f32 1.442695, %v2300_v54  ;;  %2783 = vadd.xlane.f32.xlu0 %v2747_v9  ;;  %vm2436_vm7 = vcmp.lt.f32.partialorder %v2435_v38, 0.0004427343 }
 0x35e   : > { %v2301_v55 = vsel %vm2269_vm15, 0.0, %v5691_v45  ;;  %v2350_v5 = vmul.f32 1.442695, %v2303_v30  ;;  %v2437_v37 = vsel %vm2436_vm7, %v2434_v2, %v2431_v0  ;;  %3599 = vpow2.f32 %v2348_v60 }
 0x35f   : > { %v2677_v19 = vmul.f32 0.01, %v2437_v37  ;;  %3601 = vpow2.f32 %v2344_v23  ;;  %v2346_v26 = vmul.f32 1.442695, %v2301_v55 }
 0x360   : > { %v3592_v12 = vpop.eup %3591  ;;  %v3253_v10 = vpop.f32.mrb[32].mxu0 }
 0x361   : > { %v5713_v4 = vadd.f32 %v3253_v10, %v5479_v46  ;;  %v2161_v58 = vpop.f32.mrb[33].mxu0  ;;  %v2474_v18 = vadd.f32 1.0, %v3592_v12  ;;  %v2477_v38 = vmul.f32 -0.5, %v3592_v12  ;;  %v2709_v7 = vsel %vm2261_vm4, %v5539_v59, %v2677_v19 }
 0x362   : > { %v5715_v24 = vpop.eup %3593  ;;  %v5718_v50 = vadd.f32 %v5479_v46, %v2161_v58  ;;  %v3254_v20 = vpop.f32.mrb[34].mxu0  ;;  %v2748_v51 = vmul.f32 %v5573_v21, %v2709_v7  ;;  %v2480_v43 = vand.u32 2147483647, %v3592_v12 }
 0x363   : > { %v5721_v6 = vmul.f32 100.0, %v5713_v4  ;;  %v5724_v61 = vadd.f32 %v3254_v20, %v5479_v46  ;;  %v2164_v48 = vpop.f32.mrb[35].mxu0  ;;  %3603 = vlog2.f32 %v2474_v18  ;;  %v2483_v34 = vadd.f32 1.0, %v5715_v24  ;;  %v5741_v42 = vpop.eup %3595 }
 0x364   : > { %3605 = vpow2.f32 %v2350_v5  ;;  %v5730_v22 = vmul.f32 100.0, %v5718_v50  ;;  %v5733_v31 = vadd.f32 %v5479_v46, %v2164_v48  ;;  %2785 = vadd.xlane.f32.xlu1 %v2748_v51  ;;  %v2478_v41 = vadd.f32 1.0, %v2477_v38 }
 0x365   : > { %vm2274_vm3 = vcmp.gt.f32.partialorder %v5721_v6, 20.0  ;;  %v5738_v15 = vmul.f32 100.0, %v5724_v61  ;;  %3607 = vlog2.f32 %v2483_v34  ;;  %v2486_v17 = vmul.f32 -0.5, %v5715_v24 }
 0x366   : > { %v2306_v59 = vsel %vm2274_vm3, 0.0, %v5721_v6  ;;  %vm2272_vm4 = vcmp.gt.f32.partialorder %v5730_v22, 20.0  ;;  %v5748_v63 = vmul.f32 100.0, %v5733_v31  ;;  %v5754_v27 = vpop.eup %3597  ;;  %3609 = vpow2.f32 %v2346_v26 }
 0x367   : > { %v2356_v40 = vmul.f32 1.442695, %v2306_v59  ;;  %v2304_v56 = vsel %vm2272_vm4, 0.0, %v5730_v22  ;;  %vm2275_vm13 = vcmp.gt.f32.partialorder %v5738_v15, 20.0  ;;  %v2489_v32 = vand.u32 2147483647, %v5715_v24 }
 0x368   : > { %v2352_v13 = vmul.f32 1.442695, %v2304_v56  ;;  %v2307_v25 = vsel %vm2275_vm13, 0.0, %v5738_v15  ;;  %vm2273_vm12 = vcmp.gt.f32.partialorder %v5748_v63, 20.0  ;;  %v2456_v29 = vadd.f32 1.0, %v5741_v42  ;;  %v5766_v54 = vpop.eup %3599 }
 0x369   : > { %v2358_v39 = vmul.f32 1.442695, %v2307_v25  ;;  %3611 = vpow2.f32 %v2356_v40  ;;  %v2305_v49 = vsel %vm2273_vm12, 0.0, %v5748_v63  ;;  %v2487_v47 = vadd.f32 1.0, %v2486_v17  ;;  %v5770_v9 = vpop.eup %3601 }
 0x36a   : > { %3613 = vpow2.f32 %v2352_v13  ;;  %v2459_v60 = vmul.f32 -0.5, %v5741_v42  ;;  %v2465_v30 = vadd.f32 1.0, %v5754_v27  ;;  %v2479_v23 = vmul.f32 %v3592_v12, %v2478_v41 }
 0x36b   : > { %3615 = vpow2.f32 %v2358_v39  ;;  %vm5772_vm8 = vcmp.lt.f32.partialorder %v2480_v43, 0.0004427343  ;;  %v2354_v55 = vmul.f32 1.442695, %v2305_v49  ;;  %vm5776_vm9 = vcmp.lt.f32.partialorder %v2489_v32, 0.0004427343 }
 0x36c   : > { %3617 = vlog2.f32 %v2456_v29  ;;  %v2468_v37 = vmul.f32 -0.5, %v5754_v27  ;;  %v2510_v26 = vadd.f32 1.0, %v5766_v54  ;;  %v2488_v48 = vmul.f32 %v5715_v24, %v2487_v47 }
 0x36d   : > { %v3604_v2 = vpop.eup %3603  ;;  %v3257_v5 = vpop.f32.mrb[36].mxu0  ;;  %3619 = vlog2.f32 %v2465_v30  ;;  %v2460_v7 = vadd.f32 1.0, %v2459_v60  ;;  %v2462_v51 = vand.u32 2147483647, %v5741_v42  ;;  %v2471_v40 = vand.u32 2147483647, %v5754_v27 }
 0x36e   : > { %v5781_v58 = vpop.eup %3605  ;;  %v5784_v19 = vadd.f32 %v3257_v5, %v5479_v46  ;;  %v2177_v12 = vpop.f32.mrb[37].mxu0  ;;  %v2476_v18 = vmul.f32 0.6931472, %v3604_v2  ;;  %v2469_v17 = vadd.f32 1.0, %v2468_v37  ;;  %3621 = vlog2.f32 %v2510_v26 }
 0x36f   : > { %v5788_v20 = vadd.f32 %v5479_v46, %v2177_v12  ;;  %v3258_v38 = vpop.f32.mrb[38].mxu0  ;;  %v3608_v56 = vpop.eup %3607  ;;  %v2513_v60 = vmul.f32 -0.5, %v5766_v54  ;;  %3623 = vpow2.f32 %v2354_v55  ;;  %v2461_v33 = vmul.f32 %v5741_v42, %v2460_v7 }
 0x370   : > { %v5793_v43 = vmul.f32 100.0, %v5784_v19  ;;  %v5796_v34 = vadd.f32 %v3258_v38, %v5479_v46  ;;  %v2180_v59 = vpop.f32.mrb[39].mxu0  ;;  %v2482_v41 = vsel %vm5772_vm8, %v2479_v23, %v2476_v18  ;;  %v2485_v32 = vmul.f32 0.6931472, %v3608_v56  ;;  %v5811_v29 = vpop.eup %3609 }
 0x371   : > { %v5802_v13 = vmul.f32 100.0, %v5788_v20  ;;  %v5805_v24 = vadd.f32 %v5479_v46, %v2180_v59  ;;  %v2682_v25 = vmul.f32 0.01, %v2482_v41  ;;  %v2470_v26 = vmul.f32 %v5754_v27, %v2469_v17 }
 0x372   : > { %vm6420_vm0 = vcmp.gt.f32.partialorder %v5793_v43, 20.0  ;;  %v5809_v39 = vmul.f32 100.0, %v5796_v34  ;;  %v2514_v59 = vadd.f32 1.0, %v2513_v60  ;;  %v2519_v14 = vadd.f32 1.0, %v5781_v58 }
 0x373   : > { %vm6421_vm7 = vcmp.gt.f32.partialorder %v5802_v13, 20.0  ;;  %v5815_v49 = vmul.f32 100.0, %v5805_v24  ;;  %v2714_v47 = vsel %vm2266_vm14, %v5598_v62, %v2682_v25  ;;  %v5821_v30 = vpop.eup %3611  ;;  %v2310_v23 = vsel %vm6420_vm0, 0.0, %v5793_v43 }
 0x374   : > { %v2308_v0 = vsel %vm6421_vm7, 0.0, %v5802_v13  ;;  %v2753_v2 = vmul.f32 %v5573_v21, %v2714_v47  ;;  %v5830_v5 = vpop.eup %3613  ;;  %vm2279_vm8 = vcmp.gt.f32.partialorder %v5809_v39, 20.0  ;;  %v2491_v62 = vsel %vm5776_vm9, %v2488_v48, %v2485_v32 }
 0x375   : > { %vm5836_vm14 = vcmp.lt.f32.partialorder %v2462_v51, 0.0004427343  ;;  %v5840_v37 = vpop.eup %3615  ;;  %vm2277_vm0 = vcmp.gt.f32.partialorder %v5815_v49, 20.0  ;;  %v2683_v18 = vmul.f32 0.01, %v2491_v62  ;;  %v2311_v56 = vsel %vm2279_vm8, 0.0, %v5809_v39 }
 0x376   : > { %v3261_v12 = vpop.f32.mrb[40].mxu0  ;;  %2795 = vadd.xlane.f32.xlu0 %v2753_v2  ;;  %vm5844_vm7 = vcmp.lt.f32.partialorder %v2471_v40, 0.0004427343  ;;  %v3618_v10 = vpop.eup %3617  ;;  %v2364_v48 = vmul.f32 1.442695, %v2310_v23  ;;  %v2309_v32 = vsel %vm2277_vm0, 0.0, %v5815_v49 }
 0x377   : > { %v2360_v42 = vmul.f32 1.442695, %v2308_v0  ;;  %v5849_v7 = vadd.f32 %v3261_v12, %v5479_v46  ;;  %v2193_v51 = vpop.f32.mrb[41].mxu0  ;;  %v3620_v41 = vpop.eup %3619  ;;  %v2715_v40 = vsel %vm2267_vm10, %v5617_v1, %v2683_v18  ;;  %v2458_v17 = vmul.f32 0.6931472, %v3618_v10 }
 0x378   : > { %v5855_v25 = vadd.f32 %v5479_v46, %v2193_v51  ;;  %v3262_v27 = vpop.f32.mrb[42].mxu0  ;;  %v2754_v0 = vmul.f32 %v5573_v21, %v2715_v40  ;;  %v2467_v62 = vmul.f32 0.6931472, %v3620_v41  ;;  %v2366_v12 = vmul.f32 1.442695, %v2311_v56  ;;  %v3622_v51 = vpop.eup %3621 }
 0x379   : > { %v5864_v47 = vmul.f32 100.0, %v5849_v7  ;;  %v5867_v60 = vadd.f32 %v3262_v27, %v5479_v46  ;;  %v2196_v23 = vpop.f32.mrb[43].mxu0  ;;  %v2464_v1 = vsel %vm5836_vm14, %v2461_v33, %v2458_v17  ;;  %3625 = vpow2.f32 %v2364_v48  ;;  %v5894_v56 = vpop.eup %3623 }
 0x37a   : > { %v5871_v2 = vmul.f32 100.0, %v5855_v25  ;;  %v5874_v52 = vadd.f32 %v5479_v46, %v2196_v23  ;;  %2797 = vadd.xlane.f32.xlu1 %v2754_v0  ;;  %v2680_v10 = vmul.f32 0.01, %v2464_v1  ;;  %v2473_v33 = vsel %vm5844_vm7, %v2470_v26, %v2467_v62 }
 0x37b   : > { %vm2282_vm10 = vcmp.gt.f32.partialorder %v5864_v47, 20.0  ;;  %v5880_v18 = vmul.f32 100.0, %v5867_v60  ;;  %v2362_v55 = vmul.f32 1.442695, %v2309_v32  ;;  %3627 = vpow2.f32 %v2360_v42 }
 0x37c   : > { %6727 = vst [vmem:[#allocation12_spill] sm:$0xff] %v5871_v2  ;;  %6728 = vst [vmem:[#allocation14_spill] sm:$0xff] %v5874_v52  ;;  %v2314_v27 = vsel %vm2282_vm10, 0.0, %v5864_v47  ;;  %vm2280_vm9 = vcmp.gt.f32.partialorder %v5871_v2, 20.0  ;;  %v5887_v40 = vmul.f32 100.0, %v5874_v52  ;;  %v2712_v41 = vsel %vm2264_vm2, %v5609_v16, %v2680_v10 }
 0x37d   : > { %v2372_v17 = vmul.f32 1.442695, %v2314_v27  ;;  %v2312_v23 = vsel %vm2280_vm9, 0.0, %v5871_v2  ;;  %vm2283_vm14 = vcmp.gt.f32.partialorder %v5880_v18, 20.0  ;;  %v2751_v0 = vmul.f32 %v5573_v21, %v2712_v41 }
 0x37e   : > { %6729 = vst [vmem:[#allocation11_spill] sm:$0xff] %v5887_v40  ;;  %v2681_v38 = vmul.f32 0.01, %v2473_v33  ;;  %v2512_v26 = vmul.f32 0.6931472, %v3622_v51  ;;  %v2515_v48 = vmul.f32 %v5766_v54, %v2514_v59  ;;  %3629 = vpow2.f32 %v2366_v12 }
 0x37f   : > { %vm6435_vm7 = vcmp.gt.f32.partialorder %v5887_v40, 20.0  ;;  %2791 = vadd.xlane.f32.xlu0 %v2751_v0  ;;  %v2516_v16 = vand.u32 2147483647, %v5766_v54  ;;  %3631 = vpow2.f32 %v2362_v55  ;;  %v2368_v32 = vmul.f32 1.442695, %v2312_v23 }
 0x380   : > { %v2315_v1 = vsel %vm2283_vm14, 0.0, %v5880_v18  ;;  %v2713_v42 = vsel %vm2265_vm11, %v5623_v35, %v2681_v38  ;;  %3633 = vpow2.f32 %v2372_v17  ;;  %v2492_v12 = vadd.f32 1.0, %v5770_v9 }
 0x381   : > { %v2752_v62 = vmul.f32 %v5573_v21, %v2713_v42  ;;  %vm2517_vm2 = vcmp.lt.f32.partialorder %v2516_v16, 0.0004427343  ;;  %v2313_v54 = vsel %vm6435_vm7, 0.0, %v5887_v40  ;;  %3635 = vlog2.f32 %v2519_v14 }
 0x382   : > { %v3265_v59 = vpop.f32.mrb[44].mxu0  ;;  %v2518_v27 = vsel %vm2517_vm2, %v2515_v48, %v2512_v26  ;;  %v2522_v55 = vmul.f32 -0.5, %v5781_v58  ;;  %3637 = vlog2.f32 %v2492_v12  ;;  %v2374_v41 = vmul.f32 1.442695, %v2315_v1 }
 0x383   : > { %v5917_v10 = vadd.f32 %v3265_v59, %v5479_v46  ;;  %v2209_v51 = vpop.f32.mrb[45].mxu0  ;;  %2793 = vadd.xlane.f32.xlu1 %v2752_v62  ;;  %v2686_v33 = vmul.f32 0.01, %v2518_v27  ;;  %v2495_v38 = vmul.f32 -0.5, %v5770_v9  ;;  %v2370_v26 = vmul.f32 1.442695, %v2313_v54  ;;  %v5939_v1 = vpop.eup %3625 }
 0x384   : > { %v5920_v44 = vadd.f32 %v5479_v46, %v2209_v51  ;;  %v3266_v35 = vpop.f32.mrb[46].mxu0  ;;  %v2525_v62 = vand.u32 2147483647, %v5781_v58  ;;  %3639 = vpow2.f32 %v2368_v32  ;;  %v2582_v57 = vadd.f32 1.0, %v5939_v1 }
 0x385   : > { %6730 = vst [vmem:[#allocation13_spill] sm:$0xff] %v5917_v10  ;;  %v5924_v17 = vmul.f32 100.0, %v5917_v10  ;;  %v5927_v23 = vadd.f32 %v3266_v35, %v5479_v46  ;;  %v2212_v0 = vpop.f32.mrb[47].mxu0  ;;  %v2718_v14 = vsel %vm2270_vm1, %v5659_v11, %v2686_v33  ;;  %v2523_v11 = vadd.f32 1.0, %v2522_v55  ;;  %v5954_v12 = vpop.eup %3627 }
 0x386   : > { %6731 = vst [vmem:[#allocation46_spill] sm:$0xff] %v5920_v44  ;;  %v5931_v48 = vmul.f32 100.0, %v5920_v44  ;;  %v5934_v16 = vadd.f32 %v5479_v46, %v2212_v0  ;;  %v2757_v59 = vmul.f32 %v5573_v21, %v2718_v14  ;;  %v2496_v27 = vadd.f32 1.0, %v2495_v38 }
 0x387   : > { %6732 = vst [vmem:[#allocation50_spill] sm:$0xff] %v5924_v17  ;;  %6733 = vst [vmem:[#allocation49_spill] sm:$0xff] %v5927_v23  ;;  %vm6422_vm11 = vcmp.gt.f32.partialorder %v5924_v17, 20.0  ;;  %v5943_v42 = vmul.f32 100.0, %v5927_v23  ;;  %v2498_v35 = vand.u32 2147483647, %v5770_v9  ;;  %3641 = vpow2.f32 %v2374_v41 }
 0x388   : > { %6734 = vst [vmem:[#allocation17_spill] sm:$0xff] %v5931_v48  ;;  %6735 = vst [vmem:[#allocation18_spill] sm:$0xff] %v5934_v16  ;;  %v2318_v46 = vsel %vm6422_vm11, 0.0, %v5924_v17  ;;  %vm6423_vm2 = vcmp.gt.f32.partialorder %v5931_v48, 20.0  ;;  %v5952_v28 = vmul.f32 100.0, %v5934_v16  ;;  %2803 = vadd.xlane.f32.xlu0 %v2757_v59  ;;  %v5960_v33 = vpop.eup %3629  ;;  %v2501_v59 = vadd.f32 1.0, %v5811_v29 }
 0x389   : > { %6736 = vst [vmem:[#allocation15_spill] sm:$0xff] %v5943_v42  ;;  %v2380_v54 = vmul.f32 1.442695, %v2318_v46  ;;  %v2316_v51 = vsel %vm6423_vm2, 0.0, %v5931_v48  ;;  %vm6434_vm1 = vcmp.gt.f32.partialorder %v5943_v42, 20.0  ;;  %v5964_v55 = vpop.eup %3631  ;;  %v2504_v38 = vmul.f32 -0.5, %v5811_v29 }
 0x38a   : > { %6737 = vst [vmem:[#allocation16_spill] sm:$0xff] %v5952_v28  ;;  %v2376_v0 = vmul.f32 1.442695, %v2316_v51  ;;  %vm6427_vm11 = vcmp.gt.f32.partialorder %v5952_v28, 20.0  ;;  %v5971_v46 = vpop.eup %3633  ;;  %3643 = vpow2.f32 %v2370_v26  ;;  %v2524_v32 = vmul.f32 %v5781_v58, %v2523_v11 }
 0x38b   : > { %v2317_v14 = vsel %vm6427_vm11, 0.0, %v5952_v28  ;;  %vm5974_vm2 = vcmp.lt.f32.partialorder %v2525_v62, 0.0004427343  ;;  %v2546_v23 = vadd.f32 1.0, %v5821_v30  ;;  %v3636_v41 = vpop.eup %3635  ;;  %3645 = vpow2.f32 %v2380_v54 }
 0x38c   : > { %v2319_v17 = vsel %vm6434_vm1, 0.0, %v5943_v42  ;;  %v2497_v10 = vmul.f32 %v5770_v9, %v2496_v27  ;;  %vm5983_vm11 = vcmp.lt.f32.partialorder %v2498_v35, 0.0004427343  ;;  %v3638_v26 = vpop.eup %3637  ;;  %3647 = vpow2.f32 %v2376_v0 }
 0x38d   : > { %v2378_v58 = vmul.f32 1.442695, %v2317_v14  ;;  %v2521_v62 = vmul.f32 0.6931472, %v3636_v41  ;;  %v2555_v11 = vadd.f32 1.0, %v5840_v37  ;;  %3649 = vlog2.f32 %v2501_v59 }
 0x38e   : > { %v2494_v16 = vmul.f32 0.6931472, %v3638_v26  ;;  %v2505_v48 = vadd.f32 1.0, %v2504_v38  ;;  %v2507_v54 = vand.u32 2147483647, %v5811_v29  ;;  %3651 = vlog2.f32 %v2546_v23 }
 0x38f   : > { %v2527_v42 = vsel %vm5974_vm2, %v2524_v32, %v2521_v62  ;;  %v2549_v9 = vmul.f32 -0.5, %v5821_v30  ;;  %v2558_v27 = vmul.f32 -0.5, %v5840_v37  ;;  %v2552_v14 = vand.u32 2147483647, %v5821_v30 }
 0x390   : > { %v2687_v35 = vmul.f32 0.01, %v2527_v42  ;;  %v2500_v0 = vsel %vm5983_vm11, %v2497_v10, %v2494_v16  ;;  %3653 = vlog2.f32 %v2555_v11  ;;  %v5996_v41 = vmul.f32 1.442695, %v2319_v17  ;;  %v6009_v17 = vpop.eup %3639 }
 0x391   : > { %3655 = vpow2.f32 %v2378_v58  ;;  %v2684_v59 = vmul.f32 0.01, %v2500_v0  ;;  %v2528_v38 = vadd.f32 1.0, %v5830_v5  ;;  %v2506_v32 = vmul.f32 %v5811_v29, %v2505_v48  ;;  %v6015_v26 = vpop.eup %3641 }
 0x392   : > { %v2719_v23 = vsel %vm2271_vm6, %v5669_v36, %v2687_v35  ;;  %vm6003_vm2 = vcmp.lt.f32.partialorder %v2507_v54, 0.0004427343  ;;  %v2531_v10 = vmul.f32 -0.5, %v5830_v5  ;;  %v2537_v16 = vadd.f32 1.0, %v5894_v56 }
 0x393   : > { %v2758_v28 = vmul.f32 %v5573_v21, %v2719_v23  ;;  %v2716_v51 = vsel %vm2268_vm5, %v5662_v3, %v2684_v59  ;;  %v2550_v53 = vadd.f32 1.0, %v2549_v9  ;;  %v2559_v36 = vadd.f32 1.0, %v2558_v27 }
 0x394   : > { %v2755_v29 = vmul.f32 %v5573_v21, %v2716_v51  ;;  %vm6018_vm6 = vcmp.lt.f32.partialorder %v2552_v14, 0.0004427343  ;;  %v2561_v58 = vand.u32 2147483647, %v5840_v37  ;;  %3657 = vlog2.f32 %v2528_v38  ;;  %v6023_v62 = vpop.eup %3643 }
 0x395   : > { %2805 = vadd.xlane.f32.xlu1 %v2758_v28  ;;  %v2534_v11 = vand.u32 2147483647, %v5830_v5  ;;  %3659 = vlog2.f32 %v2537_v16  ;;  %v2540_v3 = vmul.f32 -0.5, %v5894_v56  ;;  %v6028_v54 = vpop.eup %3645  ;;  %v2532_v9 = vadd.f32 1.0, %v2531_v10 }
 0x396   : > { %2799 = vadd.xlane.f32.xlu0 %v2755_v29  ;;  %v2543_v27 = vand.u32 2147483647, %v5894_v56  ;;  %v2585_v35 = vmul.f32 -0.5, %v5939_v1  ;;  %v2591_v0 = vadd.f32 1.0, %v5960_v33  ;;  %v6033_v14 = vpop.eup %3647  ;;  %v2551_v59 = vmul.f32 %v5821_v30, %v2550_v53 }
 0x397   : > { %v2560_v38 = vmul.f32 %v5840_v37, %v2559_v36  ;;  %3661 = vlog2.f32 %v2582_v57  ;;  %v2588_v23 = vand.u32 2147483647, %v5939_v1  ;;  %v3650_v16 = vpop.eup %3649  ;;  %vm6038_vm5 = vcmp.lt.f32.partialorder %v2561_v58, 0.0004427343 }
 0x398   : > { %v2541_v10 = vadd.f32 1.0, %v2540_v3  ;;  %3663 = vlog2.f32 %v2591_v0  ;;  %v2594_v51 = vmul.f32 -0.5, %v5960_v33  ;;  %v3652_v29 = vpop.eup %3651  ;;  %v2503_v44 = vmul.f32 0.6931472, %v3650_v16 }
 0x399   : > { %vm6043_vm11 = vcmp.lt.f32.partialorder %v2534_v11, 0.0004427343  ;;  %v2586_v30 = vadd.f32 1.0, %v2585_v35  ;;  %v2564_v37 = vadd.f32 1.0, %v5954_v12  ;;  %v2548_v36 = vmul.f32 0.6931472, %v3652_v29 }
 0x39a   : > { %v3654_v53 = vpop.eup %3653  ;;  %v2533_v58 = vmul.f32 %v5830_v5, %v2532_v9  ;;  %vm6049_vm1 = vcmp.lt.f32.partialorder %v2543_v27, 0.0004427343  ;;  %v2597_v3 = vand.u32 2147483647, %v5960_v33  ;;  %v2509_v11 = vsel %vm6003_vm2, %v2506_v32, %v2503_v44 }
 0x39b   : > { %v6054_v0 = vpop.eup %3655  ;;  %v2557_v16 = vmul.f32 0.6931472, %v3654_v53  ;;  %vm6058_vm7 = vcmp.lt.f32.partialorder %v2588_v23, 0.0004427343  ;;  %3665 = vlog2.f32 %v2564_v37  ;;  %v2685_v29 = vmul.f32 0.01, %v2509_v11 }
 0x39c   : > { %v2554_v5 = vsel %vm6018_vm6, %v2551_v59, %v2548_v36  ;;  %v2542_v9 = vmul.f32 %v5894_v56, %v2541_v10  ;;  %v2595_v27 = vadd.f32 1.0, %v2594_v51  ;;  %v2587_v42 = vmul.f32 %v5939_v1, %v2586_v30 }
 0x39d   : > { %v2690_v52 = vmul.f32 0.01, %v2554_v5  ;;  %v2563_v2 = vsel %vm6038_vm5, %v2560_v38, %v2557_v16  ;;  %v2573_v44 = vadd.f32 1.0, %v5964_v55  ;;  %v2717_v23 = vsel %vm2269_vm15, %v5675_v8, %v2685_v29 }
 0x39e   : > { %v3658_v32 = vpop.eup %3657  ;;  %v2691_v37 = vmul.f32 0.01, %v2563_v2  ;;  %vm6072_vm2 = vcmp.lt.f32.partialorder %v2597_v3, 0.0004427343  ;;  %v2567_v56 = vmul.f32 -0.5, %v5954_v12  ;;  %v2756_v28 = vmul.f32 %v5573_v21, %v2717_v23 }
 0x39f   : > { %v3660_v59 = vpop.eup %3659  ;;  %v2722_v1 = vsel %vm2274_vm3, %v5713_v4, %v2690_v52  ;;  %v2530_v38 = vmul.f32 0.6931472, %v3658_v32  ;;  %3667 = vlog2.f32 %v2573_v44  ;;  %v2576_v2 = vmul.f32 -0.5, %v5964_v55 }
 0x3a0   : > { %v2761_v10 = vmul.f32 %v5573_v21, %v2722_v1  ;;  %v2723_v8 = vsel %vm2275_vm13, %v5724_v61, %v2691_v37  ;;  %v2539_v45 = vmul.f32 0.6931472, %v3660_v59  ;;  %2801 = vadd.xlane.f32.xlu1 %v2756_v28  ;;  %v2596_v4 = vmul.f32 %v5960_v33, %v2595_v27 }
 0x3a1   : > { %v3662_v51 = vpop.eup %3661  ;;  %v2762_v30 = vmul.f32 %v5573_v21, %v2723_v8  ;;  %v2536_v53 = vsel %vm6043_vm11, %v2533_v58, %v2530_v38  ;;  %v2618_v6 = vadd.f32 1.0, %v5971_v46  ;;  %v2568_v3 = vadd.f32 1.0, %v2567_v56 }
 0x3a2   : > { %v3664_v52 = vpop.eup %3663  ;;  %2811 = vadd.xlane.f32.xlu0 %v2761_v10  ;;  %v2688_v36 = vmul.f32 0.01, %v2536_v53  ;;  %v2545_v61 = vsel %vm6049_vm1, %v2542_v9, %v2539_v45  ;;  %v2584_v15 = vmul.f32 0.6931472, %v3662_v51  ;;  %v2570_v29 = vand.u32 2147483647, %v5954_v12 }
 0x3a3   : > { %v2689_v11 = vmul.f32 0.01, %v2545_v61  ;;  %v2593_v16 = vmul.f32 0.6931472, %v3664_v52  ;;  %3669 = vlog2.f32 %v2618_v6  ;;  %v2577_v58 = vadd.f32 1.0, %v2576_v2 }
 0x3a4   : > { %v2720_v40 = vsel %vm2272_vm4, %v5718_v50, %v2688_v36  ;;  %v2590_v33 = vsel %vm6058_vm7, %v2587_v42, %v2584_v15  ;;  %v2579_v5 = vand.u32 2147483647, %v5964_v55  ;;  %2813 = vadd.xlane.f32.xlu1 %v2762_v30  ;;  %v2569_v35 = vmul.f32 %v5954_v12, %v2568_v3 }
 0x3a5   : > { %v3666_v27 = vpop.eup %3665  ;;  %v2759_v57 = vmul.f32 %v5573_v21, %v2720_v40  ;;  %v2721_v9 = vsel %vm2273_vm12, %v5733_v31, %v2689_v11  ;;  %v2694_v44 = vmul.f32 0.01, %v2590_v33  ;;  %v2599_v32 = vsel %vm6072_vm2, %v2596_v4, %v2593_v16 }
 0x3a6   : > { %v2695_v22 = vmul.f32 0.01, %v2599_v32  ;;  %v2566_v50 = vmul.f32 0.6931472, %v3666_v27  ;;  %v2621_v42 = vmul.f32 -0.5, %v5971_v46  ;;  %v2760_v23 = vmul.f32 %v5573_v21, %v2721_v9 }
 0x3a7   : > { %2807 = vadd.xlane.f32.xlu0 %v2759_v57  ;;  %vm6756_vm15 = vcmp.gt.f32.partialorder %v5793_v43, 20.0  ;;  %vm2571_vm3 = vcmp.lt.f32.partialorder %v2570_v29, 0.0004427343  ;;  %v2627_v31 = vadd.f32 1.0, %v6015_v26  ;;  %3671 = vpow2.f32 %v5996_v41 }
 0x3a8   : > { %v2726_v37 = vsel %vm6756_vm15, %v5784_v19, %v2694_v44  ;;  %v2727_v12 = vsel %vm2279_vm8, %v5796_v34, %v2695_v22  ;;  %v2572_v48 = vsel %vm2571_vm3, %v2569_v35, %v2566_v50  ;;  %2809 = vadd.xlane.f32.xlu1 %v2760_v23  ;;  %v2578_v43 = vmul.f32 %v5964_v55, %v2577_v58 }
 0x3a9   : > { %v2765_v63 = vmul.f32 %v5573_v21, %v2726_v37  ;;  %v3668_v56 = vpop.eup %3667  ;;  %v2766_v59 = vmul.f32 %v5573_v21, %v2727_v12  ;;  %v2692_v28 = vmul.f32 0.01, %v2572_v48  ;;  %3673 = vlog2.f32 %v2627_v31 }
 0x3aa   : > { %v2575_v19 = vmul.f32 0.6931472, %v3668_v56  ;;  %vm2580_vm4 = vcmp.lt.f32.partialorder %v2579_v5, 0.0004427343  ;;  %v2622_v1 = vadd.f32 1.0, %v2621_v42  ;;  %v2600_v41 = vadd.f32 1.0, %v6009_v17 }
 0x3ab   : > { %2819 = vadd.xlane.f32.xlu0 %v2765_v63  ;;  %vm6757_vm13 = vcmp.gt.f32.partialorder %v5802_v13, 20.0  ;;  %v2624_v34 = vand.u32 2147483647, %v5971_v46  ;;  %v2630_v38 = vmul.f32 -0.5, %v6015_v26  ;;  %v2609_v10 = vadd.f32 1.0, %v6023_v62 }
 0x3ac   : > { %v2724_v39 = vsel %vm6757_vm13, %v5788_v20, %v2692_v28  ;;  %v2581_v8 = vsel %vm2580_vm4, %v2578_v43, %v2575_v19  ;;  %3675 = vlog2.f32 %v2600_v41  ;;  %2821 = vadd.xlane.f32.xlu1 %v2766_v59  ;;  %v2623_v30 = vmul.f32 %v5971_v46, %v2622_v1 }
 0x3ad   : > { %v3670_v55 = vpop.eup %3669  ;;  %v2763_v45 = vmul.f32 %v5573_v21, %v2724_v39  ;;  %v2693_v2 = vmul.f32 0.01, %v2581_v8  ;;  %3677 = vlog2.f32 %v2609_v10  ;;  %v2603_v13 = vmul.f32 -0.5, %v6009_v17  ;;  %v6137_v21 = vld [vmem:[%s6317_s7] ss:$0 sm:$0xff]  ;;  %v6762_v8 = vld [vmem:[#allocation11_spill] sm:$0xff] }
 0x3ae   : > { %v2620_v51 = vmul.f32 0.6931472, %v3670_v55  ;;  %v2636_v20 = vadd.f32 1.0, %v6033_v14  ;;  %vm2625_vm12 = vcmp.lt.f32.partialorder %v2624_v34, 0.0004427343  ;;  %v2631_v4 = vadd.f32 1.0, %v2630_v38 }
 0x3af   : > { %2815 = vadd.xlane.f32.xlu0 %v2763_v45  ;;  %v2725_v53 = vsel %vm2277_vm0, %v5805_v24, %v2693_v2  ;;  %v2612_v46 = vmul.f32 -0.5, %v6023_v62  ;;  %v2633_v61 = vand.u32 2147483647, %v6015_v26  ;;  %v2604_v24 = vadd.f32 1.0, %v2603_v13  ;;  %v6761_v10 = vld [vmem:[#allocation14_spill] sm:$0xff] }
 0x3b0   : > { %v2764_v6 = vmul.f32 %v6137_v21, %v2725_v53  ;;  %v2626_v52 = vsel %vm2625_vm12, %v2623_v30, %v2620_v51  ;;  %3679 = vlog2.f32 %v2636_v20  ;;  %v2606_v49 = vand.u32 2147483647, %v6009_v17 }
 0x3b1   : > { %v2698_v36 = vmul.f32 0.01, %v2626_v52  ;;  %v6142_v15 = vpop.eup %3671  ;;  %v2645_v3 = vadd.f32 1.0, %v6054_v0  ;;  %v2632_v29 = vmul.f32 %v6015_v26, %v2631_v4  ;;  %v2639_v40 = vmul.f32 -0.5, %v6033_v14 }
 0x3b2   : > { %2817 = vadd.xlane.f32.xlu1 %v2764_v6  ;;  %v2654_v33 = vadd.f32 1.0, %v6028_v54  ;;  %v2613_v27 = vadd.f32 1.0, %v2612_v46  ;;  %vm2634_vm0 = vcmp.lt.f32.partialorder %v2633_v61, 0.0004427343  ;;  %v2615_v57 = vand.u32 2147483647, %v6023_v62 }
 0x3b3   : > { %v3674_v11 = vpop.eup %3673  ;;  %v2730_v16 = vsel %vm2282_vm10, %v5849_v7, %v2698_v36  ;;  %3681 = vlog2.f32 %v2645_v3  ;;  %v2605_v7 = vmul.f32 %v6009_v17, %v2604_v24  ;;  %vm6155_vm8 = vcmp.lt.f32.partialorder %v2606_v49, 0.0004427343  ;;  %v6764_v46 = vld [vmem:[#allocation46_spill] sm:$0xff]  ;;  %v6765_v36 = vld [vmem:[#allocation17_spill] sm:$0xff] }
 0x3b4   : > { %v2769_v58 = vmul.f32 %v6137_v21, %v2730_v16  ;;  %v2629_v5 = vmul.f32 0.6931472, %v3674_v11  ;;  %3683 = vlog2.f32 %v2654_v33  ;;  %v2663_v26 = vadd.f32 1.0, %v6142_v15  ;;  %v6768_v33 = vld [vmem:[#allocation16_spill] sm:$0xff] }
 0x3b5   : > { %v2640_v35 = vadd.f32 1.0, %v2639_v40  ;;  %v2648_v42 = vmul.f32 -0.5, %v6054_v0  ;;  %v2614_v37 = vmul.f32 %v6023_v62, %v2613_v27  ;;  %v2657_v31 = vmul.f32 -0.5, %v6028_v54  ;;  %v6770_v27 = vld [vmem:[#allocation13_spill] sm:$0xff] }
 0x3b6   : > { %v3676_v9 = vpop.eup %3675  ;;  %2827 = vadd.xlane.f32.xlu0 %v2769_v58  ;;  %v2635_v44 = vsel %vm2634_vm0, %v2632_v29, %v2629_v5  ;;  %3685 = vlog2.f32 %v2663_v26  ;;  %vm2616_vm10 = vcmp.lt.f32.partialorder %v2615_v57, 0.0004427343  ;;  %v2642_v12 = vand.u32 2147483647, %v6033_v14  ;;  %v6771_v57 = vld [vmem:[#allocation50_spill] sm:$0xff]  ;;  %v6773_v26 = vld [vmem:[#allocation49_spill] sm:$0xff] }
 0x3b7   : > { %v3678_v32 = vpop.eup %3677  ;;  %v2699_v22 = vmul.f32 0.01, %v2635_v44  ;;  %v2602_v50 = vmul.f32 0.6931472, %v3676_v9  ;;  %v2649_v62 = vadd.f32 1.0, %v2648_v42  ;;  %v2666_v1 = vmul.f32 -0.5, %v6142_v15 }
 0x3b8   : > { %v2611_v23 = vmul.f32 0.6931472, %v3678_v32  ;;  %v2651_v19 = vand.u32 2147483647, %v6054_v0  ;;  %v2641_v39 = vmul.f32 %v6033_v14, %v2640_v35  ;;  %v2658_v34 = vadd.f32 1.0, %v2657_v31 }
 0x3b9   : > { %v2731_v17 = vsel %vm2283_vm14, %v5867_v60, %v2699_v22  ;;  %v2608_v63 = vsel %vm6155_vm8, %v2605_v7, %v2602_v50  ;;  %vm6763_vm14 = vcmp.gt.f32.partialorder %v6762_v8, 20.0  ;;  %vm2643_vm7 = vcmp.lt.f32.partialorder %v2642_v12, 0.0004427343  ;;  %v6202_v50 = vld [vmem:[#allocation2] ss:$0 sm:$0xff] }
 0x3ba   : > { %v2770_v48 = vmul.f32 %v6137_v21, %v2731_v17  ;;  %v2696_v56 = vmul.f32 0.01, %v2608_v63  ;;  %v2617_v59 = vsel %vm2616_vm10, %v2614_v37, %v2611_v23  ;;  %v3680_v28 = vpop.eup %3679  ;;  %v2660_v45 = vand.u32 2147483647, %v6028_v54 }
 0x3bb   : > { %v2697_v43 = vmul.f32 0.01, %v2617_v59  ;;  %v2638_v41 = vmul.f32 0.6931472, %v3680_v28  ;;  %v2650_v14 = vmul.f32 %v6054_v0, %v2649_v62  ;;  %v2667_v53 = vadd.f32 1.0, %v2666_v1 }
 0x3bc   : > { %2829 = vadd.xlane.f32.xlu1 %v2770_v48  ;;  %v2728_v18 = vsel %vm2280_vm9, %v5855_v25, %v2696_v56  ;;  %vm2652_vm9 = vcmp.lt.f32.partialorder %v2651_v19, 0.0004427343  ;;  %v2659_v6 = vmul.f32 %v6028_v54, %v2658_v34  ;;  %v2669_v52 = vand.u32 2147483647, %v6142_v15  ;;  %v6767_v54 = vld [vmem:[#allocation18_spill] sm:$0xff] }
 0x3bd   : > { %v2767_v38 = vmul.f32 %v6137_v21, %v2728_v18  ;;  %v2729_v55 = vsel %vm6763_vm14, %v6761_v10, %v2697_v43  ;;  %v3682_v2 = vpop.eup %3681  ;;  %v2644_v30 = vsel %vm2643_vm7, %v2641_v39, %v2638_v41  ;;  %vm6766_vm1 = vcmp.gt.f32.partialorder %v6765_v36, 20.0 }
 0x3be   : > { %v2768_v51 = vmul.f32 %v6137_v21, %v2729_v55  ;;  %v3684_v13 = vpop.eup %3683  ;;  %v2700_v25 = vmul.f32 0.01, %v2644_v30  ;;  %v2647_v20 = vmul.f32 0.6931472, %v3682_v2  ;;  %vm2661_vm6 = vcmp.lt.f32.partialorder %v2660_v45, 0.0004427343 }
 0x3bf   : > { %2823 = vadd.xlane.f32.xlu0 %v2767_v38  ;;  %v2656_v4 = vmul.f32 0.6931472, %v3684_v13  ;;  %v2668_v40 = vmul.f32 %v6142_v15, %v2667_v53  ;;  %vm6769_vm5 = vcmp.gt.f32.partialorder %v6768_v33, 20.0  ;;  %vm2670_vm11 = vcmp.lt.f32.partialorder %v2669_v52, 0.0004427343  ;;  %v6774_v15 = vld [vmem:[#allocation15_spill] sm:$0xff] }
 0x3c0   : > { %2825 = vadd.xlane.f32.xlu1 %v2768_v51  ;;  %v2732_v61 = vsel %vm6766_vm1, %v6764_v46, %v2700_v25  ;;  %v2653_v24 = vsel %vm2652_vm9, %v2650_v14, %v2647_v20  ;;  %v3686_v49 = vpop.eup %3685  ;;  %vm6772_vm2 = vcmp.gt.f32.partialorder %v6771_v57, 20.0  ;;  %vm6775_vm15 = vcmp.gt.f32.partialorder %v6774_v15, 20.0 }
 0x3c1   : > { %v2771_v3 = vmul.f32 %v6137_v21, %v2732_v61  ;;  %v2701_v11 = vmul.f32 0.01, %v2653_v24  ;;  %v2662_v16 = vsel %vm2661_vm6, %v2659_v6, %v2656_v4  ;;  %v2665_v29 = vmul.f32 0.6931472, %v3686_v49 }
 0x3c2   : > { %v2702_v0 = vmul.f32 0.01, %v2662_v16  ;;  %vm2878_vm3 = vcmask 7168  }
 0x3c3   : > { %2831 = vadd.xlane.f32.xlu0 %v2771_v3  ;;  %v2733_v58 = vsel %vm6769_vm5, %v6767_v54, %v2701_v11  ;;  %v2671_v44 = vsel %vm2670_vm11, %v2668_v40, %v2665_v29 }
 0x3c4   : > { %v2772_v5 = vmul.f32 %v6137_v21, %v2733_v58  ;;  %v2734_v9 = vsel %vm6772_vm2, %v6770_v27, %v2702_v0  ;;  %v2703_v47 = vmul.f32 0.01, %v2671_v44 }
 0x3c5   : > { %v2773_v7 = vmul.f32 %v6137_v21, %v2734_v9 }
 0x3c6   : > { %2833 = vadd.xlane.f32.xlu1 %v2772_v5  ;;  %v2735_v32 = vsel %vm6775_vm15, %v6773_v26, %v2703_v47 }
 0x3c7   : > { %2835 = vadd.xlane.f32.xlu0 %v2773_v7  ;;  %v2774_v22 = vmul.f32 %v6137_v21, %v2735_v32 }
 0x3ca   : > { %2837 = vadd.xlane.f32.xlu1 %v2774_v22 }
 0x3d0   : > { %v2780_v35 = vpop.xlane.xlu1 %2779 }
 0x3d1   : > { %v2848_v42 = vadd.f32 %v6202_v50, %v2780_v35  ;;  %v2776_v23 = vpop.xlane.xlu0 %2775 }
 0x3d2   : > { %v2846_v21 = vadd.f32 %v6202_v50, %v2776_v23 }
 0x3d3   : > { %2881 = vst.msk [vmem:[%s6209_s10 + $0x10] sm:$0xff] %vm2878_vm3, %v2848_v42 }
 0x3d4   : > { %2879 = vst.msk [vmem:[%s6209_s10] sm:$0xff] %vm2878_vm3, %v2846_v21  ;;  %v2782_v37 = vpop.xlane.xlu1 %2781 }
 0x3d5   : > { %v2849_v31 = vadd.f32 %v6202_v50, %v2782_v37 }
 0x3d7   : > { %2882 = vst.msk [vmem:[%s6209_s10 + $0x18] sm:$0xff] %vm2878_vm3, %v2849_v31 }
 0x3d9   : > { %v2778_v17 = vpop.xlane.xlu0 %2777 }
 0x3da   : > { %v2847_v63 = vadd.f32 %v6202_v50, %v2778_v17 }
 0x3dc   : > { %2880 = vst.msk [vmem:[%s6209_s10 + $0x8] sm:$0xff] %vm2878_vm3, %v2847_v63 }
 0x3e3   : > { %v2788_v12 = vpop.xlane.xlu0 %2787 }
 0x3e4   : > { %v2852_v48 = vadd.f32 %v6202_v50, %v2788_v12 }
 0x3e6   : > { %2885 = vst.msk [vmem:[%s6209_s10 + $0x30] sm:$0xff] %vm2878_vm3, %v2852_v48 }
 0x3e9   : > { %v2790_v56 = vpop.xlane.xlu1 %2789 }
 0x3ea   : > { %v2853_v59 = vadd.f32 %v6202_v50, %v2790_v56  ;;  %v2784_v28 = vpop.xlane.xlu0 %2783 }
 0x3eb   : > { %v2850_v43 = vadd.f32 %v6202_v50, %v2784_v28 }
 0x3ec   : > { %2886 = vst.msk [vmem:[%s6209_s10 + $0x38] sm:$0xff] %vm2878_vm3, %v2853_v59 }
 0x3ed   : > { %2883 = vst.msk [vmem:[%s6209_s10 + $0x20] sm:$0xff] %vm2878_vm3, %v2850_v43 }
 0x3f1   : > { %v2786_v62 = vpop.xlane.xlu1 %2785 }
 0x3f2   : > { %v2851_v19 = vadd.f32 %v6202_v50, %v2786_v62 }
 0x3f4   : > { %2884 = vst.msk [vmem:[%s6209_s10 + $0x28] sm:$0xff] %vm2878_vm3, %v2851_v19 }
 0x403   : > { %v2796_v1 = vpop.xlane.xlu0 %2795 }
 0x404   : > { %v2856_v60 = vadd.f32 %v6202_v50, %v2796_v1 }
 0x406   : > { %2889 = vst.msk [vmem:[%s6209_s10 + $0x50] sm:$0xff] %vm2878_vm3, %v2856_v60 }
 0x407   : > { %v2798_v18 = vpop.xlane.xlu1 %2797 }
 0x408   : > { %v2857_v41 = vadd.f32 %v6202_v50, %v2798_v18 }
 0x40a   : > { %2890 = vst.msk [vmem:[%s6209_s10 + $0x58] sm:$0xff] %vm2878_vm3, %v2857_v41 }
 0x40c   : > { %v2792_v39 = vpop.xlane.xlu0 %2791 }
 0x40d   : > { %v2854_v34 = vadd.f32 %v6202_v50, %v2792_v39 }
 0x40f   : > { %2887 = vst.msk [vmem:[%s6209_s10 + $0x40] sm:$0xff] %vm2878_vm3, %v2854_v34 }
 0x410   : > { %v2794_v38 = vpop.xlane.xlu1 %2793 }
 0x411   : > { %v2855_v10 = vadd.f32 %v6202_v50, %v2794_v38 }
 0x413   : > { %2888 = vst.msk [vmem:[%s6209_s10 + $0x48] sm:$0xff] %vm2878_vm3, %v2855_v10 }
 0x415   : > { %v2804_v8 = vpop.xlane.xlu0 %2803 }
 0x416   : > { %v2860_v55 = vadd.f32 %v6202_v50, %v2804_v8 }
 0x418   : > { %2893 = vst.msk [vmem:[%s6209_s10 + $0x70] sm:$0xff] %vm2878_vm3, %v2860_v55 }
 0x422   : > { %v2806_v45 = vpop.xlane.xlu1 %2805 }
 0x423   : > { %v2861_v2 = vadd.f32 %v6202_v50, %v2806_v45  ;;  %v2800_v51 = vpop.xlane.xlu0 %2799 }
 0x424   : > { %v2858_v30 = vadd.f32 %v6202_v50, %v2800_v51 }
 0x425   : > { %2894 = vst.msk [vmem:[%s6209_s10 + $0x78] sm:$0xff] %vm2878_vm3, %v2861_v2 }
 0x426   : > { %2891 = vst.msk [vmem:[%s6209_s10 + $0x60] sm:$0xff] %vm2878_vm3, %v2858_v30 }
 0x42d   : > { %v2802_v13 = vpop.xlane.xlu1 %2801 }
 0x42e   : > { %v2859_v25 = vadd.f32 %v6202_v50, %v2802_v13 }
 0x42f   : > { %v2812_v20 = vpop.xlane.xlu0 %2811 }
 0x430   : > { %v2864_v14 = vadd.f32 %v6202_v50, %v2812_v20  ;;  %2892 = vst.msk [vmem:[%s6209_s10 + $0x68] sm:$0xff] %vm2878_vm3, %v2859_v25 }
 0x431   : > { %v2814_v53 = vpop.xlane.xlu1 %2813 }
 0x432   : > { %2897 = vst.msk [vmem:[%s6209_s10 + $0x90] sm:$0xff] %vm2878_vm3, %v2864_v14  ;;  %v2865_v4 = vadd.f32 %v6202_v50, %v2814_v53 }
 0x434   : > { %v2808_v6 = vpop.xlane.xlu0 %2807  ;;  %2898 = vst.msk [vmem:[%s6209_s10 + $0x98] sm:$0xff] %vm2878_vm3, %v2865_v4 }
 0x435   : > { %v2862_v52 = vadd.f32 %v6202_v50, %v2808_v6  ;;  %v2810_v46 = vpop.xlane.xlu1 %2809 }
 0x436   : > { %v2863_v36 = vadd.f32 %v6202_v50, %v2810_v46 }
 0x437   : > { %2895 = vst.msk [vmem:[%s6209_s10 + $0x80] sm:$0xff] %vm2878_vm3, %v2862_v52 }
 0x438   : > { %v2820_v61 = vpop.xlane.xlu0 %2819  ;;  %2896 = vst.msk [vmem:[%s6209_s10 + $0x88] sm:$0xff] %vm2878_vm3, %v2863_v36 }
 0x439   : > { %v2868_v24 = vadd.f32 %v6202_v50, %v2820_v61  ;;  %v2822_v49 = vpop.xlane.xlu1 %2821 }
 0x43a   : > { %v2869_v3 = vadd.f32 %v6202_v50, %v2822_v49 }
 0x43b   : > { %2901 = vst.msk [vmem:[%s6209_s10 + $0xb0] sm:$0xff] %vm2878_vm3, %v2868_v24 }
 0x43c   : > { %v2816_v11 = vpop.xlane.xlu0 %2815  ;;  %2902 = vst.msk [vmem:[%s6209_s10 + $0xb8] sm:$0xff] %vm2878_vm3, %v2869_v3 }
 0x43d   : > { %v2866_v16 = vadd.f32 %v6202_v50, %v2816_v11 }
 0x43f   : > { %2899 = vst.msk [vmem:[%s6209_s10 + $0xa0] sm:$0xff] %vm2878_vm3, %v2866_v16  ;;  %v2818_v0 = vpop.xlane.xlu1 %2817 }
 0x440   : > { %v2867_v29 = vadd.f32 %v6202_v50, %v2818_v0 }
 0x442   : > { %2900 = vst.msk [vmem:[%s6209_s10 + $0xa8] sm:$0xff] %vm2878_vm3, %v2867_v29 }
 0x443   : > { %v2828_v40 = vpop.xlane.xlu0 %2827 }
 0x444   : > { %v2872_v54 = vadd.f32 %v6202_v50, %v2828_v40 }
 0x446   : > { %2905 = vst.msk [vmem:[%s6209_s10 + $0xd0] sm:$0xff] %vm2878_vm3, %v2872_v54 }
 0x449   : > { %v2830_v33 = vpop.xlane.xlu1 %2829 }
 0x44a   : > { %v2873_v58 = vadd.f32 %v6202_v50, %v2830_v33 }
 0x44c   : > { %2906 = vst.msk [vmem:[%s6209_s10 + $0xd8] sm:$0xff] %vm2878_vm3, %v2873_v58  ;;  %v2824_v5 = vpop.xlane.xlu0 %2823 }
 0x44d   : > { %v2870_v27 = vadd.f32 %v6202_v50, %v2824_v5  ;;  %v2826_v57 = vpop.xlane.xlu1 %2825 }
 0x44e   : > { %v2871_v9 = vadd.f32 %v6202_v50, %v2826_v57 }
 0x44f   : > { %2903 = vst.msk [vmem:[%s6209_s10 + $0xc0] sm:$0xff] %vm2878_vm3, %v2870_v27 }
 0x450   : > { %2904 = vst.msk [vmem:[%s6209_s10 + $0xc8] sm:$0xff] %vm2878_vm3, %v2871_v9  ;;  %v2832_v44 = vpop.xlane.xlu0 %2831 }
 0x451   : > { %v2874_v7 = vadd.f32 %v6202_v50, %v2832_v44 }
 0x453   : > { %2907 = vst.msk [vmem:[%s6209_s10 + $0xe0] sm:$0xff] %vm2878_vm3, %v2874_v7  ;;  %v2834_v47 = vpop.xlane.xlu1 %2833 }
 0x454   : > { %v2875_v26 = vadd.f32 %v6202_v50, %v2834_v47  ;;  %v2836_v15 = vpop.xlane.xlu0 %2835 }
 0x455   : > { %v2876_v32 = vadd.f32 %v6202_v50, %v2836_v15 }
 0x456   : > { %2908 = vst.msk [vmem:[%s6209_s10 + $0xe8] sm:$0xff] %vm2878_vm3, %v2875_v26 }
 0x457   : > { %2909 = vst.msk [vmem:[%s6209_s10 + $0xf0] sm:$0xff] %vm2878_vm3, %v2876_v32  ;;  %v2838_v22 = vpop.xlane.xlu1 %2837 }
 0x458   : > { %v2877_v35 = vadd.f32 %v6202_v50, %v2838_v22 }
 0x45a   : > { %2910 = vst.msk [vmem:[%s6209_s10 + $0xf8] sm:$0xff] %vm2878_vm3, %v2877_v35 }
 0x45b PF: > { %s21_s11 = sadd.s32 1, %s3694_s11  }
 0x45c   : > { %p18_p4 = scmp.ge.s32.totalorder %s21_s11, 4  }
 0x45e   :  { %20 = sbr.rel (!%p18_p4) target bundleno = 3 (0x3), region = 86 }

</bundles_post_ra>
